<compile_context>
chip_gen: v5e
topology: v5e:2x2
jax: 0.10.0
libtpu: 0.0.40
codegen_flags: <defaults>
</compile_context>

<pallas_src>
import functools

import jax
import jax.numpy as jnp
import numpy as np
from jax.experimental import pallas as pl
from jax.experimental.pallas import tpu as pltpu

EPS = 1e-5
LANE = 128


def _round_up(x, m):
    return (x + m - 1) // m * m


# --------------------------------------------------------------------------
# Kernel 1: implicit-im2col 3x3 conv + fused BN statistics
#           (optionally fuses bn-apply + ReLU of the *input* activation)
# --------------------------------------------------------------------------
def _conv_stats_kernel(*refs, taps, ho, wo, pre_act):
    """One batch element per grid step.

    x_ref   : (n_ph, 1, Hph, Wph, Cin_p) bf16  (spatially pre-padded phases)
    w_ref   : (9, Cin_p, Cout_p)         bf16  (tap-major weights)
    sc_ref  : (1, Cin_p) f32   [only if pre_act]  bn scale for the input
    sh_ref  : (1, Cin_p) f32   [only if pre_act]  bn shift for the input
    y_ref   : (ho*wo, Cout_p)            bf16  (this image's output rows)
    sum_ref : (1, 1, Cout_p)             f32   per-image partial sum
    sq_ref  : (1, 1, Cout_p)             f32   per-image partial sum of squares
    """
    if pre_act:
        x_ref, w_ref, sc_ref, sh_ref, y_ref, sum_ref, sq_ref = refs
    else:
        x_ref, w_ref, y_ref, sum_ref, sq_ref = refs
        sc_ref = sh_ref = None

    n_ph, _, hph, wph, cin_p = x_ref.shape

    if pre_act:
        # Fused bn1-apply + ReLU on the (zero-padded) input image, done in f32.
        # An iota mask keeps the 1-pixel zero halo at zero (relu(shift) != 0).
        x = x_ref[0, 0].astype(jnp.float32)                   # (Hph, Wph, Cin_p)
        a = jnp.maximum(x * sc_ref[0, :] + sh_ref[0, :], 0.0)
        row = jax.lax.broadcasted_iota(jnp.int32, (hph, wph, cin_p), 0)
        col = jax.lax.broadcasted_iota(jnp.int32, (hph, wph, cin_p), 1)
        keep = ((row >= 1) & (row < hph - 1) & (col >= 1) & (col < wph - 1))
        a = jnp.where(keep, a, 0.0).astype(jnp.bfloat16)

        def load(ph, ro, co):
            return a[ro:ro + ho, co:co + wo, :].reshape(ho * wo, cin_p)
    else:
        def load(ph, ro, co):
            return x_ref[ph, 0, ro:ro + ho, co:co + wo, :].reshape(
                ho * wo, cin_p)

    # Local f32 accumulation over the 9 taps; single store of the tile.
    acc = None
    for t in range(9):
        ph, ro, co = taps[t]
        d = jnp.dot(load(ph, ro, co), w_ref[t],
                    preferred_element_type=jnp.float32)
        acc = d if acc is None else acc + d

    y_ref[...] = acc.astype(y_ref.dtype)
    sum_ref[...] = jnp.sum(acc, axis=0, keepdims=True).reshape(1, 1, -1)
    sq_ref[...] = jnp.sum(acc * acc, axis=0, keepdims=True).reshape(1, 1, -1)


def conv3x3_with_stats(x_nhwc, w_oihw, stride, pre_scale=None, pre_shift=None):
    """3x3 conv, pad=1, no bias (bias is a no-op before train-mode BN).

    If pre_scale/pre_shift are given, relu(x*scale + shift) is applied to the
    input inside the kernel (fused bn-apply + ReLU of the previous layer).

    Returns y (N*Ho*Wo, Cout_p) bf16 with channels padded to 128, per-image
    partial channel sums / sums-of-squares (N, 1, Cout_p), and the geometry.
    """
    n, h, w, cin = x_nhwc.shape
    cout, cin_w = w_oihw.shape[0], w_oihw.shape[1]
    cin_p = _round_up(cin, LANE)
    cout_p = _round_up(cout, LANE)
    ho = (h - 1) // stride + 1
    wo = (w - 1) // stride + 1
    pre_act = pre_scale is not None

    xp = jnp.pad(x_nhwc, ((0, 0), (1, 1), (1, 1), (0, cin_p - cin)))
    xp = xp.astype(jnp.bfloat16)

    if stride == 1:
        phases = xp[None]                     # (1, N, H+2, W+2, Cin_p)
        taps = tuple((0, dy, dx) for dy in range(3) for dx in range(3))
    elif stride == 2:
        hp, wp = xp.shape[1], xp.shape[2]
        xp = jnp.pad(xp, ((0, 0), (0, hp % 2), (0, wp % 2), (0, 0)))
        # space-to-depth: 4 even/odd row/col phases -> contiguous tap slices
        phases = jnp.stack([xp[:, pr::2, pc::2, :]
                            for pr in range(2) for pc in range(2)])
        taps = tuple((2 * (dy % 2) + (dx % 2), dy // 2, dx // 2)
                     for dy in range(3) for dx in range(3))
    else:
        raise NotImplementedError("only stride 1 and 2 are supported")

    # (Cout, Cin, 3, 3) -> (9, Cin_p, Cout_p), tap index t = 3*dy + dx.
    w_mat = jnp.transpose(w_oihw, (2, 3, 1, 0)).reshape(9, cin_w, cout)
    w_mat = jnp.pad(w_mat, ((0, 0), (0, cin_p - cin_w), (0, cout_p - cout)))
    w_mat = w_mat.astype(jnp.bfloat16)

    n_ph, _, hph, wph, _ = phases.shape
    m = n * ho * wo

    in_specs = [
        pl.BlockSpec((n_ph, 1, hph, wph, cin_p), lambda i: (0, i, 0, 0, 0)),
        pl.BlockSpec((9, cin_p, cout_p), lambda i: (0, 0, 0)),
    ]
    operands = [phases, w_mat]
    if pre_act:
        in_specs += [pl.BlockSpec((1, cin_p), lambda i: (0, 0)),
                     pl.BlockSpec((1, cin_p), lambda i: (0, 0))]
        operands += [pre_scale, pre_shift]

    # Budget VMEM from the actual per-step block footprint (double-buffered
    # inputs/outputs + temporaries), clamped so it is safe on v7x (64 MiB).
    block_bytes = (n_ph * hph * wph * cin_p * 2       # input phases (bf16)
                   + 9 * cin_p * cout_p * 2           # weights (bf16)
                   + ho * wo * cout_p * 2             # y tile (bf16)
                   + ho * wo * cout_p * 4             # f32 accumulator
                   + 4 * cout_p * 4)                  # stats / scale rows
    vmem_limit = int(min(64 * 2**20, max(32 * 2**20, 4 * block_bytes)))

    kernel = functools.partial(_conv_stats_kernel, taps=taps, ho=ho, wo=wo,
                               pre_act=pre_act)
    y, s, sq = pl.pallas_call(
        kernel,
        out_shape=(
            jax.ShapeDtypeStruct((m, cout_p), jnp.bfloat16),
            jax.ShapeDtypeStruct((n, 1, cout_p), jnp.float32),
            jax.ShapeDtypeStruct((n, 1, cout_p), jnp.float32),
        ),
        grid_spec=pltpu.PrefetchScalarGridSpec(
            num_scalar_prefetch=0,
            grid=(n,),
            in_specs=in_specs,
            out_specs=(
                pl.BlockSpec((ho * wo, cout_p), lambda i: (i, 0)),
                pl.BlockSpec((1, 1, cout_p), lambda i: (i, 0, 0)),
                pl.BlockSpec((1, 1, cout_p), lambda i: (i, 0, 0)),
            ),
        ),
        compiler_params=pltpu.CompilerParams(
            dimension_semantics=("parallel",),      # per-step partial stats
            vmem_limit_bytes=vmem_limit,
        ),
    )(*operands)
    return y, s, sq, (n, ho, wo, cout_p)


# --------------------------------------------------------------------------
# Tiny (1, C) BN parameter folding (plain JAX; negligible)
# --------------------------------------------------------------------------
def bn_scale_shift(sum_p, sq_p, m, gamma, beta, cout, cout_p):
    s = jnp.sum(sum_p, axis=(0, 1))
    q = jnp.sum(sq_p, axis=(0, 1))
    mean = s / m
    var = jnp.maximum(q / m - mean * mean, 0.0)   # biased (train-mode BN)
    g = jnp.pad(gamma, (0, cout_p - cout), constant_values=1.0)
    b = jnp.pad(beta, (0, cout_p - cout))
    scale = (g * jax.lax.rsqrt(var + EPS)).astype(jnp.float32)
    shift = (b - mean * scale).astype(jnp.float32)
    return scale.reshape(1, cout_p), shift.reshape(1, cout_p)


# --------------------------------------------------------------------------
# Kernel 2: fused epilogue  relu(bn2(y2) + bn_res(res))   (f32 math, bf16 in)
#   identity residual uses scale=1, shift=0 so one kernel covers both paths
# --------------------------------------------------------------------------
def _residual_epilogue_kernel(y_ref, r_ref, sy_ref, ty_ref, sr_ref, tr_ref,
                              o_ref):
    y = y_ref[...].astype(jnp.float32)
    r = r_ref[...].astype(jnp.float32)
    out = y * sy_ref[...] + ty_ref[...] + r * sr_ref[...] + tr_ref[...]
    o_ref[...] = jnp.maximum(out, 0.0)


def residual_epilogue(y, res, sy, ty, sr, tr):
    m, c = y.shape
    if m <= 512:
        tm, mp = m, m
    else:
        tm = 512
        mp = _round_up(m, tm)
        y = jnp.pad(y, ((0, mp - m), (0, 0)))
        res = jnp.pad(res, ((0, mp - m), (0, 0)))
    tile = pl.BlockSpec((tm, c), lambda i: (i, 0))
    row = pl.BlockSpec((1, c), lambda i: (0, 0))
    out = pl.pallas_call(
        _residual_epilogue_kernel,
        out_shape=jax.ShapeDtypeStruct((mp, c), jnp.float32),
        grid_spec=pltpu.PrefetchScalarGridSpec(
            num_scalar_prefetch=0, grid=(mp // tm,),
            in_specs=[tile, tile, row, row, row, row], out_specs=tile),
        compiler_params=pltpu.CompilerParams(
            dimension_semantics=("parallel",)),
    )(y, res, sy, ty, sr, tr)
    return out[:m] if mp != m else out


# --------------------------------------------------------------------------
# Full residual block
# --------------------------------------------------------------------------
def residual_block_forward(x_nchw, p, stride):
    x = jnp.transpose(x_nchw, (0, 2, 3, 1)).astype(jnp.float32)   # NCHW->NHWC
    n, h, w, cin = x.shape
    cout = p["conv1_w"].shape[0]

    # conv1 (+ fused per-image batch stats)
    y1, s1, q1, (n, ho, wo, cout_p) = conv3x3_with_stats(
        x, p["conv1_w"], stride)
    m = n * ho * wo
    sc1, sh1 = bn_scale_shift(s1, q1, m, p["bn1_g"], p["bn1_b"], cout, cout_p)

    # conv2: bn1-apply + ReLU fused into its input path; bn2 deferred to the
    # fused epilogue.  y1 stays raw/bf16 in HBM (no standalone elementwise pass).
    h1 = y1.reshape(n, ho, wo, cout_p)
    y2, s2, q2, _ = conv3x3_with_stats(h1, p["conv2_w"], 1,
                                       pre_scale=sc1, pre_shift=sh1)
    sc2, sh2 = bn_scale_shift(s2, q2, m, p["bn2_g"], p["bn2_b"], cout, cout_p)

    # residual branch
    if stride != 1:
        yd, sd, qd, _ = conv3x3_with_stats(x, p["ds_w"], stride)
        scd, shd = bn_scale_shift(sd, qd, m, p["ds_bn_g"], p["ds_bn_b"],
                                  cout, cout_p)
        res = yd
    else:
        assert cin == cout, "identity residual requires Cin == Cout"
        res = jnp.pad(x, ((0, 0), (0, 0), (0, 0), (0, cout_p - cin)))
        res = res.astype(jnp.bfloat16).reshape(m, cout_p)
        scd = jnp.ones((1, cout_p), jnp.float32)
        shd = jnp.zeros((1, cout_p), jnp.float32)

    out = residual_epilogue(y2, res, sc2, sh2, scd, shd)      # (M, Cout_p) f32
    out = out.reshape(n, ho, wo, cout_p)[..., :cout]
    return jnp.transpose(out, (0, 3, 1, 2))                   # back to NCHW


# --------------------------------------------------------------------------
# Pure-JAX f32 reference (PyTorch semantics, including conv bias)
# --------------------------------------------------------------------------
def _ref_conv(x_nhwc, w_oihw, b, stride):
    w_hwio = jnp.transpose(w_oihw, (2, 3, 1, 0))
    y = jax.lax.conv_general_dilated(
        x_nhwc, w_hwio, (stride, stride), ((1, 1), (1, 1)),
        dimension_numbers=("NHWC", "HWIO", "NHWC"))
    return y + b.reshape(1, 1, 1, -1)


def _ref_bn(y, gamma, beta):
    mean = y.mean(axis=(0, 1, 2))
    var = y.var(axis=(0, 1, 2))     # biased
    return (y - mean) * jax.lax.rsqrt(var + EPS) * gamma + beta


def reference_forward(x_nchw, p, stride):
    x = jnp.transpose(x_nchw, (0, 2, 3, 1))
    out = _ref_bn(_ref_conv(x, p["conv1_w"], p["conv1_b"], stride),
                  p["bn1_g"], p["bn1_b"])
    out = jnp.maximum(out, 0.0)
    out = _ref_bn(_ref_conv(out, p["conv2_w"], p["conv2_b"], 1),
                  p["bn2_g"], p["bn2_b"])
    if stride != 1:
        res = _ref_bn(_ref_conv(x, p["ds_w"], p["ds_b"], stride),
                      p["ds_bn_g"], p["ds_bn_b"])
    else:
        res = x
    return jnp.transpose(jnp.maximum(out + res, 0.0), (0, 3, 1, 2))


# --------------------------------------------------------------------------
if __name__ == "__main__":
    N, Cin, H, W = 2, 4, 16, 16
    Cout, stride = 8, 2

    key = jax.random.PRNGKey(0)
    ks = jax.random.split(key, 13)
    x = jax.random.normal(ks[0], (N, Cin, H, W), jnp.float32)   # NCHW input

    params = {
        "conv1_w": 0.1 * jax.random.normal(ks[1], (Cout, Cin, 3, 3), jnp.float32),
        "conv1_b": 0.1 * jax.random.normal(ks[2], (Cout,), jnp.float32),
        "bn1_g": 1.0 + 0.1 * jax.random.normal(ks[3], (Cout,), jnp.float32),
        "bn1_b": 0.1 * jax.random.normal(ks[4], (Cout,), jnp.float32),
        "conv2_w": 0.1 * jax.random.normal(ks[5], (Cout, Cout, 3, 3), jnp.float32),
        "conv2_b": 0.1 * jax.random.normal(ks[6], (Cout,), jnp.float32),
        "bn2_g": 1.0 + 0.1 * jax.random.normal(ks[7], (Cout,), jnp.float32),
        "bn2_b": 0.1 * jax.random.normal(ks[8], (Cout,), jnp.float32),
        "ds_w": 0.1 * jax.random.normal(ks[9], (Cout, Cin, 3, 3), jnp.float32),
        "ds_b": 0.1 * jax.random.normal(ks[10], (Cout,), jnp.float32),
        "ds_bn_g": 1.0 + 0.1 * jax.random.normal(ks[11], (Cout,), jnp.float32),
        "ds_bn_b": 0.1 * jax.random.normal(ks[12], (Cout,), jnp.float32),
    }

    fwd = jax.jit(residual_block_forward, static_argnums=2)
    out = jax.block_until_ready(fwd(x, params, stride))

    ref = reference_forward(x, params, stride)
    # bf16 matmul operands + bf16 intermediate storage (f32 accumulation and
    # f32 elementwise math) -> loosened tolerance vs the all-f32 reference;
    # a functional bug would be O(1) off.
    np.testing.assert_allclose(np.asarray(out), np.asarray(ref),
                               rtol=5e-2, atol=5e-2)

    print("KERNEL_OK")
</pallas_src>

<mosaic_0001>
module attributes {stable_mosaic.version = 11 : i64} {
  func.func @_conv_stats_kernel(%arg0: i32, %arg1: memref<4x1x9x9x128xbf16, #tpu.memory_space<vmem>>, %arg2: memref<9x128x128xbf16, #tpu.memory_space<vmem>>, %arg3: memref<64x128xbf16, #tpu.memory_space<vmem>>, %arg4: memref<1x1x128xf32, #tpu.memory_space<vmem>>, %arg5: memref<1x1x128xf32, #tpu.memory_space<vmem>>) attributes {dimension_semantics = [#tpu.dimension_semantics<parallel>], iteration_bounds = array<i64: 2>, scalar_prefetch = 0 : i64, scratch_operands = 0 : i64, tpu.core_type = #tpu.core_type<tc>, window_params = [{transform_indices = @transform_0, window_bounds = array<i64: 4, 1, 9, 9, 128>}, {pipeline_mode = #tpu.pipeline_mode<synchronous>, transform_indices = @transform_1, window_bounds = array<i64: 9, 128, 128>}, {transform_indices = @transform_2, window_bounds = array<i64: 64, 128>}, {transform_indices = @transform_3, window_bounds = array<i64: 1, 1, 128>}, {transform_indices = @transform_4, window_bounds = array<i64: 1, 1, 128>}]} {
    %c0 = arith.constant 0 : index
    %c0_0 = arith.constant 0 : index
    %c0_1 = arith.constant 0 : index
    %c0_2 = arith.constant 0 : index
    %c0_3 = arith.constant 0 : index
    %0 = vector.load %arg1[%c0, %c0_0, %c0_1, %c0_2, %c0_3] : memref<4x1x9x9x128xbf16, #tpu.memory_space<vmem>>, vector<1x1x8x8x128xbf16>
    %1 = vector.shape_cast %0 : vector<1x1x8x8x128xbf16> to vector<8x8x128xbf16>
    %2 = vector.shape_cast %1 : vector<8x8x128xbf16> to vector<64x128xbf16>
    %c0_4 = arith.constant 0 : index
    %c0_5 = arith.constant 0 : index
    %c0_6 = arith.constant 0 : index
    %3 = vector.load %arg2[%c0_4, %c0_5, %c0_6] : memref<9x128x128xbf16, #tpu.memory_space<vmem>>, vector<1x128x128xbf16>
    %4 = vector.shape_cast %3 : vector<1x128x128xbf16> to vector<128x128xbf16>
    %cst = arith.constant dense<0.000000e+00> : vector<64x128xf32>
    %5 = tpu.matmul %2, %4, %cst {dimension_numbers = #tpu.dot_dimension_numbers<[1], [0], [0], [1], [0, 0, 1, 1], [], []>} : vector<64x128xbf16>, vector<128x128xbf16>, vector<64x128xf32> -> vector<64x128xf32>
    %c1 = arith.constant 1 : index
    %c0_7 = arith.constant 0 : index
    %c0_8 = arith.constant 0 : index
    %c0_9 = arith.constant 0 : index
    %c0_10 = arith.constant 0 : index
    %6 = vector.load %arg1[%c1, %c0_7, %c0_8, %c0_9, %c0_10] : memref<4x1x9x9x128xbf16, #tpu.memory_space<vmem>>, vector<1x1x8x8x128xbf16>
    %7 = vector.shape_cast %6 : vector<1x1x8x8x128xbf16> to vector<8x8x128xbf16>
    %8 = vector.shape_cast %7 : vector<8x8x128xbf16> to vector<64x128xbf16>
    %c1_11 = arith.constant 1 : index
    %c0_12 = arith.constant 0 : index
    %c0_13 = arith.constant 0 : index
    %9 = vector.load %arg2[%c1_11, %c0_12, %c0_13] : memref<9x128x128xbf16, #tpu.memory_space<vmem>>, vector<1x128x128xbf16>
    %10 = vector.shape_cast %9 : vector<1x128x128xbf16> to vector<128x128xbf16>
    %cst_14 = arith.constant dense<0.000000e+00> : vector<64x128xf32>
    %11 = tpu.matmul %8, %10, %cst_14 {dimension_numbers = #tpu.dot_dimension_numbers<[1], [0], [0], [1], [0, 0, 1, 1], [], []>} : vector<64x128xbf16>, vector<128x128xbf16>, vector<64x128xf32> -> vector<64x128xf32>
    %12 = arith.addf %5, %11 : vector<64x128xf32>
    %c0_15 = arith.constant 0 : index
    %c0_16 = arith.constant 0 : index
    %c0_17 = arith.constant 0 : index
    %c1_18 = arith.constant 1 : index
    %c0_19 = arith.constant 0 : index
    %13 = vector.load %arg1[%c0_15, %c0_16, %c0_17, %c1_18, %c0_19] : memref<4x1x9x9x128xbf16, #tpu.memory_space<vmem>>, vector<1x1x8x8x128xbf16>
    %14 = vector.shape_cast %13 : vector<1x1x8x8x128xbf16> to vector<8x8x128xbf16>
    %15 = vector.shape_cast %14 : vector<8x8x128xbf16> to vector<64x128xbf16>
    %c2 = arith.constant 2 : index
    %c0_20 = arith.constant 0 : index
    %c0_21 = arith.constant 0 : index
    %16 = vector.load %arg2[%c2, %c0_20, %c0_21] : memref<9x128x128xbf16, #tpu.memory_space<vmem>>, vector<1x128x128xbf16>
    %17 = vector.shape_cast %16 : vector<1x128x128xbf16> to vector<128x128xbf16>
    %cst_22 = arith.constant dense<0.000000e+00> : vector<64x128xf32>
    %18 = tpu.matmul %15, %17, %cst_22 {dimension_numbers = #tpu.dot_dimension_numbers<[1], [0], [0], [1], [0, 0, 1, 1], [], []>} : vector<64x128xbf16>, vector<128x128xbf16>, vector<64x128xf32> -> vector<64x128xf32>
    %19 = arith.addf %12, %18 : vector<64x128xf32>
    %c2_23 = arith.constant 2 : index
    %c0_24 = arith.constant 0 : index
    %c0_25 = arith.constant 0 : index
    %c0_26 = arith.constant 0 : index
    %c0_27 = arith.constant 0 : index
    %20 = vector.load %arg1[%c2_23, %c0_24, %c0_25, %c0_26, %c0_27] : memref<4x1x9x9x128xbf16, #tpu.memory_space<vmem>>, vector<1x1x8x8x128xbf16>
    %21 = vector.shape_cast %20 : vector<1x1x8x8x128xbf16> to vector<8x8x128xbf16>
    %22 = vector.shape_cast %21 : vector<8x8x128xbf16> to vector<64x128xbf16>
    %c3 = arith.constant 3 : index
    %c0_28 = arith.constant 0 : index
    %c0_29 = arith.constant 0 : index
    %23 = vector.load %arg2[%c3, %c0_28, %c0_29] : memref<9x128x128xbf16, #tpu.memory_space<vmem>>, vector<1x128x128xbf16>
    %24 = vector.shape_cast %23 : vector<1x128x128xbf16> to vector<128x128xbf16>
    %cst_30 = arith.constant dense<0.000000e+00> : vector<64x128xf32>
    %25 = tpu.matmul %22, %24, %cst_30 {dimension_numbers = #tpu.dot_dimension_numbers<[1], [0], [0], [1], [0, 0, 1, 1], [], []>} : vector<64x128xbf16>, vector<128x128xbf16>, vector<64x128xf32> -> vector<64x128xf32>
    %26 = arith.addf %19, %25 : vector<64x128xf32>
    %c3_31 = arith.constant 3 : index
    %c0_32 = arith.constant 0 : index
    %c0_33 = arith.constant 0 : index
    %c0_34 = arith.constant 0 : index
    %c0_35 = arith.constant 0 : index
    %27 = vector.load %arg1[%c3_31, %c0_32, %c0_33, %c0_34, %c0_35] : memref<4x1x9x9x128xbf16, #tpu.memory_space<vmem>>, vector<1x1x8x8x128xbf16>
    %28 = vector.shape_cast %27 : vector<1x1x8x8x128xbf16> to vector<8x8x128xbf16>
    %29 = vector.shape_cast %28 : vector<8x8x128xbf16> to vector<64x128xbf16>
    %c4 = arith.constant 4 : index
    %c0_36 = arith.constant 0 : index
    %c0_37 = arith.constant 0 : index
    %30 = vector.load %arg2[%c4, %c0_36, %c0_37] : memref<9x128x128xbf16, #tpu.memory_space<vmem>>, vector<1x128x128xbf16>
    %31 = vector.shape_cast %30 : vector<1x128x128xbf16> to vector<128x128xbf16>
    %cst_38 = arith.constant dense<0.000000e+00> : vector<64x128xf32>
    %32 = tpu.matmul %29, %31, %cst_38 {dimension_numbers = #tpu.dot_dimension_numbers<[1], [0], [0], [1], [0, 0, 1, 1], [], []>} : vector<64x128xbf16>, vector<128x128xbf16>, vector<64x128xf32> -> vector<64x128xf32>
    %33 = arith.addf %26, %32 : vector<64x128xf32>
    %c2_39 = arith.constant 2 : index
    %c0_40 = arith.constant 0 : index
    %c0_41 = arith.constant 0 : index
    %c1_42 = arith.constant 1 : index
    %c0_43 = arith.constant 0 : index
    %34 = vector.load %arg1[%c2_39, %c0_40, %c0_41, %c1_42, %c0_43] : memref<4x1x9x9x128xbf16, #tpu.memory_space<vmem>>, vector<1x1x8x8x128xbf16>
    %35 = vector.shape_cast %34 : vector<1x1x8x8x128xbf16> to vector<8x8x128xbf16>
    %36 = vector.shape_cast %35 : vector<8x8x128xbf16> to vector<64x128xbf16>
    %c5 = arith.constant 5 : index
    %c0_44 = arith.constant 0 : index
    %c0_45 = arith.constant 0 : index
    %37 = vector.load %arg2[%c5, %c0_44, %c0_45] : memref<9x128x128xbf16, #tpu.memory_space<vmem>>, vector<1x128x128xbf16>
    %38 = vector.shape_cast %37 : vector<1x128x128xbf16> to vector<128x128xbf16>
    %cst_46 = arith.constant dense<0.000000e+00> : vector<64x128xf32>
    %39 = tpu.matmul %36, %38, %cst_46 {dimension_numbers = #tpu.dot_dimension_numbers<[1], [0], [0], [1], [0, 0, 1, 1], [], []>} : vector<64x128xbf16>, vector<128x128xbf16>, vector<64x128xf32> -> vector<64x128xf32>
    %40 = arith.addf %33, %39 : vector<64x128xf32>
    %c0_47 = arith.constant 0 : index
    %c0_48 = arith.constant 0 : index
    %c1_49 = arith.constant 1 : index
    %c0_50 = arith.constant 0 : index
    %c0_51 = arith.constant 0 : index
    %41 = vector.load %arg1[%c0_47, %c0_48, %c1_49, %c0_50, %c0_51] : memref<4x1x9x9x128xbf16, #tpu.memory_space<vmem>>, vector<1x1x8x8x128xbf16>
    %42 = vector.shape_cast %41 : vector<1x1x8x8x128xbf16> to vector<8x8x128xbf16>
    %43 = vector.shape_cast %42 : vector<8x8x128xbf16> to vector<64x128xbf16>
    %c6 = arith.constant 6 : index
    %c0_52 = arith.constant 0 : index
    %c0_53 = arith.constant 0 : index
    %44 = vector.load %arg2[%c6, %c0_52, %c0_53] : memref<9x128x128xbf16, #tpu.memory_space<vmem>>, vector<1x128x128xbf16>
    %45 = vector.shape_cast %44 : vector<1x128x128xbf16> to vector<128x128xbf16>
    %cst_54 = arith.constant dense<0.000000e+00> : vector<64x128xf32>
    %46 = tpu.matmul %43, %45, %cst_54 {dimension_numbers = #tpu.dot_dimension_numbers<[1], [0], [0], [1], [0, 0, 1, 1], [], []>} : vector<64x128xbf16>, vector<128x128xbf16>, vector<64x128xf32> -> vector<64x128xf32>
    %47 = arith.addf %40, %46 : vector<64x128xf32>
    %c1_55 = arith.constant 1 : index
    %c0_56 = arith.constant 0 : index
    %c1_57 = arith.constant 1 : index
    %c0_58 = arith.constant 0 : index
    %c0_59 = arith.constant 0 : index
    %48 = vector.load %arg1[%c1_55, %c0_56, %c1_57, %c0_58, %c0_59] : memref<4x1x9x9x128xbf16, #tpu.memory_space<vmem>>, vector<1x1x8x8x128xbf16>
    %49 = vector.shape_cast %48 : vector<1x1x8x8x128xbf16> to vector<8x8x128xbf16>
    %50 = vector.shape_cast %49 : vector<8x8x128xbf16> to vector<64x128xbf16>
    %c7 = arith.constant 7 : index
    %c0_60 = arith.constant 0 : index
    %c0_61 = arith.constant 0 : index
    %51 = vector.load %arg2[%c7, %c0_60, %c0_61] : memref<9x128x128xbf16, #tpu.memory_space<vmem>>, vector<1x128x128xbf16>
    %52 = vector.shape_cast %51 : vector<1x128x128xbf16> to vector<128x128xbf16>
    %cst_62 = arith.constant dense<0.000000e+00> : vector<64x128xf32>
    %53 = tpu.matmul %50, %52, %cst_62 {dimension_numbers = #tpu.dot_dimension_numbers<[1], [0], [0], [1], [0, 0, 1, 1], [], []>} : vector<64x128xbf16>, vector<128x128xbf16>, vector<64x128xf32> -> vector<64x128xf32>
    %54 = arith.addf %47, %53 : vector<64x128xf32>
    %c0_63 = arith.constant 0 : index
    %c0_64 = arith.constant 0 : index
    %c1_65 = arith.constant 1 : index
    %c1_66 = arith.constant 1 : index
    %c0_67 = arith.constant 0 : index
    %55 = vector.load %arg1[%c0_63, %c0_64, %c1_65, %c1_66, %c0_67] : memref<4x1x9x9x128xbf16, #tpu.memory_space<vmem>>, vector<1x1x8x8x128xbf16>
    %56 = vector.shape_cast %55 : vector<1x1x8x8x128xbf16> to vector<8x8x128xbf16>
    %57 = vector.shape_cast %56 : vector<8x8x128xbf16> to vector<64x128xbf16>
    %c8 = arith.constant 8 : index
    %c0_68 = arith.constant 0 : index
    %c0_69 = arith.constant 0 : index
    %58 = vector.load %arg2[%c8, %c0_68, %c0_69] : memref<9x128x128xbf16, #tpu.memory_space<vmem>>, vector<1x128x128xbf16>
    %59 = vector.shape_cast %58 : vector<1x128x128xbf16> to vector<128x128xbf16>
    %cst_70 = arith.constant dense<0.000000e+00> : vector<64x128xf32>
    %60 = tpu.matmul %57, %59, %cst_70 {dimension_numbers = #tpu.dot_dimension_numbers<[1], [0], [0], [1], [0, 0, 1, 1], [], []>} : vector<64x128xbf16>, vector<128x128xbf16>, vector<64x128xf32> -> vector<64x128xf32>
    %61 = arith.addf %54, %60 : vector<64x128xf32>
    %62 = arith.truncf %61 : vector<64x128xf32> to vector<64x128xbf16>
    %c0_71 = arith.constant 0 : index
    %c0_72 = arith.constant 0 : index
    %63 = vector.load %arg3[%c0_71, %c0_72] : memref<64x128xbf16, #tpu.memory_space<vmem>>, vector<64x128xbf16>
    tpu.vector_store %arg3[%c0_71, %c0_72], %62 {strides = array<i32>} : memref<64x128xbf16, #tpu.memory_space<vmem>>, vector<64x128xbf16>,
    %cst_73 = arith.constant dense<0.000000e+00> : vector<128xf32>
    %64 = vector.multi_reduction <add>, %61, %cst_73 [0] : vector<64x128xf32> to vector<128xf32>
    %65 = vector.shape_cast %64 : vector<128xf32> to vector<1x128xf32>
    %66 = vector.shape_cast %65 : vector<1x128xf32> to vector<1x1x128xf32>
    %c0_74 = arith.constant 0 : index
    %c0_75 = arith.constant 0 : index
    %c0_76 = arith.constant 0 : index
    %67 = vector.load %arg4[%c0_74, %c0_75, %c0_76] : memref<1x1x128xf32, #tpu.memory_space<vmem>>, vector<1x1x128xf32>
    tpu.vector_store %arg4[%c0_74, %c0_75, %c0_76], %66 {strides = array<i32>} : memref<1x1x128xf32, #tpu.memory_space<vmem>>, vector<1x1x128xf32>,
    %68 = arith.mulf %61, %61 : vector<64x128xf32>
    %cst_77 = arith.constant dense<0.000000e+00> : vector<128xf32>
    %69 = vector.multi_reduction <add>, %68, %cst_77 [0] : vector<64x128xf32> to vector<128xf32>
    %70 = vector.shape_cast %69 : vector<128xf32> to vector<1x128xf32>
    %71 = vector.shape_cast %70 : vector<1x128xf32> to vector<1x1x128xf32>
    %c0_78 = arith.constant 0 : index
    %c0_79 = arith.constant 0 : index
    %c0_80 = arith.constant 0 : index
    %72 = vector.load %arg5[%c0_78, %c0_79, %c0_80] : memref<1x1x128xf32, #tpu.memory_space<vmem>>, vector<1x1x128xf32>
    tpu.vector_store %arg5[%c0_78, %c0_79, %c0_80], %71 {strides = array<i32>} : memref<1x1x128xf32, #tpu.memory_space<vmem>>, vector<1x1x128xf32>,
    return
  }
  func.func @transform_0(%arg0: i32) -> (i32, i32, i32, i32, i32) {
    %c0_i32 = arith.constant 0 : i32
    %c0_i32_0 = arith.constant 0 : i32
    %c0_i32_1 = arith.constant 0 : i32
    %c0_i32_2 = arith.constant 0 : i32
    %c0_i32_3 = arith.constant 0 : i32
    return %c0_i32, %arg0, %c0_i32_0, %c0_i32_1, %c0_i32_2 : i32, i32, i32, i32, i32
  }
  func.func @transform_1(%arg0: i32) -> (i32, i32, i32) {
    %c0_i32 = arith.constant 0 : i32
    %c0_i32_0 = arith.constant 0 : i32
    %c0_i32_1 = arith.constant 0 : i32
    %c0_i32_2 = arith.constant 0 : i32
    return %c0_i32, %c0_i32_0, %c0_i32_1 : i32, i32, i32
  }
  func.func @transform_2(%arg0: i32) -> (i32, i32) {
    %c0_i32 = arith.constant 0 : i32
    %c0_i32_0 = arith.constant 0 : i32
    return %arg0, %c0_i32 : i32, i32
  }
  func.func @transform_3(%arg0: i32) -> (i32, i32, i32) {
    %c0_i32 = arith.constant 0 : i32
    %c0_i32_0 = arith.constant 0 : i32
    %c0_i32_1 = arith.constant 0 : i32
    return %arg0, %c0_i32, %c0_i32_0 : i32, i32, i32
  }
  func.func @transform_4(%arg0: i32) -> (i32, i32, i32) {
    %c0_i32 = arith.constant 0 : i32
    %c0_i32_0 = arith.constant 0 : i32
    %c0_i32_1 = arith.constant 0 : i32
    return %arg0, %c0_i32, %c0_i32_0 : i32, i32, i32
  }
}

module attributes {stable_mosaic.version = 11 : i64} {
  func.func @_conv_stats_kernel(%arg0: i32, %arg1: memref<1x1x10x10x128xbf16, #tpu.memory_space<vmem>>, %arg2: memref<9x128x128xbf16, #tpu.memory_space<vmem>>, %arg3: memref<1x128xf32, #tpu.memory_space<vmem>>, %arg4: memref<1x128xf32, #tpu.memory_space<vmem>>, %arg5: memref<64x128xbf16, #tpu.memory_space<vmem>>, %arg6: memref<1x1x128xf32, #tpu.memory_space<vmem>>, %arg7: memref<1x1x128xf32, #tpu.memory_space<vmem>>) attributes {dimension_semantics = [#tpu.dimension_semantics<parallel>], iteration_bounds = array<i64: 2>, scalar_prefetch = 0 : i64, scratch_operands = 0 : i64, tpu.core_type = #tpu.core_type<tc>, window_params = [{transform_indices = @transform_0, window_bounds = array<i64: 1, 1, 10, 10, 128>}, {pipeline_mode = #tpu.pipeline_mode<synchronous>, transform_indices = @transform_1, window_bounds = array<i64: 9, 128, 128>}, {pipeline_mode = #tpu.pipeline_mode<synchronous>, transform_indices = @transform_2, window_bounds = array<i64: 1, 128>}, {pipeline_mode = #tpu.pipeline_mode<synchronous>, transform_indices = @transform_3, window_bounds = array<i64: 1, 128>}, {transform_indices = @transform_4, window_bounds = array<i64: 64, 128>}, {transform_indices = @transform_5, window_bounds = array<i64: 1, 1, 128>}, {transform_indices = @transform_6, window_bounds = array<i64: 1, 1, 128>}]} {
    %c0 = arith.constant 0 : index
    %c0_0 = arith.constant 0 : index
    %c0_1 = arith.constant 0 : index
    %c0_2 = arith.constant 0 : index
    %c0_3 = arith.constant 0 : index
    %0 = vector.load %arg1[%c0, %c0_0, %c0_1, %c0_2, %c0_3] : memref<1x1x10x10x128xbf16, #tpu.memory_space<vmem>>, vector<1x1x10x10x128xbf16>
    %1 = vector.shape_cast %0 : vector<1x1x10x10x128xbf16> to vector<10x10x128xbf16>
    %2 = arith.extf %1 : vector<10x10x128xbf16> to vector<10x10x128xf32>
    %c0_4 = arith.constant 0 : index
    %c0_5 = arith.constant 0 : index
    %3 = vector.load %arg3[%c0_4, %c0_5] : memref<1x128xf32, #tpu.memory_space<vmem>>, vector<1x128xf32>
    %4 = vector.shape_cast %3 : vector<1x128xf32> to vector<128xf32>
    %5 = vector.shape_cast %4 : vector<128xf32> to vector<1x1x128xf32>
    %6 = vector.broadcast %5 : vector<1x1x128xf32> to vector<10x10x128xf32>
    %7 = arith.mulf %2, %6 : vector<10x10x128xf32>
    %c0_6 = arith.constant 0 : index
    %c0_7 = arith.constant 0 : index
    %8 = vector.load %arg4[%c0_6, %c0_7] : memref<1x128xf32, #tpu.memory_space<vmem>>, vector<1x128xf32>
    %9 = vector.shape_cast %8 : vector<1x128xf32> to vector<128xf32>
    %10 = vector.shape_cast %9 : vector<128xf32> to vector<1x1x128xf32>
    %11 = vector.broadcast %10 : vector<1x1x128xf32> to vector<10x10x128xf32>
    %12 = arith.addf %7, %11 : vector<10x10x128xf32>
    %cst = arith.constant 0.000000e+00 : f32
    %13 = vector.broadcast %cst : f32 to vector<10x10x128xf32>
    %14 = arith.maximumf %12, %13 : vector<10x10x128xf32>
    %15 = tpu.iota {dimensions = array<i32: 0>} : vector<10x10x128xi32>
    %16 = tpu.iota {dimensions = array<i32: 1>} : vector<10x10x128xi32>
    %c1_i32 = arith.constant 1 : i32
    %17 = vector.broadcast %c1_i32 : i32 to vector<10x10x128xi32>
    %18 = arith.cmpi sge, %15, %17 : vector<10x10x128xi32>
    %c9_i32 = arith.constant 9 : i32
    %19 = vector.broadcast %c9_i32 : i32 to vector<10x10x128xi32>
    %20 = arith.cmpi slt, %15, %19 : vector<10x10x128xi32>
    %21 = arith.andi %18, %20 : vector<10x10x128xi1>
    %c1_i32_8 = arith.constant 1 : i32
    %22 = vector.broadcast %c1_i32_8 : i32 to vector<10x10x128xi32>
    %23 = arith.cmpi sge, %16, %22 : vector<10x10x128xi32>
    %24 = arith.andi %21, %23 : vector<10x10x128xi1>
    %c9_i32_9 = arith.constant 9 : i32
    %25 = vector.broadcast %c9_i32_9 : i32 to vector<10x10x128xi32>
    %26 = arith.cmpi slt, %16, %25 : vector<10x10x128xi32>
    %27 = arith.andi %24, %26 : vector<10x10x128xi1>
    %cst_10 = arith.constant 0.000000e+00 : f32
    %28 = vector.broadcast %cst_10 : f32 to vector<10x10x128xf32>
    %29 = arith.select %27, %14, %28 : vector<10x10x128xi1>, vector<10x10x128xf32>
    %30 = arith.truncf %29 : vector<10x10x128xf32> to vector<10x10x128xbf16>
    %31 = vector.extract_strided_slice %30 {offsets = [0, 0, 0], sizes = [8, 8, 128], strides = [1, 1, 1]} : vector<10x10x128xbf16> to vector<8x8x128xbf16>
    %32 = vector.shape_cast %31 : vector<8x8x128xbf16> to vector<64x128xbf16>
    %c0_11 = arith.constant 0 : index
    %c0_12 = arith.constant 0 : index
    %c0_13 = arith.constant 0 : index
    %33 = vector.load %arg2[%c0_11, %c0_12, %c0_13] : memref<9x128x128xbf16, #tpu.memory_space<vmem>>, vector<1x128x128xbf16>
    %34 = vector.shape_cast %33 : vector<1x128x128xbf16> to vector<128x128xbf16>
    %cst_14 = arith.constant dense<0.000000e+00> : vector<64x128xf32>
    %35 = tpu.matmul %32, %34, %cst_14 {dimension_numbers = #tpu.dot_dimension_numbers<[1], [0], [0], [1], [0, 0, 1, 1], [], []>} : vector<64x128xbf16>, vector<128x128xbf16>, vector<64x128xf32> -> vector<64x128xf32>
    %36 = vector.extract_strided_slice %30 {offsets = [0, 1, 0], sizes = [8, 8, 128], strides = [1, 1, 1]} : vector<10x10x128xbf16> to vector<8x8x128xbf16>
    %37 = vector.shape_cast %36 : vector<8x8x128xbf16> to vector<64x128xbf16>
    %c1 = arith.constant 1 : index
    %c0_15 = arith.constant 0 : index
    %c0_16 = arith.constant 0 : index
    %38 = vector.load %arg2[%c1, %c0_15, %c0_16] : memref<9x128x128xbf16, #tpu.memory_space<vmem>>, vector<1x128x128xbf16>
    %39 = vector.shape_cast %38 : vector<1x128x128xbf16> to vector<128x128xbf16>
    %cst_17 = arith.constant dense<0.000000e+00> : vector<64x128xf32>
    %40 = tpu.matmul %37, %39, %cst_17 {dimension_numbers = #tpu.dot_dimension_numbers<[1], [0], [0], [1], [0, 0, 1, 1], [], []>} : vector<64x128xbf16>, vector<128x128xbf16>, vector<64x128xf32> -> vector<64x128xf32>
    %41 = arith.addf %35, %40 : vector<64x128xf32>
    %42 = vector.extract_strided_slice %30 {offsets = [0, 2, 0], sizes = [8, 8, 128], strides = [1, 1, 1]} : vector<10x10x128xbf16> to vector<8x8x128xbf16>
    %43 = vector.shape_cast %42 : vector<8x8x128xbf16> to vector<64x128xbf16>
    %c2 = arith.constant 2 : index
    %c0_18 = arith.constant 0 : index
    %c0_19 = arith.constant 0 : index
    %44 = vector.load %arg2[%c2, %c0_18, %c0_19] : memref<9x128x128xbf16, #tpu.memory_space<vmem>>, vector<1x128x128xbf16>
    %45 = vector.shape_cast %44 : vector<1x128x128xbf16> to vector<128x128xbf16>
    %cst_20 = arith.constant dense<0.000000e+00> : vector<64x128xf32>
    %46 = tpu.matmul %43, %45, %cst_20 {dimension_numbers = #tpu.dot_dimension_numbers<[1], [0], [0], [1], [0, 0, 1, 1], [], []>} : vector<64x128xbf16>, vector<128x128xbf16>, vector<64x128xf32> -> vector<64x128xf32>
    %47 = arith.addf %41, %46 : vector<64x128xf32>
    %48 = vector.extract_strided_slice %30 {offsets = [1, 0, 0], sizes = [8, 8, 128], strides = [1, 1, 1]} : vector<10x10x128xbf16> to vector<8x8x128xbf16>
    %49 = vector.shape_cast %48 : vector<8x8x128xbf16> to vector<64x128xbf16>
    %c3 = arith.constant 3 : index
    %c0_21 = arith.constant 0 : index
    %c0_22 = arith.constant 0 : index
    %50 = vector.load %arg2[%c3, %c0_21, %c0_22] : memref<9x128x128xbf16, #tpu.memory_space<vmem>>, vector<1x128x128xbf16>
    %51 = vector.shape_cast %50 : vector<1x128x128xbf16> to vector<128x128xbf16>
    %cst_23 = arith.constant dense<0.000000e+00> : vector<64x128xf32>
    %52 = tpu.matmul %49, %51, %cst_23 {dimension_numbers = #tpu.dot_dimension_numbers<[1], [0], [0], [1], [0, 0, 1, 1], [], []>} : vector<64x128xbf16>, vector<128x128xbf16>, vector<64x128xf32> -> vector<64x128xf32>
    %53 = arith.addf %47, %52 : vector<64x128xf32>
    %54 = vector.extract_strided_slice %30 {offsets = [1, 1, 0], sizes = [8, 8, 128], strides = [1, 1, 1]} : vector<10x10x128xbf16> to vector<8x8x128xbf16>
    %55 = vector.shape_cast %54 : vector<8x8x128xbf16> to vector<64x128xbf16>
    %c4 = arith.constant 4 : index
    %c0_24 = arith.constant 0 : index
    %c0_25 = arith.constant 0 : index
    %56 = vector.load %arg2[%c4, %c0_24, %c0_25] : memref<9x128x128xbf16, #tpu.memory_space<vmem>>, vector<1x128x128xbf16>
    %57 = vector.shape_cast %56 : vector<1x128x128xbf16> to vector<128x128xbf16>
    %cst_26 = arith.constant dense<0.000000e+00> : vector<64x128xf32>
    %58 = tpu.matmul %55, %57, %cst_26 {dimension_numbers = #tpu.dot_dimension_numbers<[1], [0], [0], [1], [0, 0, 1, 1], [], []>} : vector<64x128xbf16>, vector<128x128xbf16>, vector<64x128xf32> -> vector<64x128xf32>
    %59 = arith.addf %53, %58 : vector<64x128xf32>
    %60 = vector.extract_strided_slice %30 {offsets = [1, 2, 0], sizes = [8, 8, 128], strides = [1, 1, 1]} : vector<10x10x128xbf16> to vector<8x8x128xbf16>
    %61 = vector.shape_cast %60 : vector<8x8x128xbf16> to vector<64x128xbf16>
    %c5 = arith.constant 5 : index
    %c0_27 = arith.constant 0 : index
    %c0_28 = arith.constant 0 : index
    %62 = vector.load %arg2[%c5, %c0_27, %c0_28] : memref<9x128x128xbf16, #tpu.memory_space<vmem>>, vector<1x128x128xbf16>
    %63 = vector.shape_cast %62 : vector<1x128x128xbf16> to vector<128x128xbf16>
    %cst_29 = arith.constant dense<0.000000e+00> : vector<64x128xf32>
    %64 = tpu.matmul %61, %63, %cst_29 {dimension_numbers = #tpu.dot_dimension_numbers<[1], [0], [0], [1], [0, 0, 1, 1], [], []>} : vector<64x128xbf16>, vector<128x128xbf16>, vector<64x128xf32> -> vector<64x128xf32>
    %65 = arith.addf %59, %64 : vector<64x128xf32>
    %66 = vector.extract_strided_slice %30 {offsets = [2, 0, 0], sizes = [8, 8, 128], strides = [1, 1, 1]} : vector<10x10x128xbf16> to vector<8x8x128xbf16>
    %67 = vector.shape_cast %66 : vector<8x8x128xbf16> to vector<64x128xbf16>
    %c6 = arith.constant 6 : index
    %c0_30 = arith.constant 0 : index
    %c0_31 = arith.constant 0 : index
    %68 = vector.load %arg2[%c6, %c0_30, %c0_31] : memref<9x128x128xbf16, #tpu.memory_space<vmem>>, vector<1x128x128xbf16>
    %69 = vector.shape_cast %68 : vector<1x128x128xbf16> to vector<128x128xbf16>
    %cst_32 = arith.constant dense<0.000000e+00> : vector<64x128xf32>
    %70 = tpu.matmul %67, %69, %cst_32 {dimension_numbers = #tpu.dot_dimension_numbers<[1], [0], [0], [1], [0, 0, 1, 1], [], []>} : vector<64x128xbf16>, vector<128x128xbf16>, vector<64x128xf32> -> vector<64x128xf32>
    %71 = arith.addf %65, %70 : vector<64x128xf32>
    %72 = vector.extract_strided_slice %30 {offsets = [2, 1, 0], sizes = [8, 8, 128], strides = [1, 1, 1]} : vector<10x10x128xbf16> to vector<8x8x128xbf16>
    %73 = vector.shape_cast %72 : vector<8x8x128xbf16> to vector<64x128xbf16>
    %c7 = arith.constant 7 : index
    %c0_33 = arith.constant 0 : index
    %c0_34 = arith.constant 0 : index
    %74 = vector.load %arg2[%c7, %c0_33, %c0_34] : memref<9x128x128xbf16, #tpu.memory_space<vmem>>, vector<1x128x128xbf16>
    %75 = vector.shape_cast %74 : vector<1x128x128xbf16> to vector<128x128xbf16>
    %cst_35 = arith.constant dense<0.000000e+00> : vector<64x128xf32>
    %76 = tpu.matmul %73, %75, %cst_35 {dimension_numbers = #tpu.dot_dimension_numbers<[1], [0], [0], [1], [0, 0, 1, 1], [], []>} : vector<64x128xbf16>, vector<128x128xbf16>, vector<64x128xf32> -> vector<64x128xf32>
    %77 = arith.addf %71, %76 : vector<64x128xf32>
    %78 = vector.extract_strided_slice %30 {offsets = [2, 2, 0], sizes = [8, 8, 128], strides = [1, 1, 1]} : vector<10x10x128xbf16> to vector<8x8x128xbf16>
    %79 = vector.shape_cast %78 : vector<8x8x128xbf16> to vector<64x128xbf16>
    %c8 = arith.constant 8 : index
    %c0_36 = arith.constant 0 : index
    %c0_37 = arith.constant 0 : index
    %80 = vector.load %arg2[%c8, %c0_36, %c0_37] : memref<9x128x128xbf16, #tpu.memory_space<vmem>>, vector<1x128x128xbf16>
    %81 = vector.shape_cast %80 : vector<1x128x128xbf16> to vector<128x128xbf16>
    %cst_38 = arith.constant dense<0.000000e+00> : vector<64x128xf32>
    %82 = tpu.matmul %79, %81, %cst_38 {dimension_numbers = #tpu.dot_dimension_numbers<[1], [0], [0], [1], [0, 0, 1, 1], [], []>} : vector<64x128xbf16>, vector<128x128xbf16>, vector<64x128xf32> -> vector<64x128xf32>
    %83 = arith.addf %77, %82 : vector<64x128xf32>
    %84 = arith.truncf %83 : vector<64x128xf32> to vector<64x128xbf16>
    %c0_39 = arith.constant 0 : index
    %c0_40 = arith.constant 0 : index
    %85 = vector.load %arg5[%c0_39, %c0_40] : memref<64x128xbf16, #tpu.memory_space<vmem>>, vector<64x128xbf16>
    tpu.vector_store %arg5[%c0_39, %c0_40], %84 {strides = array<i32>} : memref<64x128xbf16, #tpu.memory_space<vmem>>, vector<64x128xbf16>,
    %cst_41 = arith.constant dense<0.000000e+00> : vector<128xf32>
    %86 = vector.multi_reduction <add>, %83, %cst_41 [0] : vector<64x128xf32> to vector<128xf32>
    %87 = vector.shape_cast %86 : vector<128xf32> to vector<1x128xf32>
    %88 = vector.shape_cast %87 : vector<1x128xf32> to vector<1x1x128xf32>
    %c0_42 = arith.constant 0 : index
    %c0_43 = arith.constant 0 : index
    %c0_44 = arith.constant 0 : index
    %89 = vector.load %arg6[%c0_42, %c0_43, %c0_44] : memref<1x1x128xf32, #tpu.memory_space<vmem>>, vector<1x1x128xf32>
    tpu.vector_store %arg6[%c0_42, %c0_43, %c0_44], %88 {strides = array<i32>} : memref<1x1x128xf32, #tpu.memory_space<vmem>>, vector<1x1x128xf32>,
    %90 = arith.mulf %83, %83 : vector<64x128xf32>
    %cst_45 = arith.constant dense<0.000000e+00> : vector<128xf32>
    %91 = vector.multi_reduction <add>, %90, %cst_45 [0] : vector<64x128xf32> to vector<128xf32>
    %92 = vector.shape_cast %91 : vector<128xf32> to vector<1x128xf32>
    %93 = vector.shape_cast %92 : vector<1x128xf32> to vector<1x1x128xf32>
    %c0_46 = arith.constant 0 : index
    %c0_47 = arith.constant 0 : index
    %c0_48 = arith.constant 0 : index
    %94 = vector.load %arg7[%c0_46, %c0_47, %c0_48] : memref<1x1x128xf32, #tpu.memory_space<vmem>>, vector<1x1x128xf32>
    tpu.vector_store %arg7[%c0_46, %c0_47, %c0_48], %93 {strides = array<i32>} : memref<1x1x128xf32, #tpu.memory_space<vmem>>, vector<1x1x128xf32>,
    return
  }
  func.func @transform_0(%arg0: i32) -> (i32, i32, i32, i32, i32) {
    %c0_i32 = arith.constant 0 : i32
    %c0_i32_0 = arith.constant 0 : i32
    %c0_i32_1 = arith.constant 0 : i32
    %c0_i32_2 = arith.constant 0 : i32
    %c0_i32_3 = arith.constant 0 : i32
    return %c0_i32, %arg0, %c0_i32_0, %c0_i32_1, %c0_i32_2 : i32, i32, i32, i32, i32
  }
  func.func @transform_1(%arg0: i32) -> (i32, i32, i32) {
    %c0_i32 = arith.constant 0 : i32
    %c0_i32_0 = arith.constant 0 : i32
    %c0_i32_1 = arith.constant 0 : i32
    %c0_i32_2 = arith.constant 0 : i32
    return %c0_i32, %c0_i32_0, %c0_i32_1 : i32, i32, i32
  }
  func.func @transform_2(%arg0: i32) -> (i32, i32) {
    %c0_i32 = arith.constant 0 : i32
    %c0_i32_0 = arith.constant 0 : i32
    %c0_i32_1 = arith.constant 0 : i32
    return %c0_i32, %c0_i32_0 : i32, i32
  }
  func.func @transform_3(%arg0: i32) -> (i32, i32) {
    %c0_i32 = arith.constant 0 : i32
    %c0_i32_0 = arith.constant 0 : i32
    %c0_i32_1 = arith.constant 0 : i32
    return %c0_i32, %c0_i32_0 : i32, i32
  }
  func.func @transform_4(%arg0: i32) -> (i32, i32) {
    %c0_i32 = arith.constant 0 : i32
    %c0_i32_0 = arith.constant 0 : i32
    return %arg0, %c0_i32 : i32, i32
  }
  func.func @transform_5(%arg0: i32) -> (i32, i32, i32) {
    %c0_i32 = arith.constant 0 : i32
    %c0_i32_0 = arith.constant 0 : i32
    %c0_i32_1 = arith.constant 0 : i32
    return %arg0, %c0_i32, %c0_i32_0 : i32, i32, i32
  }
  func.func @transform_6(%arg0: i32) -> (i32, i32, i32) {
    %c0_i32 = arith.constant 0 : i32
    %c0_i32_0 = arith.constant 0 : i32
    %c0_i32_1 = arith.constant 0 : i32
    return %arg0, %c0_i32, %c0_i32_0 : i32, i32, i32
  }
}

module attributes {stable_mosaic.version = 11 : i64} {
  func.func @_residual_epilogue_kernel(%arg0: i32, %arg1: memref<128x128xbf16, #tpu.memory_space<vmem>>, %arg2: memref<128x128xbf16, #tpu.memory_space<vmem>>, %arg3: memref<1x128xf32, #tpu.memory_space<vmem>>, %arg4: memref<1x128xf32, #tpu.memory_space<vmem>>, %arg5: memref<1x128xf32, #tpu.memory_space<vmem>>, %arg6: memref<1x128xf32, #tpu.memory_space<vmem>>, %arg7: memref<128x128xf32, #tpu.memory_space<vmem>>) attributes {dimension_semantics = [#tpu.dimension_semantics<parallel>], iteration_bounds = array<i64: 1>, scalar_prefetch = 0 : i64, scratch_operands = 0 : i64, tpu.core_type = #tpu.core_type<tc>, window_params = [{transform_indices = @transform_0, window_bounds = array<i64: 128, 128>}, {transform_indices = @transform_1, window_bounds = array<i64: 128, 128>}, {pipeline_mode = #tpu.pipeline_mode<synchronous>, transform_indices = @transform_2, window_bounds = array<i64: 1, 128>}, {pipeline_mode = #tpu.pipeline_mode<synchronous>, transform_indices = @transform_3, window_bounds = array<i64: 1, 128>}, {pipeline_mode = #tpu.pipeline_mode<synchronous>, transform_indices = @transform_4, window_bounds = array<i64: 1, 128>}, {pipeline_mode = #tpu.pipeline_mode<synchronous>, transform_indices = @transform_5, window_bounds = array<i64: 1, 128>}, {transform_indices = @transform_6, window_bounds = array<i64: 128, 128>}]} {
    %c0 = arith.constant 0 : index
    %c0_0 = arith.constant 0 : index
    %0 = vector.load %arg1[%c0, %c0_0] : memref<128x128xbf16, #tpu.memory_space<vmem>>, vector<128x128xbf16>
    %1 = arith.extf %0 : vector<128x128xbf16> to vector<128x128xf32>
    %c0_1 = arith.constant 0 : index
    %c0_2 = arith.constant 0 : index
    %2 = vector.load %arg2[%c0_1, %c0_2] : memref<128x128xbf16, #tpu.memory_space<vmem>>, vector<128x128xbf16>
    %3 = arith.extf %2 : vector<128x128xbf16> to vector<128x128xf32>
    %c0_3 = arith.constant 0 : index
    %c0_4 = arith.constant 0 : index
    %4 = vector.load %arg3[%c0_3, %c0_4] : memref<1x128xf32, #tpu.memory_space<vmem>>, vector<1x128xf32>
    %5 = vector.broadcast %4 : vector<1x128xf32> to vector<128x128xf32>
    %6 = arith.mulf %1, %5 : vector<128x128xf32>
    %c0_5 = arith.constant 0 : index
    %c0_6 = arith.constant 0 : index
    %7 = vector.load %arg4[%c0_5, %c0_6] : memref<1x128xf32, #tpu.memory_space<vmem>>, vector<1x128xf32>
    %8 = vector.broadcast %7 : vector<1x128xf32> to vector<128x128xf32>
    %9 = arith.addf %6, %8 : vector<128x128xf32>
    %c0_7 = arith.constant 0 : index
    %c0_8 = arith.constant 0 : index
    %10 = vector.load %arg5[%c0_7, %c0_8] : memref<1x128xf32, #tpu.memory_space<vmem>>, vector<1x128xf32>
    %11 = vector.broadcast %10 : vector<1x128xf32> to vector<128x128xf32>
    %12 = arith.mulf %3, %11 : vector<128x128xf32>
    %13 = arith.addf %9, %12 : vector<128x128xf32>
    %c0_9 = arith.constant 0 : index
    %c0_10 = arith.constant 0 : index
    %14 = vector.load %arg6[%c0_9, %c0_10] : memref<1x128xf32, #tpu.memory_space<vmem>>, vector<1x128xf32>
    %15 = vector.broadcast %14 : vector<1x128xf32> to vector<128x128xf32>
    %16 = arith.addf %13, %15 : vector<128x128xf32>
    %cst = arith.constant 0.000000e+00 : f32
    %17 = vector.broadcast %cst : f32 to vector<128x128xf32>
    %18 = arith.maximumf %16, %17 : vector<128x128xf32>
    %c0_11 = arith.constant 0 : index
    %c0_12 = arith.constant 0 : index
    %19 = vector.load %arg7[%c0_11, %c0_12] : memref<128x128xf32, #tpu.memory_space<vmem>>, vector<128x128xf32>
    tpu.vector_store %arg7[%c0_11, %c0_12], %18 {strides = array<i32>} : memref<128x128xf32, #tpu.memory_space<vmem>>, vector<128x128xf32>,
    return
  }
  func.func @transform_0(%arg0: i32) -> (i32, i32) {
    %c0_i32 = arith.constant 0 : i32
    %c0_i32_0 = arith.constant 0 : i32
    return %arg0, %c0_i32 : i32, i32
  }
  func.func @transform_1(%arg0: i32) -> (i32, i32) {
    %c0_i32 = arith.constant 0 : i32
    %c0_i32_0 = arith.constant 0 : i32
    return %arg0, %c0_i32 : i32, i32
  }
  func.func @transform_2(%arg0: i32) -> (i32, i32) {
    %c0_i32 = arith.constant 0 : i32
    %c0_i32_0 = arith.constant 0 : i32
    %c0_i32_1 = arith.constant 0 : i32
    return %c0_i32, %c0_i32_0 : i32, i32
  }
  func.func @transform_3(%arg0: i32) -> (i32, i32) {
    %c0_i32 = arith.constant 0 : i32
    %c0_i32_0 = arith.constant 0 : i32
    %c0_i32_1 = arith.constant 0 : i32
    return %c0_i32, %c0_i32_0 : i32, i32
  }
  func.func @transform_4(%arg0: i32) -> (i32, i32) {
    %c0_i32 = arith.constant 0 : i32
    %c0_i32_0 = arith.constant 0 : i32
    %c0_i32_1 = arith.constant 0 : i32
    return %c0_i32, %c0_i32_0 : i32, i32
  }
  func.func @transform_5(%arg0: i32) -> (i32, i32) {
    %c0_i32 = arith.constant 0 : i32
    %c0_i32_0 = arith.constant 0 : i32
    %c0_i32_1 = arith.constant 0 : i32
    return %c0_i32, %c0_i32_0 : i32, i32
  }
  func.func @transform_6(%arg0: i32) -> (i32, i32) {
    %c0_i32 = arith.constant 0 : i32
    %c0_i32_0 = arith.constant 0 : i32
    return %arg0, %c0_i32 : i32, i32
  }
}

</mosaic_0001>

<bundles_post_ra>
// kernel: residual_block_forward.7
= control target key start
LH: loop header
LB: loop body
LE: loop exit
PB: predicated region body
PF: predicated region fallthrough
CT: control target
= control target key end

     0   :  { %s516_s0 = inlined_call_operand.vmem [shape: bf16[128,128], index: 0, kind: input, shape index: {}]   ;;  %s517_s1 = inlined_call_operand.vmem [shape: bf16[128,128], index: 1, kind: input, shape index: {}]   ;;  %s518_s2 = inlined_call_operand.vmem [shape: f32[1,128], index: 2, kind: input, shape index: {}]   ;;  %s519_s3 = inlined_call_operand.vmem [shape: f32[1,128], index: 3, kind: input, shape index: {}]   ;;  %s520_s4 = inlined_call_operand.vmem [shape: f32[1,128], index: 4, kind: input, shape index: {}]   ;;  %s521_s5 = inlined_call_operand.vmem [shape: f32[1,128], index: 5, kind: input, shape index: {}]   ;;  %s522_s6 = inlined_call_operand.vmem [shape: f32[128,128], index: 6, kind: output, shape index: {}]  }
   0x1   :  { %v220_v0 = vld [vmem:[%s516_s0] sm:$0xff]   ;;  %v283_v11 = vld [vmem:[%s516_s0 + $0x8] sm:$0xff]   ;;  %v284_v17 = vld [vmem:[%s516_s0 + $0x10] sm:$0xff]  }
   0x2   :  { %v252_v1 = vld [vmem:[%s517_s1] sm:$0xff]   ;;  %v221_v2 = vunpack.c.l.bf16 %v220_v0  ;;  %v222_v6 = vunpack.c.h.bf16 %v220_v0  ;;  %v290_v12 = vld [vmem:[%s517_s1 + $0x8] sm:$0xff]   ;;  %v225_v15 = vunpack.c.l.bf16 %v283_v11  ;;  %v291_v18 = vld [vmem:[%s517_s1 + $0x10] sm:$0xff]   ;;  %v226_v22 = vunpack.c.h.bf16 %v283_v11 }
   0x3   :  { %v253_v3 = vunpack.c.l.bf16 %v252_v1  ;;  %v345_v4 = vld [vmem:[%s518_s2] ss:$0 sm:$0xff]  ;;  %v254_v7 = vunpack.c.h.bf16 %v252_v1  ;;  %v257_v16 = vunpack.c.l.bf16 %v290_v12  ;;  %v258_v23 = vunpack.c.h.bf16 %v290_v12  ;;  %v285_v32 = vld [vmem:[%s516_s0 + $0x18] sm:$0xff]  }
   0x4   :  { %v350_v5 = vld [vmem:[%s519_s3] ss:$0 sm:$0xff]  ;;  %v91_v9 = vmul.f32 %v345_v4, %v221_v2  ;;  %v92_v10 = vmul.f32 %v345_v4, %v222_v6  ;;  %v93_v24 = vmul.f32 %v345_v4, %v225_v15  ;;  %v229_v26 = vunpack.c.l.bf16 %v284_v17  ;;  %v292_v41 = vld [vmem:[%s517_s1 + $0x18] sm:$0xff]   ;;  %v287_v6 = vld [vmem:[%s516_s0 + $0x28] sm:$0xff]  }
   0x5   :  { %v355_v8 = vld [vmem:[%s520_s4] ss:$0 sm:$0xff]  ;;  %v261_v27 = vunpack.c.l.bf16 %v291_v18  ;;  %v94_v30 = vmul.f32 %v345_v4, %v226_v22  ;;  %v230_v36 = vunpack.c.h.bf16 %v284_v17  ;;  %v262_v40 = vunpack.c.h.bf16 %v291_v18 }
   0x6   :  { %v131_v13 = vmul.f32 %v355_v8, %v253_v3  ;;  %v132_v14 = vmul.f32 %v355_v8, %v254_v7  ;;  %v111_v19 = vadd.f32 %v350_v5, %v91_v9  ;;  %v377_v20 = vld [vmem:[%s521_s5] ss:$0 sm:$0xff]  ;;  %v112_v21 = vadd.f32 %v350_v5, %v92_v10 }
   0x7   :  { %v133_v25 = vmul.f32 %v355_v8, %v257_v16  ;;  %v134_v31 = vmul.f32 %v355_v8, %v258_v23  ;;  %v113_v33 = vadd.f32 %v350_v5, %v93_v24  ;;  %v95_v34 = vmul.f32 %v345_v4, %v229_v26  ;;  %v286_v58 = vld [vmem:[%s516_s0 + $0x20] sm:$0xff]   ;;  %v294_v16 = vld [vmem:[%s517_s1 + $0x28] sm:$0xff]  }
   0x8   :  { %v147_v28 = vadd.f32 %v131_v13, %v111_v19  ;;  %v148_v29 = vadd.f32 %v132_v14, %v112_v21  ;;  %v135_v35 = vmul.f32 %v355_v8, %v261_v27  ;;  %v114_v39 = vadd.f32 %v350_v5, %v94_v30  ;;  %v293_v59 = vld [vmem:[%s517_s1 + $0x20] sm:$0xff]   ;;  %v288_v30 = vld [vmem:[%s516_s0 + $0x30] sm:$0xff]  }
   0x9   :  { %v149_v42 = vadd.f32 %v133_v25, %v113_v33  ;;  %v115_v43 = vadd.f32 %v350_v5, %v95_v34  ;;  %v96_v44 = vmul.f32 %v345_v4, %v230_v36  ;;  %v233_v45 = vunpack.c.l.bf16 %v285_v32 }
   0xa   :  { %v167_v37 = vadd.f32 %v377_v20, %v147_v28  ;;  %v168_v38 = vadd.f32 %v377_v20, %v148_v29  ;;  %v150_v48 = vadd.f32 %v134_v31, %v114_v39  ;;  %v136_v49 = vmul.f32 %v355_v8, %v262_v40 }
   0xb   :  { %v169_v50 = vadd.f32 %v377_v20, %v149_v42  ;;  %v151_v51 = vadd.f32 %v135_v35, %v115_v43  ;;  %v116_v52 = vadd.f32 %v350_v5, %v96_v44  ;;  %v265_v53 = vunpack.c.l.bf16 %v292_v41  ;;  %v295_v35 = vld [vmem:[%s517_s1 + $0x30] sm:$0xff]  }
   0xc   :  { %v183_v46 = vmax.f32 %v167_v37, 0.0  ;;  %v184_v47 = vmax.f32 %v168_v38, 0.0  ;;  %v170_v54 = vadd.f32 %v377_v20, %v150_v48  ;;  %v97_v55 = vmul.f32 %v345_v4, %v233_v45 }
   0xd   :  { %v234_v56 = vunpack.c.h.bf16 %v285_v32  ;;  %v266_v57 = vunpack.c.h.bf16 %v292_v41  ;;  %v185_v60 = vmax.f32 %v169_v50, 0.0  ;;  %v171_v61 = vadd.f32 %v377_v20, %v151_v51 }
   0xe   :  { %199 = vst [vmem:[%s522_s6] sm:$0xff] %v183_v46  ;;  %v152_v62 = vadd.f32 %v136_v49, %v116_v52  ;;  %v137_v63 = vmul.f32 %v355_v8, %v265_v53  ;;  %v186_v0 = vmax.f32 %v170_v54, 0.0  ;;  %v117_v1 = vadd.f32 %v350_v5, %v97_v55  ;;  %v289_v52 = vld [vmem:[%s516_s0 + $0x38] sm:$0xff]  }
   0xf   :  { %200 = vst [vmem:[%s522_s6 + $0x8] sm:$0xff] %v184_v47  ;;  %v98_v2 = vmul.f32 %v345_v4, %v234_v56  ;;  %v138_v3 = vmul.f32 %v355_v8, %v266_v57  ;;  %v187_v7 = vmax.f32 %v171_v61, 0.0  ;;  %v237_v10 = vunpack.c.l.bf16 %v286_v58  ;;  %v296_v53 = vld [vmem:[%s517_s1 + $0x38] sm:$0xff]  }
  0x10   :  { %201 = vst [vmem:[%s522_s6 + $0x10] sm:$0xff] %v185_v60  ;;  %v172_v9 = vadd.f32 %v377_v20, %v152_v62  ;;  %v269_v11 = vunpack.c.l.bf16 %v293_v59  ;;  %v153_v12 = vadd.f32 %v137_v63, %v117_v1  ;;  %v238_v14 = vunpack.c.h.bf16 %v286_v58 }
  0x11   :  { %202 = vst [vmem:[%s522_s6 + $0x18] sm:$0xff] %v186_v0  ;;  %v118_v13 = vadd.f32 %v350_v5, %v98_v2  ;;  %v270_v15 = vunpack.c.h.bf16 %v293_v59  ;;  %v99_v18 = vmul.f32 %v345_v4, %v237_v10  ;;  %v241_v21 = vunpack.c.l.bf16 %v287_v6 }
  0x12   :  { %203 = vst [vmem:[%s522_s6 + $0x20] sm:$0xff] %v187_v7  ;;  %v188_v17 = vmax.f32 %v172_v9, 0.0  ;;  %v139_v19 = vmul.f32 %v355_v8, %v269_v11  ;;  %v173_v22 = vadd.f32 %v377_v20, %v153_v12  ;;  %v100_v24 = vmul.f32 %v345_v4, %v238_v14 }
  0x13   :  { %v154_v23 = vadd.f32 %v138_v3, %v118_v13  ;;  %v140_v25 = vmul.f32 %v355_v8, %v270_v15  ;;  %v119_v26 = vadd.f32 %v350_v5, %v99_v18  ;;  %v273_v27 = vunpack.c.l.bf16 %v294_v16 }
  0x14   :  { %204 = vst [vmem:[%s522_s6 + $0x28] sm:$0xff] %v188_v17  ;;  %v101_v28 = vmul.f32 %v345_v4, %v241_v21  ;;  %v242_v29 = vunpack.c.h.bf16 %v287_v6  ;;  %v189_v31 = vmax.f32 %v173_v22, 0.0  ;;  %v120_v33 = vadd.f32 %v350_v5, %v100_v24 }
  0x15   :  { %v174_v32 = vadd.f32 %v377_v20, %v154_v23  ;;  %v274_v34 = vunpack.c.h.bf16 %v294_v16  ;;  %v155_v36 = vadd.f32 %v139_v19, %v119_v26  ;;  %v141_v38 = vmul.f32 %v355_v8, %v273_v27 }
  0x16   :  { %v121_v37 = vadd.f32 %v350_v5, %v101_v28  ;;  %v102_v39 = vmul.f32 %v345_v4, %v242_v29  ;;  %205 = vst [vmem:[%s522_s6 + $0x30] sm:$0xff] %v189_v31  ;;  %v156_v41 = vadd.f32 %v140_v25, %v120_v33  ;;  %v245_v43 = vunpack.c.l.bf16 %v288_v30 }
  0x17   :  { %v190_v40 = vmax.f32 %v174_v32, 0.0  ;;  %v142_v42 = vmul.f32 %v355_v8, %v274_v34  ;;  %v175_v44 = vadd.f32 %v377_v20, %v155_v36  ;;  %v277_v47 = vunpack.c.l.bf16 %v295_v35 }
  0x18   :  { %v157_v45 = vadd.f32 %v141_v38, %v121_v37  ;;  %v122_v46 = vadd.f32 %v350_v5, %v102_v39  ;;  %v176_v48 = vadd.f32 %v377_v20, %v156_v41  ;;  %v103_v49 = vmul.f32 %v345_v4, %v245_v43 }
  0x19   :  { %206 = vst [vmem:[%s522_s6 + $0x38] sm:$0xff] %v190_v40  ;;  %v246_v50 = vunpack.c.h.bf16 %v288_v30  ;;  %v278_v51 = vunpack.c.h.bf16 %v295_v35  ;;  %v191_v54 = vmax.f32 %v175_v44, 0.0  ;;  %v143_v57 = vmul.f32 %v355_v8, %v277_v47 }
  0x1a   :  { %v177_v55 = vadd.f32 %v377_v20, %v157_v45  ;;  %v158_v56 = vadd.f32 %v142_v42, %v122_v46  ;;  %v192_v58 = vmax.f32 %v176_v48, 0.0  ;;  %v123_v59 = vadd.f32 %v350_v5, %v103_v49 }
  0x1b   :  { %v104_v60 = vmul.f32 %v345_v4, %v246_v50  ;;  %v144_v61 = vmul.f32 %v355_v8, %v278_v51  ;;  %207 = vst [vmem:[%s522_s6 + $0x40] sm:$0xff] %v191_v54  ;;  %v249_v0 = vunpack.c.l.bf16 %v289_v52  ;;  %v281_v1 = vunpack.c.l.bf16 %v296_v53 }
  0x1c   :  { %v193_v62 = vmax.f32 %v177_v55, 0.0  ;;  %v178_v63 = vadd.f32 %v377_v20, %v158_v56  ;;  %208 = vst [vmem:[%s522_s6 + $0x48] sm:$0xff] %v192_v58  ;;  %v159_v2 = vadd.f32 %v143_v57, %v123_v59  ;;  %v250_v6 = vunpack.c.h.bf16 %v289_v52 }
  0x1d   :  { %v124_v3 = vadd.f32 %v350_v5, %v104_v60  ;;  %v282_v7 = vunpack.c.h.bf16 %v296_v53  ;;  %v105_v10 = vmul.f32 %v345_v4, %v249_v0  ;;  %v145_v11 = vmul.f32 %v355_v8, %v281_v1 }
  0x1e   :  { %209 = vst [vmem:[%s522_s6 + $0x50] sm:$0xff] %v193_v62  ;;  %v194_v9 = vmax.f32 %v178_v63, 0.0  ;;  %v179_v12 = vadd.f32 %v377_v20, %v159_v2  ;;  %v106_v14 = vmul.f32 %v345_v4, %v250_v6 }
  0x1f   :  { %v160_v13 = vadd.f32 %v144_v61, %v124_v3  ;;  %v146_v15 = vmul.f32 %v355_v8, %v282_v7  ;;  %v125_v16 = vadd.f32 %v350_v5, %v105_v10 }
  0x20   :  { %210 = vst [vmem:[%s522_s6 + $0x58] sm:$0xff] %v194_v9  ;;  %v195_v17 = vmax.f32 %v179_v12, 0.0  ;;  %v126_v19 = vadd.f32 %v350_v5, %v106_v14 }
  0x21   :  { %v180_v18 = vadd.f32 %v377_v20, %v160_v13  ;;  %v161_v21 = vadd.f32 %v145_v11, %v125_v16 }
  0x22   :  { %211 = vst [vmem:[%s522_s6 + $0x60] sm:$0xff] %v195_v17  ;;  %v162_v4 = vadd.f32 %v146_v15, %v126_v19 }
  0x23   :  { %v196_v22 = vmax.f32 %v180_v18, 0.0  ;;  %v181_v8 = vadd.f32 %v377_v20, %v161_v21 }
  0x24   :  { %v182_v23 = vadd.f32 %v377_v20, %v162_v4 }
  0x25   :  { %212 = vst [vmem:[%s522_s6 + $0x68] sm:$0xff] %v196_v22  ;;  %v197_v24 = vmax.f32 %v181_v8, 0.0 }
  0x26   :  { %v198_v25 = vmax.f32 %v182_v23, 0.0 }
  0x27   :  { %213 = vst [vmem:[%s522_s6 + $0x70] sm:$0xff] %v197_v24 }
  0x28   :  { %214 = vst [vmem:[%s522_s6 + $0x78] sm:$0xff] %v198_v25 }

// kernel: residual_block_forward.4
= control target key start
LH: loop header
LB: loop body
LE: loop exit
PB: predicated region body
PF: predicated region fallthrough
CT: control target
= control target key end

     0   :  { %s3046_s15 = smov 0   ;;  %s3048_s16 = smov 0   ;;  %s3594_s0 = inlined_call_operand.vmem [shape: bf16[4,2,9,9,128], index: 0, kind: input, shape index: {}]   ;;  %s3595_s1 = inlined_call_operand.vmem [shape: bf16[9,128,128], index: 1, kind: input, shape index: {}]   ;;  %s3596_s2 = inlined_call_operand.vmem [shape: bf16[128,128], index: 2, kind: output, shape index: {0}]   ;;  %s3597_s3 = inlined_call_operand.vmem [shape: f32[2,1,128], index: 3, kind: output, shape index: {1}]   ;;  %s3598_s4 = inlined_call_operand.vmem [shape: f32[2,1,128], index: 4, kind: output, shape index: {2}]  }
   0x1   :  { %s3050_s17 = smov 0  }
   0x2 LB: > { %s3062_s18 = sadd.s32 4294967295, %s3019_s17   ;;  %s3065_s19 = sadd.s32 1, %s3019_s17   ;;  %s3019_s17 = sphi %s3050_s17, %s3603_s17   ;;  %s3015_s16 = sphi %s3048_s16, %s3602_s16   ;;  %s3011_s15 = sphi %s3046_s15, %s3601_s15  }
   0x3   : > { %s19_s20 = ssub.s32 %s3019_s17, %s3065_s19  ;;  %s22_s21 = sadd.s32 1, %s3015_s16 }
   0x4   : > { %p20_p0 = scmp.eq.s32.totalorder %s19_s20, 0  ;;  %p29_p1 = scmp.ne.s32.totalorder %s3015_s16, %s3011_s15 }
   0x5   : > { %p30_p2 = scmp.eq.s32.totalorder %s3019_s17, 0  ;;  %p2244_p4 = scmp.ge.s32.totalorder %s3019_s17, 2 }
   0x6   : > { %s3074_s22 = scalar_select %p20_p0, %s3015_s16, %s22_s21  }
   0x7   : > { %p31_p3 = por %p30_p2, %p29_p1  ;;  %157 = sbr.rel (%p2244_p4) target bundleno = 53 (0x35), region = 20 }
   0xc   : > { %160 = sbr.rel (!%p31_p3) target bundleno = 53 (0x35), region = 24  ;;  %s162_s23 = sand.u32 (%p31_p3), 1, %s3015_s16  }
   0xd   : > { %s2971_s24 = smul.u32 (%p31_p3), 72, %s3019_s17 }
   0xe   : > { %s2970_s25 = smul.u32 (%p31_p3), 288, %s162_s23 }
   0xf   : > { %s3082_s28 = scalar_lea.vmem (%p31_p3), %s3594_s0, %s2971_s24 }
  0x10   : > { %v184_v0 = vld [vmem:[%s3082_s28] sm:$0xff] (%p31_p3)   ;;  %v188_v1 = vld [vmem:[%s3082_s28 + $0x8] sm:$0xff] (%p31_p3)   ;;  %v192_v2 = vld [vmem:[%s3082_s28 + $0x10] sm:$0xff] (%p31_p3)   ;;  %s3087_s29 = scalar_lea.vmem (%p31_p3), [#allocation2], %s2970_s25 }
  0x11   : > { %185 = vst [vmem:[%s3087_s29] sm:$0xff] %v184_v0   ;;  %v196_v3 = vld [vmem:[%s3082_s28 + $0x18] sm:$0xff]   ;;  %v200_v4 = vld [vmem:[%s3082_s28 + $0x20] sm:$0xff]   ;;  %v204_v5 = vld [vmem:[%s3082_s28 + $0x28] sm:$0xff]  }
  0x12   : > { %189 = vst [vmem:[%s3087_s29 + $0x8] sm:$0xff] %v188_v1   ;;  %v208_v6 = vld [vmem:[%s3082_s28 + $0x30] sm:$0xff]   ;;  %v212_v7 = vld [vmem:[%s3082_s28 + $0x38] sm:$0xff]   ;;  %v216_v8 = vld [vmem:[%s3082_s28 + $0x40] sm:$0xff]  }
  0x13   : > { %193 = vst [vmem:[%s3087_s29 + $0x10] sm:$0xff] %v192_v2   ;;  %v220_v9 = vld [vmem:[%s3082_s28 + $0x90] sm:$0xff]   ;;  %v224_v10 = vld [vmem:[%s3082_s28 + $0x98] sm:$0xff]   ;;  %v228_v11 = vld [vmem:[%s3082_s28 + $0xa0] sm:$0xff]  }
  0x14   : > { %197 = vst [vmem:[%s3087_s29 + $0x18] sm:$0xff] %v196_v3   ;;  %v232_v12 = vld [vmem:[%s3082_s28 + $0xa8] sm:$0xff]   ;;  %v236_v13 = vld [vmem:[%s3082_s28 + $0xb0] sm:$0xff]   ;;  %v240_v14 = vld [vmem:[%s3082_s28 + $0xb8] sm:$0xff]  }
  0x15   : > { %201 = vst [vmem:[%s3087_s29 + $0x20] sm:$0xff] %v200_v4   ;;  %v244_v15 = vld [vmem:[%s3082_s28 + $0xc0] sm:$0xff]   ;;  %v248_v16 = vld [vmem:[%s3082_s28 + $0xc8] sm:$0xff]   ;;  %v252_v17 = vld [vmem:[%s3082_s28 + $0xd0] sm:$0xff]  }
  0x16   : > { %205 = vst [vmem:[%s3087_s29 + $0x28] sm:$0xff] %v204_v5   ;;  %v256_v18 = vld [vmem:[%s3082_s28 + $0x120] sm:$0xff]   ;;  %v260_v19 = vld [vmem:[%s3082_s28 + $0x128] sm:$0xff]   ;;  %v264_v20 = vld [vmem:[%s3082_s28 + $0x130] sm:$0xff]  }
  0x17   : > { %209 = vst [vmem:[%s3087_s29 + $0x30] sm:$0xff] %v208_v6   ;;  %v268_v21 = vld [vmem:[%s3082_s28 + $0x138] sm:$0xff]   ;;  %v272_v22 = vld [vmem:[%s3082_s28 + $0x140] sm:$0xff]   ;;  %v276_v23 = vld [vmem:[%s3082_s28 + $0x148] sm:$0xff]  }
  0x18   : > { %213 = vst [vmem:[%s3087_s29 + $0x38] sm:$0xff] %v212_v7   ;;  %v280_v24 = vld [vmem:[%s3082_s28 + $0x150] sm:$0xff]   ;;  %v284_v25 = vld [vmem:[%s3082_s28 + $0x158] sm:$0xff]   ;;  %v288_v26 = vld [vmem:[%s3082_s28 + $0x160] sm:$0xff]  }
  0x19   : > { %217 = vst [vmem:[%s3087_s29 + $0x40] sm:$0xff] %v216_v8   ;;  %v292_v27 = vld [vmem:[%s3082_s28 + $0x1b0] sm:$0xff]   ;;  %v296_v28 = vld [vmem:[%s3082_s28 + $0x1b8] sm:$0xff]   ;;  %v300_v29 = vld [vmem:[%s3082_s28 + $0x1c0] sm:$0xff]  }
  0x1a   : > { %221 = vst [vmem:[%s3087_s29 + $0x48] sm:$0xff] %v220_v9   ;;  %v304_v30 = vld [vmem:[%s3082_s28 + $0x1c8] sm:$0xff]   ;;  %v308_v31 = vld [vmem:[%s3082_s28 + $0x1d0] sm:$0xff]   ;;  %v312_v32 = vld [vmem:[%s3082_s28 + $0x1d8] sm:$0xff]  }
  0x1b   : > { %225 = vst [vmem:[%s3087_s29 + $0x50] sm:$0xff] %v224_v10   ;;  %v316_v33 = vld [vmem:[%s3082_s28 + $0x1e0] sm:$0xff]   ;;  %v320_v34 = vld [vmem:[%s3082_s28 + $0x1e8] sm:$0xff]   ;;  %v324_v35 = vld [vmem:[%s3082_s28 + $0x1f0] sm:$0xff]  }
  0x1c   : > { %229 = vst [vmem:[%s3087_s29 + $0x58] sm:$0xff] %v228_v11  }
  0x1d   : > { %233 = vst [vmem:[%s3087_s29 + $0x60] sm:$0xff] %v232_v12  }
  0x1e   : > { %237 = vst [vmem:[%s3087_s29 + $0x68] sm:$0xff] %v236_v13  }
  0x1f   : > { %241 = vst [vmem:[%s3087_s29 + $0x70] sm:$0xff] %v240_v14  }
  0x20   : > { %245 = vst [vmem:[%s3087_s29 + $0x78] sm:$0xff] %v244_v15  }
  0x21   : > { %249 = vst [vmem:[%s3087_s29 + $0x80] sm:$0xff] %v248_v16  }
  0x22   : > { %253 = vst [vmem:[%s3087_s29 + $0x88] sm:$0xff] %v252_v17  }
  0x23   : > { %257 = vst [vmem:[%s3087_s29 + $0x90] sm:$0xff] %v256_v18  }
  0x24   : > { %261 = vst [vmem:[%s3087_s29 + $0x98] sm:$0xff] %v260_v19  }
  0x25   : > { %265 = vst [vmem:[%s3087_s29 + $0xa0] sm:$0xff] %v264_v20  }
  0x26   : > { %269 = vst [vmem:[%s3087_s29 + $0xa8] sm:$0xff] %v268_v21  }
  0x27   : > { %273 = vst [vmem:[%s3087_s29 + $0xb0] sm:$0xff] %v272_v22  }
  0x28   : > { %277 = vst [vmem:[%s3087_s29 + $0xb8] sm:$0xff] %v276_v23  }
  0x29   : > { %281 = vst [vmem:[%s3087_s29 + $0xc0] sm:$0xff] %v280_v24  }
  0x2a   : > { %285 = vst [vmem:[%s3087_s29 + $0xc8] sm:$0xff] %v284_v25  }
  0x2b   : > { %289 = vst [vmem:[%s3087_s29 + $0xd0] sm:$0xff] %v288_v26  }
  0x2c   : > { %293 = vst [vmem:[%s3087_s29 + $0xd8] sm:$0xff] %v292_v27  }
  0x2d   : > { %297 = vst [vmem:[%s3087_s29 + $0xe0] sm:$0xff] %v296_v28  }
  0x2e   : > { %301 = vst [vmem:[%s3087_s29 + $0xe8] sm:$0xff] %v300_v29  }
  0x2f   : > { %305 = vst [vmem:[%s3087_s29 + $0xf0] sm:$0xff] %v304_v30  }
  0x30   : > { %309 = vst [vmem:[%s3087_s29 + $0xf8] sm:$0xff] %v308_v31  }
  0x31   : > { %313 = vst [vmem:[%s3087_s29 + $0x100] sm:$0xff] %v312_v32  }
  0x32   : > { %317 = vst [vmem:[%s3087_s29 + $0x108] sm:$0xff] %v316_v33  }
  0x33   : > { %321 = vst [vmem:[%s3087_s29 + $0x110] sm:$0xff] %v320_v34  }
  0x34   : > { %325 = vst [vmem:[%s3087_s29 + $0x118] sm:$0xff] %v324_v35  }
  0x35 PF: > { %p2246_p5 = scmp.ge.s32.totalorder %s3019_s17, 1  ;;  %p494_p6 = scmp.lt.s32.totalorder %s3019_s17, 3 }
  0x37   : > { %p495_p7 = pnand %p2246_p5, %p494_p6 }
  0x38   : > { %s501_s6 = sand.u32 (!%p495_p7), 1, %s3011_s15   ;;  %p538_p9 = scmp.lt.s32.totalorder (!%p495_p7), %s3062_s18, 1 }
  0x39   : > { %498 = sbr.rel (%p495_p7) target bundleno = 397 (0x18d), region = 65 }
  0x3a   : > { %s2972_s11 = smul.u32 (!%p495_p7), 288, %s501_s6 }
  0x3c   : > { %s3188_s28 = scalar_lea.vmem (!%p495_p7), [#allocation2], %s2972_s11 }
  0x3e   : > { %v2858_v36 = vld [vmem:[%s3595_s1 + $0x78] sm:$0xff]  ;;  %v2857_v38 = vld [vmem:[%s3595_s1 + $0x70] sm:$0xff]  ;;  %v2856_v42 = vld [vmem:[%s3595_s1 + $0x68] sm:$0xff]  ;;  %vm812_vm0 = vsmask.f32 3328 }
  0x3f   : > { %v2866_v37 = vld [vmem:[%s3595_s1 + $0xb8] sm:$0xff]  ;;  %2954 = vmatpush.bf16.msra.mxu1 %v2858_v36  ;;  %666 = vmatpush.bf16.msra.mxu0 %v2858_v36  ;;  %v2865_v39 = vld [vmem:[%s3595_s1 + $0xb0] sm:$0xff]  ;;  %v2864_v43 = vld [vmem:[%s3595_s1 + $0xa8] sm:$0xff]  ;;  %vm813_vm1 = vsmask.f32 7440 }
  0x40   : > { %1008 = vmatpush.bf16.msra.mxu2 %v2866_v37  ;;  %v2878_v40 = vld [vmem:[%s3595_s1 + $0xf8] sm:$0xff]  ;;  %v2877_v41 = vld [vmem:[%s3595_s1 + $0xf0] sm:$0xff]  ;;  %v2876_v44 = vld [vmem:[%s3595_s1 + $0xe8] sm:$0xff] }
  0x41   : > { %1143 = vmatpush.bf16.msra.mxu3 %v2878_v40  ;;  %v796_v45 = vld [vmem:[%s3188_s28] sm:$0xf]  ;;  %v798_v47 = vld [vmem:[%s3188_s28 + $0x8] sm:$0xf]  ;;  %v797_v52 = vld [vmem:[%s3188_s28 + $0x4] sm:$0x1] }
  0x42   : > { %v2855_v46 = vld [vmem:[%s3595_s1 + $0x60] sm:$0xff]  ;;  %v816_v49 = vshrl.u32 %v796_v45, 16  ;;  %v819_v50 = vshll.u32 %v796_v45, 16  ;;  %v830_v51 = vshrl.u32 %v798_v47, 16  ;;  %v799_v53 = vld [vmem:[%s3188_s28 + $0xc] sm:$0x1]  ;;  %vm3220_vm2 = vmor %vm812_vm0, %vm813_vm1 }
  0x43   : > { %2955 = vmatpush.bf16.msra.mxu1 %v2857_v38  ;;  %667 = vmatpush.bf16.msra.mxu0 %v2857_v38  ;;  %v2863_v48 = vld [vmem:[%s3595_s1 + $0xa0] sm:$0xff]  ;;  %v833_v54 = vshll.u32 %v798_v47, 16  ;;  %v2854_v59 = vld [vmem:[%s3595_s1 + $0x58] sm:$0xff]  ;;  %v825_v63 = vshll.u32 %v797_v52, 16  ;;  %v839_v0 = vshll.u32 %v799_v53, 16  ;;  %v2853_v3 = vld [vmem:[%s3595_s1 + $0x50] sm:$0xff] }
  0x44   : > { %1009 = vmatpush.bf16.msra.mxu2 %v2865_v39  ;;  %v2875_v55 = vld [vmem:[%s3595_s1 + $0xe0] sm:$0xff]  ;;  %v818_v56 = vrot.slane %v816_v49, 4  ;;  %v821_v57 = vrot.slane %v819_v50, 5  ;;  %v832_v58 = vrot.slane %v830_v51, 4  ;;  %v2862_v61 = vld [vmem:[%s3595_s1 + $0x98] sm:$0xff]  ;;  %v2861_v6 = vld [vmem:[%s3595_s1 + $0x90] sm:$0xff] }
  0x45   : > { %1144 = vmatpush.bf16.msra.mxu3 %v2877_v41  ;;  %v835_v60 = vrot.slane %v833_v54, 5  ;;  %v2874_v2 = vld [vmem:[%s3595_s1 + $0xd8] sm:$0xff]  ;;  %v800_v4 = vld [vmem:[%s3188_s28 + $0x10] sm:$0xf]  ;;  %v827_v8 = vrot.slane %v825_v63, 5  ;;  %v841_v10 = vrot.slane %v839_v0, 5 }
  0x46   : > { %v822_v62 = vor.u32 %v821_v57, %v818_v56  ;;  %v802_v5 = vld [vmem:[%s3188_s28 + $0x18] sm:$0xf]  ;;  %v2873_v12 = vld [vmem:[%s3595_s1 + $0xd0] sm:$0xff]  ;;  %v844_v13 = vshrl.u32 %v800_v4, 16  ;;  %v847_v14 = vshll.u32 %v800_v4, 16  ;;  %v2852_v17 = vld [vmem:[%s3595_s1 + $0x48] sm:$0xff] }
  0x47   : > { %2956 = vmatpush.bf16.msra.mxu1 %v2856_v42  ;;  %668 = vmatpush.bf16.msra.mxu0 %v2856_v42  ;;  %v836_v1 = vor.u32 %v835_v60, %v832_v58  ;;  %v858_v15 = vshrl.u32 %v802_v5, 16  ;;  %v861_v16 = vshll.u32 %v802_v5, 16  ;;  %v2860_v18 = vld [vmem:[%s3595_s1 + $0x88] sm:$0xff]  ;;  %v2851_v21 = vld [vmem:[%s3595_s1 + $0x40] sm:$0xff]  ;;  %v2849_v23 = vld [vmem:[%s3188_s28 + $0x6c] sm:$0xf0] }
  0x48   : > { %1010 = vmatpush.bf16.msra.mxu2 %v2864_v43  ;;  %v823_v7 = vrot.slane %v822_v62, 4  ;;  %v2283_v22 = vld [vmem:[%s3188_s28 + $0x68] sm:$0xf]  ;;  %v801_v25 = vld [vmem:[%s3188_s28 + $0x14] sm:$0x1]  ;;  %v846_v26 = vrot.slane %v844_v13, 4 }
  0x49   : > { %1145 = vmatpush.bf16.msra.mxu3 %v2876_v44  ;;  %v837_v9 = vrot.slane %v836_v1, 4  ;;  %v2872_v24 = vld [vmem:[%s3595_s1 + $0xc8] sm:$0xff]  ;;  %v849_v27 = vrot.slane %v847_v14, 5  ;;  %v860_v28 = vrot.slane %v858_v15, 4  ;;  %v863_v29 = vrot.slane %v861_v16, 5  ;;  %v2846_v35 = vld [vmem:[%s3595_s1 + $0x38] sm:$0xff] }
  0x4a   : > { %v828_v19 = vsel %vm3220_vm2, %v823_v7, %v827_v8  ;;  %v2275_v30 = vld [vmem:[%s3188_s28 + $0x48] sm:$0xf]  ;;  %v2847_v31 = vld [vmem:[%s3188_s28 + $0x4c] sm:$0xf0]  ;;  %v803_v34 = vld [vmem:[%s3188_s28 + $0x1c] sm:$0x1]  ;;  %v2284_v37 = vor.u32 %v2849_v23, %v2283_v22 }
  0x4b   : > { %2957 = vmatpush.bf16.msra.mxu1 %v2855_v46  ;;  %669 = vmatpush.bf16.msra.mxu0 %v2855_v46  ;;  %v842_v20 = vsel %vm3220_vm2, %v837_v9, %v841_v10  ;;  %v944_v32 = vunpack.c.l.b16 %v828_v19  ;;  %v2859_v36 = vld [vmem:[%s3595_s1 + $0x80] sm:$0xff]  ;;  %v2890_v38 = vld [vmem:[%s3595_s1 + $0x138] sm:$0xff]  ;;  %v853_v40 = vshll.u32 %v801_v25, 16  ;;  %v2276_v41 = vor.u32 %v2847_v31, %v2275_v30  ;;  %v2443_v47 = vld [vmem:[%s3188_s28 + $0x90] sm:$0xf] }
  0x4c   : > { %1011 = vmatpush.bf16.msra.mxu2 %v2863_v48  ;;  %v945_v33 = vunpack.c.l.b16 %v842_v20  ;;  %v2910_v39 = vld [vmem:[%s3595_s1 + $0x1b8] sm:$0xff]  ;;  %v850_v42 = vor.u32 %v849_v27, %v846_v26  ;;  %v864_v43 = vor.u32 %v863_v29, %v860_v28  ;;  %v867_v44 = vshll.u32 %v803_v34, 16  ;;  %v2871_v46 = vld [vmem:[%s3595_s1 + $0xc0] sm:$0xff]  ;;  %v2845_v49 = vld [vmem:[%s3595_s1 + $0x30] sm:$0xff] }
  0x4d   : > { %1146 = vmatpush.bf16.msra.mxu3 %v2875_v55  ;;  %v2867_v48 = vld [vmem:[%s3188_s28 + $0x94] sm:$0xf0]  ;;  %v2889_v51 = vld [vmem:[%s3595_s1 + $0x130] sm:$0xff]  ;;  %v855_v52 = vrot.slane %v853_v40, 5  ;;  %v2844_v58 = vld [vmem:[%s3595_s1 + $0x28] sm:$0xff] }
  0x4e   : > { %v952_v45 = vpack.c.b16 %v945_v33, %v944_v32  ;;  %v2922_v50 = vld [vmem:[%s3595_s1 + $0x1f8] sm:$0xff]  ;;  %v2909_v53 = vld [vmem:[%s3595_s1 + $0x1b0] sm:$0xff]  ;;  %v2444_v54 = vor.u32 %v2867_v48, %v2443_v47  ;;  %v851_v55 = vrot.slane %v850_v42, 4  ;;  %v865_v56 = vrot.slane %v864_v43, 4  ;;  %v804_v60 = vld [vmem:[%s3188_s28 + $0x20] sm:$0xf] }
  0x4f   : > { %2958 = vmatpush.bf16.msra.mxu1 %v2854_v59  ;;  %670 = vmatpush.bf16.msra.mxu0 %v2854_v59  ;;  %v869_v57 = vrot.slane %v867_v44, 5  ;;  %v2921_v59 = vld [vmem:[%s3595_s1 + $0x1f0] sm:$0xff]  ;;  %v2888_v62 = vld [vmem:[%s3595_s1 + $0x128] sm:$0xff]  ;;  %v2887_v8 = vld [vmem:[%s3595_s1 + $0x120] sm:$0xff] }
  0x50   : > { %1012 = vmatpush.bf16.msra.mxu2 %v2862_v61  ;;  %v806_v61 = vld [vmem:[%s3188_s28 + $0x28] sm:$0xf]  ;;  %v856_v0 = vsel %vm3220_vm2, %v851_v55, %v855_v52  ;;  %v2907_v9 = vld [vmem:[%s3595_s1 + $0x1a0] sm:$0xff]  ;;  %v2287_v10 = vld [vmem:[%s3188_s28 + $0x78] sm:$0xf] }
  0x51   : > { %1147 = vmatpush.bf16.msra.mxu3 %v2874_v2  ;;  %v2908_v63 = vld [vmem:[%s3595_s1 + $0x1a8] sm:$0xff]  ;;  %v870_v1 = vsel %vm3220_vm2, %v865_v56, %v869_v57  ;;  %v872_v2 = vshrl.u32 %v804_v60, 16  ;;  %v886_v4 = vshrl.u32 %v806_v61, 16  ;;  %v889_v5 = vshll.u32 %v806_v61, 16  ;;  %v2279_v13 = vld [vmem:[%s3188_s28 + $0x58] sm:$0xf] }
  0x52   : > { %v2920_v7 = vld [vmem:[%s3595_s1 + $0x1e8] sm:$0xff]  ;;  %v946_v14 = vunpack.c.l.b16 %v856_v0  ;;  %v947_v15 = vunpack.c.l.b16 %v870_v1  ;;  %v2848_v16 = vld [vmem:[%s3188_s28 + $0x5c] sm:$0xf0]  ;;  %v805_v22 = vld [vmem:[%s3188_s28 + $0x24] sm:$0x1] }
  0x53   : > { %2959 = vmatpush.bf16.msra.mxu1 %v2853_v3  ;;  %671 = vmatpush.bf16.msra.mxu0 %v2853_v3  ;;  %v875_v3 = vshll.u32 %v804_v60, 16  ;;  %v888_v19 = vrot.slane %v886_v4, 4  ;;  %v891_v20 = vrot.slane %v889_v5, 5  ;;  %v807_v23 = vld [vmem:[%s3188_s28 + $0x2c] sm:$0x1]  ;;  %v2280_v26 = vor.u32 %v2848_v16, %v2279_v13  ;;  %v2841_v34 = vld [vmem:[%s3595_s1 + $0x10] sm:$0xff] }
  0x54   : > { %1013 = vmatpush.bf16.msra.mxu2 %v2861_v6  ;;  %v2843_v6 = vld [vmem:[%s3595_s1 + $0x20] sm:$0xff]  ;;  %v953_v27 = vpack.c.b16 %v947_v15, %v946_v14  ;;  %v2868_v29 = vld [vmem:[%s3188_s28 + $0xa4] sm:$0xf0]  ;;  %v881_v31 = vshll.u32 %v805_v22, 16  ;;  %v895_v33 = vshll.u32 %v807_v23, 16  ;;  %v2905_v47 = vld [vmem:[%s3595_s1 + $0x190] sm:$0xff] }
  0x55   : > { %1148 = vmatpush.bf16.msra.mxu3 %v2873_v12  ;;  %v2850_v12 = vld [vmem:[%s3188_s28 + $0x7c] sm:$0xf0]  ;;  %v892_v32 = vor.u32 %v891_v20, %v888_v19  ;;  %v2840_v42 = vld [vmem:[%s3595_s1 + $0x8] sm:$0xff]  ;;  %v2898_v56 = vld [vmem:[%s3595_s1 + $0x178] sm:$0xff] }
  0x56   : > { %v2288_v25 = vor.u32 %v2850_v12, %v2287_v10  ;;  %v2447_v28 = vld [vmem:[%s3188_s28 + $0xa0] sm:$0xf]  ;;  %v2884_v43 = vld [vmem:[%s3595_s1 + $0x108] sm:$0xff]  ;;  %v2515_v61 = vld [vmem:[%s3188_s28 + $0xd8] sm:$0xf] }
  0x57   : > { %2960 = vmatpush.bf16.msra.mxu1 %v2852_v17  ;;  %672 = vmatpush.bf16.msra.mxu0 %v2852_v17  ;;  %v874_v17 = vrot.slane %v872_v2, 4  ;;  %v893_v40 = vrot.slane %v892_v32, 4  ;;  %v2919_v44 = vld [vmem:[%s3595_s1 + $0x1e0] sm:$0xff]  ;;  %v2835_v60 = vld [vmem:[%s3188_s28 + $0x4] sm:$0xf0]  ;;  %v2897_v5 = vld [vmem:[%s3595_s1 + $0x170] sm:$0xff] }
  0x58   : > { %1014 = vmatpush.bf16.msra.mxu2 %v2860_v18  ;;  %v877_v18 = vrot.slane %v875_v3, 5  ;;  %v2883_v57 = vld [vmem:[%s3595_s1 + $0x100] sm:$0xff]  ;;  %v2451_v12 = vld [vmem:[%s3188_s28 + $0xb0] sm:$0xf]  ;;  %v2869_v13 = vld [vmem:[%s3188_s28 + $0xb4] sm:$0xf0] }
  0x59   : > { %1149 = vmatpush.bf16.msra.mxu3 %v2872_v24  ;;  %v2886_v24 = vld [vmem:[%s3595_s1 + $0x118] sm:$0xff]  ;;  %v2929_v14 = vld [vmem:[%s3595_s1 + $0x230] sm:$0xff]  ;;  %v2896_v19 = vld [vmem:[%s3595_s1 + $0x168] sm:$0xff] }
  0x5a   : > { %v878_v30 = vor.u32 %v877_v18, %v874_v17  ;;  %v2904_v20 = vld [vmem:[%s3595_s1 + $0x188] sm:$0xff] }
  0x5b   : > { %2961 = vmatpush.bf16.msra.mxu1 %v2851_v21  ;;  %673 = vmatpush.bf16.msra.mxu0 %v2851_v21  ;;  %v2842_v21 = vld [vmem:[%s3595_s1 + $0x18] sm:$0xff]  ;;  %v2928_v22 = vld [vmem:[%s3595_s1 + $0x228] sm:$0xff] }
  0x5c   : > { %1015 = vmatpush.bf16.msra.mxu2 %v2859_v36  ;;  %v2448_v36 = vor.u32 %v2868_v29, %v2447_v28  ;;  %v2917_v28 = vld [vmem:[%s3595_s1 + $0x1d0] sm:$0xff]  ;;  %v2895_v29 = vld [vmem:[%s3595_s1 + $0x160] sm:$0xff] }
  0x5d   : > { %1150 = vmatpush.bf16.msra.mxu3 %v2871_v46  ;;  %v810_v46 = vld [vmem:[%s3188_s28 + $0x38] sm:$0xf] }
  0x5e   : > { %684 = vmatmul.bf16.vlgmr.msra.gmra.mxu1 %v2284_v37  ;;  %674 = vmatmul.bf16.vlgmr.msra.gmra.mxu0 %v2276_v41  ;;  %v2906_v37 = vld [vmem:[%s3595_s1 + $0x198] sm:$0xff]  ;;  %v897_v41 = vrot.slane %v895_v33, 5  ;;  %v917_v55 = vshll.u32 %v810_v46, 16 }
  0x5f   : > { %767 = vmatpush.bf16.msrb.mxu1 %v2846_v35  ;;  %1278 = vmatpush.bf16.msrb.mxu0 %v2890_v38  ;;  %v2885_v35 = vld [vmem:[%s3595_s1 + $0x110] sm:$0xff]  ;;  %v879_v38 = vrot.slane %v878_v30, 4  ;;  %v2927_v30 = vld [vmem:[%s3595_s1 + $0x220] sm:$0xff] }
  0x60   : > { %1659 = vmatpush.bf16.msrb.mxu2 %v2910_v39  ;;  %1151 = vmatmul.bf16.vlgmr.msra.gmra.mxu3 %v2444_v54  ;;  %v883_v39 = vrot.slane %v881_v31, 5  ;;  %v914_v54 = vshrl.u32 %v810_v46, 16  ;;  %v919_v4 = vrot.slane %v917_v55, 5  ;;  %v2916_v31 = vld [vmem:[%s3595_s1 + $0x1c8] sm:$0xff] }
  0x61   : > { %1016 = vmatmul.bf16.vlgmr.msra.gmra.mxu2 %v952_v45  ;;  %1794 = vmatpush.bf16.msrb.mxu3 %v2922_v50  ;;  %v808_v45 = vld [vmem:[%s3188_s28 + $0x30] sm:$0xf]  ;;  %v2918_v50 = vld [vmem:[%s3595_s1 + $0x1d8] sm:$0xff]  ;;  %v2870_v46 = vld [vmem:[%s3188_s28 + $0xc4] sm:$0xf0] }
  0x62   : > { %v884_v48 = vsel %vm3220_vm2, %v879_v38, %v883_v39  ;;  %v900_v52 = vshrl.u32 %v808_v45, 16  ;;  %v916_v3 = vrot.slane %v914_v54, 4  ;;  %v2880_v38 = vld [vmem:[%s3188_s28 + $0xec] sm:$0xf0]  ;;  %v2331_v54 = vld [vmem:[%s3188_s28 + $0x20] sm:$0xf] }
  0x63   : > { %768 = vmatpush.bf16.msrb.mxu1 %v2845_v49  ;;  %1279 = vmatpush.bf16.msrb.mxu0 %v2889_v51  ;;  %v898_v49 = vsel %vm3220_vm2, %v893_v40, %v897_v41  ;;  %v2839_v51 = vld [vmem:[%s3595_s1] sm:$0xff]  ;;  %v2893_v41 = vld [vmem:[%s3595_s1 + $0x150] sm:$0xff]  ;;  %v2837_v55 = vld [vmem:[%s3188_s28 + $0x24] sm:$0xf0] }
  0x64   : > { %1660 = vmatpush.bf16.msrb.mxu2 %v2909_v53  ;;  %v903_v53 = vshll.u32 %v808_v45, 16  ;;  %v949_v0 = vunpack.c.l.b16 %v898_v49  ;;  %v902_v1 = vrot.slane %v900_v52, 4  ;;  %v920_v17 = vor.u32 %v919_v4, %v916_v3  ;;  %v2455_v45 = vld [vmem:[%s3188_s28 + $0xc0] sm:$0xf]  ;;  %v2926_v49 = vld [vmem:[%s3595_s1 + $0x218] sm:$0xff]  ;;  %v2925_v52 = vld [vmem:[%s3595_s1 + $0x210] sm:$0xff] }
  0x65   : > { %1795 = vmatpush.bf16.msrb.mxu3 %v2921_v59  ;;  %v2930_v59 = vld [vmem:[%s3595_s1 + $0x238] sm:$0xff]  ;;  %v2561_v3 = vld [vmem:[%s3188_s28 + $0x90] sm:$0xf] }
  0x66   : > { %v905_v2 = vrot.slane %v903_v53, 5  ;;  %v2924_v53 = vld [vmem:[%s3595_s1 + $0x208] sm:$0xff]  ;;  %v2563_v4 = vld [vmem:[%s3188_s28 + $0x98] sm:$0xf] }
  0x67   : > { %769 = vmatpush.bf16.msrb.mxu1 %v2844_v58  ;;  %1280 = vmatpush.bf16.msrb.mxu0 %v2888_v62  ;;  %v2323_v58 = vld [vmem:[%s3188_s28] sm:$0xf] }
  0x68   : > { %1661 = vmatpush.bf16.msrb.mxu2 %v2908_v63  ;;  %v2879_v62 = vld [vmem:[%s3188_s28 + $0xdc] sm:$0xf0]  ;;  %v948_v63 = vunpack.c.l.b16 %v884_v48  ;;  %v906_v15 = vor.u32 %v905_v2, %v902_v1  ;;  %v2892_v48 = vld [vmem:[%s3595_s1 + $0x148] sm:$0xff] }
  0x69   : > { %1796 = vmatpush.bf16.msrb.mxu3 %v2920_v7  ;;  %v811_v7 = vld [vmem:[%s3188_s28 + $0x3c] sm:$0x1]  ;;  %v2923_v2 = vld [vmem:[%s3595_s1 + $0x200] sm:$0xff] }
  0x6a   : > { %v954_v10 = vpack.c.b16 %v949_v0, %v948_v63  ;;  %v923_v18 = vshll.u32 %v811_v7, 16  ;;  %v907_v23 = vrot.slane %v906_v15, 4  ;;  %v2723_v63 = vld [vmem:[%s3188_s28 + $0x50] sm:$0xf]  ;;  %v2911_v0 = vld [vmem:[%s3188_s28 + $0x54] sm:$0xf0] }
  0x6b   : > { %770 = vmatpush.bf16.msrb.mxu1 %v2843_v6  ;;  %1281 = vmatpush.bf16.msrb.mxu0 %v2887_v8  ;;  %v809_v6 = vld [vmem:[%s3188_s28 + $0x34] sm:$0x1]  ;;  %v2324_v8 = vor.u32 %v2835_v60, %v2323_v58  ;;  %v2651_v58 = vld [vmem:[%s3188_s28 + $0x8] sm:$0xf]  ;;  %v2332_v60 = vor.u32 %v2837_v55, %v2331_v54  ;;  %v2724_v1 = vor.u32 %v2911_v0, %v2723_v63  ;;  %v1332_v7 = vshrl.u32 %v2561_v3, 16 }
  0x6c   : > { %1662 = vmatpush.bf16.msrb.mxu2 %v2907_v9  ;;  %v2516_v9 = vor.u32 %v2879_v62, %v2515_v61  ;;  %v909_v16 = vshll.u32 %v809_v6, 16  ;;  %v2771_v6 = vld [vmem:[%s3188_s28 + $0x10] sm:$0xf]  ;;  %v2773_v54 = vld [vmem:[%s3188_s28 + $0x18] sm:$0xf] }
  0x6d   : > { %1797 = vmatpush.bf16.msrb.mxu3 %v2919_v44  ;;  %v1865_v15 = vshll.u32 %v2771_v6, 16  ;;  %v2775_v55 = vld [vmem:[%s3188_s28 + $0x20] sm:$0xf]  ;;  %v1876_v0 = vshrl.u32 %v2773_v54, 16 }
  0x6e   : > { %689 = vmatmul.bf16.gmra.mxu1 %v2288_v25  ;;  %679 = vmatmul.bf16.gmra.mxu0 %v2280_v26  ;;  %v921_v25 = vrot.slane %v920_v17, 4  ;;  %v925_v26 = vrot.slane %v923_v18, 5  ;;  %v2838_v17 = vld [vmem:[%s3188_s28 + $0x34] sm:$0xf0]  ;;  %v2527_v18 = vld [vmem:[%s3188_s28 + $0x108] sm:$0xf] }
  0x6f   : > { %771 = vmatpush.bf16.msrb.mxu1 %v2842_v21  ;;  %1282 = vmatpush.bf16.msrb.mxu0 %v2886_v24  ;;  %v2452_v21 = vor.u32 %v2869_v13, %v2451_v12  ;;  %v911_v24 = vrot.slane %v909_v16, 5  ;;  %v2335_v16 = vld [vmem:[%s3188_s28 + $0x30] sm:$0xf] }
  0x70   : > { %1663 = vmatpush.bf16.msrb.mxu2 %v2906_v37  ;;  %1156 = vmatmul.bf16.gmra.mxu3 %v2448_v36  ;;  %v926_v33 = vsel %vm3220_vm2, %v921_v25, %v925_v26  ;;  %v2836_v36 = vld [vmem:[%s3188_s28 + $0x14] sm:$0xf0]  ;;  %v2519_v37 = vld [vmem:[%s3188_s28 + $0xe8] sm:$0xf] }
  0x71   : > { %1021 = vmatmul.bf16.gmra.mxu2 %v953_v27  ;;  %1798 = vmatpush.bf16.msrb.mxu3 %v2918_v50  ;;  %v2903_v27 = vld [vmem:[%s3595_s1 + $0x180] sm:$0xff]  ;;  %v912_v32 = vsel %vm3220_vm2, %v907_v23, %v911_v24  ;;  %v951_v40 = vunpack.c.l.b16 %v926_v33  ;;  %v1334_v23 = vrot.slane %v1332_v7, 4  ;;  %v2772_v33 = vld [vmem:[%s3188_s28 + $0x14] sm:$0x1] }
  0x72   : > { %v950_v39 = vunpack.c.l.b16 %v912_v32  ;;  %v2915_v50 = vld [vmem:[%s3595_s1 + $0x1c0] sm:$0xff]  ;;  %v2770_v32 = vld [vmem:[%s3188_s28 + $0xc] sm:$0x1] }
  0x73   : > { %772 = vmatpush.bf16.msrb.mxu1 %v2841_v34  ;;  %1283 = vmatpush.bf16.msrb.mxu0 %v2885_v35  ;;  %v2894_v34 = vld [vmem:[%s3595_s1 + $0x158] sm:$0xff]  ;;  %v2327_v35 = vld [vmem:[%s3188_s28 + $0x10] sm:$0xf] }
  0x74   : > { %1664 = vmatpush.bf16.msrb.mxu2 %v2905_v47  ;;  %v955_v44 = vpack.c.b16 %v951_v40, %v950_v39  ;;  %v2456_v47 = vor.u32 %v2870_v46, %v2455_v45  ;;  %v1871_v46 = vshll.u32 %v2772_v33, 16 }
  0x75   : > { %1799 = vmatpush.bf16.msrb.mxu3 %v2917_v28 }
  0x77   : > { %773 = vmatpush.bf16.msrb.mxu1 %v2840_v42  ;;  %1284 = vmatpush.bf16.msrb.mxu0 %v2884_v43  ;;  %v2328_v42 = vor.u32 %v2836_v36, %v2327_v35  ;;  %v2520_v43 = vor.u32 %v2880_v38, %v2519_v37 }
  0x78   : > { %1665 = vmatpush.bf16.msrb.mxu2 %v2904_v20  ;;  %v2655_v20 = vld [vmem:[%s3188_s28 + $0x18] sm:$0xf] }
  0x79   : > { %1800 = vmatpush.bf16.msrb.mxu3 %v2916_v31  ;;  %v1867_v31 = vrot.slane %v1865_v15, 5  ;;  %v1878_v15 = vrot.slane %v1876_v0, 4 }
  0x7b   : > { %774 = vmatpush.bf16.msrb.mxu1 %v2839_v51  ;;  %1285 = vmatpush.bf16.msrb.mxu0 %v2883_v57  ;;  %v2891_v51 = vld [vmem:[%s3595_s1 + $0x140] sm:$0xff] }
  0x7c   : > { %1666 = vmatpush.bf16.msrb.mxu2 %v2903_v27  ;;  %v2881_v57 = vld [vmem:[%s3188_s28 + $0xfc] sm:$0xf0] }
  0x7d   : > { %1801 = vmatpush.bf16.msrb.mxu3 %v2915_v50  ;;  %v2900_v27 = vld [vmem:[%s3188_s28 + $0x1c] sm:$0xf0]  ;;  %v2567_v50 = vld [vmem:[%s3188_s28 + $0xa8] sm:$0xf] }
  0x7e   : > { %775 = vmatmul.bf16.vlgmr.msrb.gmra.mxu1 %v2324_v8  ;;  %1286 = vmatmul.bf16.vlgmr.msrb.gmra.mxu0 %v2516_v9  ;;  %v1335_v8 = vshll.u32 %v2561_v3, 16  ;;  %v1346_v9 = vshrl.u32 %v2563_v4, 16  ;;  %v2656_v38 = vor.u32 %v2900_v27, %v2655_v20  ;;  %v1377_v63 = vshll.u32 %v2567_v50, 16 }
  0x7f   : > { %1524 = vmatpush.bf16.msra.mxu1 %v2898_v56  ;;  %2040 = vmatpush.bf16.msra.mxu0 %v2930_v59  ;;  %v2523_v56 = vld [vmem:[%s3188_s28 + $0xf8] sm:$0xf]  ;;  %v1893_v3 = vshll.u32 %v2775_v55, 16 }
  0x80   : > { %1161 = vmatmul.bf16.gmra.mxu3 %v2452_v21  ;;  %2962 = vmatpush.bf16.msra.mxu2 %v2930_v59  ;;  %v2899_v59 = vld [vmem:[%s3188_s28 + $0xc] sm:$0xf0]  ;;  %v2524_v61 = vor.u32 %v2881_v57, %v2523_v56  ;;  %v2562_v21 = vld [vmem:[%s3188_s28 + $0x94] sm:$0x1]  ;;  %v1337_v24 = vrot.slane %v1335_v8, 5  ;;  %v1348_v25 = vrot.slane %v1346_v9, 4 }
  0x81   : > { %1026 = vmatmul.bf16.gmra.mxu2 %v954_v10  ;;  %v2652_v62 = vor.u32 %v2899_v59, %v2651_v58  ;;  %v1349_v10 = vshll.u32 %v2563_v4, 16  ;;  %v1341_v35 = vshll.u32 %v2562_v21, 16  ;;  %v1873_v59 = vrot.slane %v1871_v46, 5  ;;  %v2566_v8 = vld [vmem:[%s3188_s28 + $0xa4] sm:$0x1] }
  0x82   : > { %v1338_v39 = vor.u32 %v1337_v24, %v1334_v23  ;;  %v2774_v23 = vld [vmem:[%s3188_s28 + $0x1c] sm:$0x1]  ;;  %v2776_v24 = vld [vmem:[%s3188_s28 + $0x24] sm:$0x1] }
  0x83   : > { %1525 = vmatpush.bf16.msra.mxu1 %v2897_v5  ;;  %2041 = vmatpush.bf16.msra.mxu0 %v2929_v14  ;;  %v2769_v5 = vld [vmem:[%s3188_s28 + $0x8] sm:$0xf]  ;;  %v1351_v26 = vrot.slane %v1349_v10, 5 }
  0x84   : > { %2963 = vmatpush.bf16.msra.mxu2 %v2929_v14  ;;  %v1848_v12 = vshrl.u32 %v2769_v5, 16  ;;  %v1851_v13 = vshll.u32 %v2769_v5, 16  ;;  %v1862_v14 = vshrl.u32 %v2771_v6, 16 }
  0x85   : > { %v1352_v40 = vor.u32 %v1351_v26, %v1348_v25  ;;  %v2659_v25 = vld [vmem:[%s3188_s28 + $0x28] sm:$0xf]  ;;  %v2901_v26 = vld [vmem:[%s3188_s28 + $0x2c] sm:$0xf0] }
  0x86   : > { %v1850_v28 = vrot.slane %v1848_v12, 4 }
  0x87   : > { %1526 = vmatpush.bf16.msra.mxu1 %v2896_v19  ;;  %2042 = vmatpush.bf16.msra.mxu0 %v2928_v22  ;;  %v2882_v19 = vld [vmem:[%s3188_s28 + $0x10c] sm:$0xf0] }
  0x88   : > { %2964 = vmatpush.bf16.msra.mxu2 %v2928_v22  ;;  %v2564_v22 = vld [vmem:[%s3188_s28 + $0x9c] sm:$0x1]  ;;  %v2528_v37 = vor.u32 %v2882_v19, %v2527_v18  ;;  %v1895_v18 = vrot.slane %v1893_v3, 5 }
  0x89   : > { %v1355_v36 = vshll.u32 %v2564_v22, 16 }
  0x8b   : > { %1527 = vmatpush.bf16.msra.mxu1 %v2895_v29  ;;  %2043 = vmatpush.bf16.msra.mxu0 %v2927_v30  ;;  %v1853_v29 = vrot.slane %v1851_v13, 5  ;;  %v1379_v13 = vrot.slane %v1377_v63, 5 }
  0x8c   : > { %2965 = vmatpush.bf16.msra.mxu2 %v2927_v30  ;;  %v1864_v30 = vrot.slane %v1862_v14, 4  ;;  %v2568_v14 = vld [vmem:[%s3188_s28 + $0xac] sm:$0x1] }
  0x8e   : > { %780 = vmatmul.bf16.gmra.mxu1 %v2328_v42  ;;  %1291 = vmatmul.bf16.gmra.mxu0 %v2520_v43  ;;  %v2912_v42 = vld [vmem:[%s3188_s28 + $0x64] sm:$0xf0]  ;;  %v1854_v43 = vor.u32 %v1853_v29, %v1850_v28  ;;  %v1868_v45 = vor.u32 %v1867_v31, %v1864_v30  ;;  %v1369_v28 = vshll.u32 %v2566_v8, 16  ;;  %v1383_v30 = vshll.u32 %v2568_v14, 16  ;;  %v2570_v14 = vld [vmem:[%s3188_s28 + $0xb4] sm:$0x1] }
  0x8f   : > { %1528 = vmatpush.bf16.msra.mxu1 %v2894_v34  ;;  %2044 = vmatpush.bf16.msra.mxu0 %v2926_v49  ;;  %v2336_v34 = vor.u32 %v2838_v17, %v2335_v16 }
  0x90   : > { %1166 = vmatmul.bf16.gmra.mxu3 %v2456_v47  ;;  %2966 = vmatpush.bf16.msra.mxu2 %v2926_v49  ;;  %v1343_v47 = vrot.slane %v1341_v35, 5  ;;  %v2565_v49 = vld [vmem:[%s3188_s28 + $0xa0] sm:$0xf]  ;;  %v1855_v56 = vrot.slane %v1854_v43, 4  ;;  %v1869_v58 = vrot.slane %v1868_v45, 4  ;;  %v1385_v43 = vrot.slane %v1383_v30, 5 }
  0x91   : > { %1031 = vmatmul.bf16.gmra.mxu2 %v955_v44  ;;  %v1857_v44 = vshll.u32 %v2770_v32, 16  ;;  %v1885_v32 = vshll.u32 %v2774_v23, 16  ;;  %v2663_v23 = vld [vmem:[%s3188_s28 + $0x38] sm:$0xf]  ;;  %v2782_v30 = vld [vmem:[%s3188_s28 + $0x3c] sm:$0x1] }
  0x92   : > { %v1874_v7 = vsel %vm3220_vm2, %v1869_v58, %v1873_v59 }
  0x93   : > { %1529 = vmatpush.bf16.msra.mxu1 %v2893_v41  ;;  %2045 = vmatpush.bf16.msra.mxu0 %v2925_v52  ;;  %v2727_v41 = vld [vmem:[%s3188_s28 + $0x60] sm:$0xf]  ;;  %v1859_v57 = vrot.slane %v1857_v44, 5  ;;  %v1977_v22 = vunpack.c.l.b16 %v1874_v7  ;;  %v1887_v45 = vrot.slane %v1885_v32, 5 }
  0x94   : > { %2967 = vmatpush.bf16.msra.mxu2 %v2925_v52  ;;  %v1353_v52 = vrot.slane %v1352_v40, 4 }
  0x95   : > { %v1860_v6 = vsel %vm3220_vm2, %v1855_v56, %v1859_v57  ;;  %v2781_v57 = vld [vmem:[%s3188_s28 + $0x38] sm:$0xf] }
  0x96   : > { %v1976_v21 = vunpack.c.l.b16 %v1860_v6  ;;  %v1935_v6 = vshll.u32 %v2781_v57, 16 }
  0x97   : > { %1530 = vmatpush.bf16.msra.mxu1 %v2892_v48  ;;  %2046 = vmatpush.bf16.msra.mxu0 %v2924_v53  ;;  %v1357_v48 = vrot.slane %v1355_v36, 5 }
  0x98   : > { %2968 = vmatpush.bf16.msra.mxu2 %v2924_v53  ;;  %v2728_v53 = vor.u32 %v2912_v42, %v2727_v41  ;;  %v1984_v36 = vpack.c.b16 %v1977_v22, %v1976_v21  ;;  %v1371_v41 = vrot.slane %v1369_v28, 5  ;;  %v2902_v28 = vld [vmem:[%s3188_s28 + $0x3c] sm:$0xf0] }
  0x99   : > { %v1358_v5 = vsel %vm3220_vm2, %v1353_v52, %v1357_v48  ;;  %v2569_v48 = vld [vmem:[%s3188_s28 + $0xb0] sm:$0xf] }
  0x9a   : > { %v1461_v20 = vunpack.c.l.b16 %v1358_v5  ;;  %v2779_v52 = vld [vmem:[%s3188_s28 + $0x30] sm:$0xf]  ;;  %v1391_v56 = vshll.u32 %v2569_v48, 16  ;;  %v1932_v5 = vshrl.u32 %v2781_v57, 16 }
  0x9b   : > { %1531 = vmatpush.bf16.msra.mxu1 %v2891_v51  ;;  %2047 = vmatpush.bf16.msra.mxu0 %v2923_v2  ;;  %v1339_v51 = vrot.slane %v1338_v39, 4  ;;  %v2913_v39 = vld [vmem:[%s3188_s28 + $0x74] sm:$0xf0] }
  0x9c   : > { %2969 = vmatpush.bf16.msra.mxu2 %v2923_v2  ;;  %v1890_v2 = vshrl.u32 %v2775_v55, 16  ;;  %v1388_v55 = vshrl.u32 %v2569_v48, 16  ;;  %v1393_v8 = vrot.slane %v1391_v56, 5 }
  0x9d   : > { %v1344_v4 = vsel %vm3220_vm2, %v1339_v51, %v1343_v47  ;;  %v2777_v51 = vld [vmem:[%s3188_s28 + $0x28] sm:$0xf] }
  0x9e   : > { %785 = vmatmul.bf16.gmra.mxu1 %v2332_v60  ;;  %1296 = vmatmul.bf16.gmra.mxu0 %v2524_v61  ;;  %v1360_v60 = vshrl.u32 %v2565_v49, 16  ;;  %v1363_v61 = vshll.u32 %v2565_v49, 16  ;;  %v1892_v17 = vrot.slane %v1890_v2, 4  ;;  %v1460_v19 = vunpack.c.l.b16 %v1344_v4 }
  0x9f   : > { %v1904_v63 = vshrl.u32 %v2777_v51, 16  ;;  %v1907_v0 = vshll.u32 %v2777_v51, 16  ;;  %v1921_v2 = vshll.u32 %v2779_v52, 16  ;;  %v1390_v7 = vrot.slane %v1388_v55, 4 }
  0xa0   : > { %1802 = vmatmul.bf16.vlgmr.msrb.gmra.mxu3 %v2724_v1  ;;  %v1879_v1 = vshll.u32 %v2773_v54, 16  ;;  %v1362_v9 = vrot.slane %v1360_v60, 4  ;;  %v1365_v10 = vrot.slane %v1363_v61, 5  ;;  %v1896_v33 = vor.u32 %v1895_v18, %v1892_v17  ;;  %v2778_v18 = vld [vmem:[%s3188_s28 + $0x2c] sm:$0x1] }
  0xa1   : > { %1667 = vmatmul.bf16.vlgmr.msrb.gmra.mxu2 %v2652_v62  ;;  %v1374_v62 = vshrl.u32 %v2567_v50, 16  ;;  %v1468_v35 = vpack.c.b16 %v1461_v20, %v1460_v19  ;;  %v2571_v50 = vld [vmem:[%s3188_s28 + $0xb8] sm:$0xf]  ;;  %v1906_v19 = vrot.slane %v1904_v63, 4  ;;  %v1909_v20 = vrot.slane %v1907_v0, 5 }
  0xa2   : > { %v1881_v16 = vrot.slane %v1879_v1, 5  ;;  %v1366_v27 = vor.u32 %v1365_v10, %v1362_v9  ;;  %v1897_v46 = vrot.slane %v1896_v33, 4  ;;  %v1402_v60 = vshrl.u32 %v2571_v50, 16  ;;  %v2575_v63 = vld [vmem:[%s3188_s28 + $0xc8] sm:$0xf] }
  0xa3   : > { %v1376_v12 = vrot.slane %v1374_v62, 4  ;;  %v1405_v61 = vshll.u32 %v2571_v50, 16  ;;  %v2783_v62 = vld [vmem:[%s3188_s28 + $0x40] sm:$0xf]  ;;  %v1918_v1 = vshrl.u32 %v2779_v52, 16  ;;  %v1923_v22 = vrot.slane %v1921_v2, 5 }
  0xa4   : > { %v1882_v31 = vor.u32 %v1881_v16, %v1878_v15  ;;  %v1367_v40 = vrot.slane %v1366_v27, 4  ;;  %v1946_v9 = vshrl.u32 %v2783_v62, 16  ;;  %v1949_v10 = vshll.u32 %v2783_v62, 16  ;;  %v2572_v15 = vld [vmem:[%s3188_s28 + $0xbc] sm:$0x1] }
  0xa5   : > { %v1380_v29 = vor.u32 %v1379_v13, %v1376_v12  ;;  %v1404_v16 = vrot.slane %v1402_v60, 4  ;;  %v1407_v17 = vrot.slane %v1405_v61, 5  ;;  %v1920_v21 = vrot.slane %v1918_v1, 4  ;;  %v2573_v60 = vld [vmem:[%s3188_s28 + $0xc0] sm:$0xf] }
  0xa6   : > { %v1883_v44 = vrot.slane %v1882_v31, 4  ;;  %v1948_v31 = vrot.slane %v1946_v9, 4  ;;  %v1951_v32 = vrot.slane %v1949_v10, 5  ;;  %v1397_v33 = vshll.u32 %v2570_v14, 16 }
  0xa7   : > { %v1381_v42 = vrot.slane %v1380_v29, 4  ;;  %v1394_v29 = vor.u32 %v1393_v8, %v1390_v7  ;;  %v1430_v7 = vshrl.u32 %v2575_v63, 16  ;;  %v1433_v8 = vshll.u32 %v2575_v63, 16 }
  0xa8   : > { %v1888_v58 = vsel %vm3220_vm2, %v1883_v44, %v1887_v45  ;;  %v2914_v44 = vld [vmem:[%s3188_s28 + $0x84] sm:$0xf0]  ;;  %v1952_v48 = vor.u32 %v1951_v32, %v1948_v31  ;;  %v1399_v50 = vrot.slane %v1397_v33, 5 }
  0xa9   : > { %v1386_v54 = vsel %vm3220_vm2, %v1381_v42, %v1385_v43  ;;  %v1978_v12 = vunpack.c.l.b16 %v1888_v58  ;;  %v2664_v42 = vor.u32 %v2902_v28, %v2663_v23  ;;  %v2735_v43 = vld [vmem:[%s3188_s28 + $0x80] sm:$0xf] }
  0xaa   : > { %v1463_v4 = vunpack.c.l.b16 %v1386_v54  ;;  %v2736_v54 = vor.u32 %v2914_v44, %v2735_v43  ;;  %v1953_v61 = vrot.slane %v1952_v48, 4 }
  0xae   : > { %790 = vmatmul.bf16.gmra.mxu1 %v2336_v34  ;;  %1301 = vmatmul.bf16.gmra.mxu0 %v2528_v37  ;;  %v1899_v34 = vshll.u32 %v2776_v24, 16  ;;  %v2660_v37 = vor.u32 %v2901_v26, %v2659_v25  ;;  %v2780_v24 = vld [vmem:[%s3188_s28 + $0x34] sm:$0x1]  ;;  %v1934_v25 = vrot.slane %v1932_v5, 4  ;;  %v1937_v26 = vrot.slane %v1935_v6, 5 }
  0xaf   : > { %v1419_v6 = vshll.u32 %v2573_v60, 16 }
  0xb0   : > { %1807 = vmatmul.bf16.gmra.mxu3 %v2728_v53  ;;  %v1901_v47 = vrot.slane %v1899_v34, 5  ;;  %v1372_v53 = vsel %vm3220_vm2, %v1367_v40, %v1371_v41  ;;  %v1408_v34 = vor.u32 %v1407_v17, %v1404_v16  ;;  %v1924_v40 = vor.u32 %v1923_v22, %v1920_v21  ;;  %v2576_v22 = vld [vmem:[%s3188_s28 + $0xcc] sm:$0x1] }
  0xb1   : > { %1672 = vmatmul.bf16.gmra.mxu2 %v2656_v38  ;;  %v2731_v38 = vld [vmem:[%s3188_s28 + $0x70] sm:$0xf]  ;;  %v1462_v3 = vunpack.c.l.b16 %v1372_v53  ;;  %v1927_v41 = vshll.u32 %v2780_v24, 16  ;;  %v1938_v45 = vor.u32 %v1937_v26, %v1934_v25  ;;  %v1435_v21 = vrot.slane %v1433_v8, 5 }
  0xb2   : > { %v2732_v49 = vor.u32 %v2913_v39, %v2731_v38  ;;  %v1902_v59 = vsel %vm3220_vm2, %v1897_v46, %v1901_v47  ;;  %v1910_v39 = vor.u32 %v1909_v20, %v1906_v19  ;;  %v1941_v46 = vshll.u32 %v2782_v30, 16 }
  0xb3   : > { %v1979_v13 = vunpack.c.l.b16 %v1902_v59  ;;  %v1469_v27 = vpack.c.b16 %v1463_v4, %v1462_v3  ;;  %v1395_v47 = vrot.slane %v1394_v29, 4  ;;  %v1409_v51 = vrot.slane %v1408_v34, 4 }
  0xb4   : > { %v1911_v55 = vrot.slane %v1910_v39, 4  ;;  %v1925_v56 = vrot.slane %v1924_v40, 4  ;;  %v1929_v57 = vrot.slane %v1927_v41, 5  ;;  %v1939_v58 = vrot.slane %v1938_v45, 4 }
  0xb5   : > { %v1985_v38 = vpack.c.b16 %v1979_v13, %v1978_v12  ;;  %v1943_v59 = vrot.slane %v1941_v46, 5  ;;  %v1400_v0 = vsel %vm3220_vm2, %v1395_v47, %v1399_v50  ;;  %v1416_v4 = vshrl.u32 %v2573_v60, 16 }
  0xb6   : > { %v1930_v3 = vsel %vm3220_vm2, %v1925_v56, %v1929_v57  ;;  %v1464_v10 = vunpack.c.l.b16 %v1400_v0  ;;  %v1421_v19 = vrot.slane %v1419_v6, 5  ;;  %v1432_v20 = vrot.slane %v1430_v7, 4 }
  0xb7   : > { %v1944_v5 = vsel %vm3220_vm2, %v1939_v58, %v1943_v59  ;;  %v1981_v14 = vunpack.c.l.b16 %v1930_v3  ;;  %v1418_v16 = vrot.slane %v1416_v4, 4  ;;  %v1439_v31 = vshll.u32 %v2576_v22, 16 }
  0xb8   : > { %v1436_v30 = vor.u32 %v1435_v21, %v1432_v20 }
  0xb9   : > { %v1422_v29 = vor.u32 %v1421_v19, %v1418_v16 }
  0xba   : > { %v1437_v34 = vrot.slane %v1436_v30, 4 }
  0xbb   : > { %v1423_v32 = vrot.slane %v1422_v29, 4 }
  0xbe   : > { %1532 = vmatmul.bf16.vlgmr.msra.gmra.mxu1 %v1468_v35  ;;  %2048 = vmatmul.bf16.vlgmr.msra.gmra.mxu0 %v1984_v36  ;;  %v1411_v35 = vshll.u32 %v2572_v15, 16  ;;  %v1913_v36 = vshll.u32 %v2778_v18, 16  ;;  %v1982_v15 = vunpack.c.l.b16 %v1944_v5  ;;  %v2574_v18 = vld [vmem:[%s3188_s28 + $0xc4] sm:$0x1] }
  0xbf   : > { %v1425_v25 = vshll.u32 %v2574_v18, 16 }
  0xc0   : > { %1812 = vmatmul.bf16.gmra.mxu3 %v2732_v49  ;;  %v1413_v52 = vrot.slane %v1411_v35, 5  ;;  %v1915_v53 = vrot.slane %v1913_v36, 5  ;;  %v1441_v35 = vrot.slane %v1439_v31, 5 }
  0xc1   : > { %1677 = vmatmul.bf16.gmra.mxu2 %v2660_v37  ;;  %v2784_v37 = vld [vmem:[%s3188_s28 + $0x44] sm:$0x1]  ;;  %v1427_v33 = vrot.slane %v1425_v25, 5  ;;  %s2247_s28 = sshll.u32 %s3062_s18, 3  ;;  %s3607_s18 = smov (!%p538_p9, %s3062_s18), 1 }
  0xc2   : > { %v1955_v49 = vshll.u32 %v2784_v37, 16  ;;  %v1414_v1 = vsel %vm3220_vm2, %v1409_v51, %v1413_v52  ;;  %v1916_v2 = vsel %vm3220_vm2, %v1911_v55, %v1915_v53  ;;  %v1442_v40 = vsel %vm3220_vm2, %v1437_v34, %v1441_v35  ;;  %p533_p8 = scmp.lt.s32.totalorder %s2247_s28, 15  ;;  %s540_s9 = scalar_lea.vmem %s3597_s3, %s3607_s18 }
  0xc3   : > { %v1465_v12 = vunpack.c.l.b16 %v1414_v1  ;;  %v1980_v13 = vunpack.c.l.b16 %v1916_v2  ;;  %v1428_v39 = vsel %vm3220_vm2, %v1423_v32, %v1427_v33  ;;  %v1467_v43 = vunpack.c.l.b16 %v1442_v40  ;;  %s543_s12 = scalar_lea.vmem %s3598_s4, %s3607_s18 }
  0xc4   : > { %v1957_v62 = vrot.slane %v1955_v49, 5  ;;  %s3605_s28 = smov (!%p533_p8, %s2247_s28), 15 }
  0xc5   : > { %v1470_v23 = vpack.c.b16 %v1465_v12, %v1464_v10  ;;  %v1986_v24 = vpack.c.b16 %v1981_v14, %v1980_v13  ;;  %s2248_s29 = sshll.u32 %s3605_s28, 2 }
  0xc6   : > { %v1958_v9 = vsel %vm3220_vm2, %v1953_v61, %v1957_v62  ;;  %s3558_s6 = scalar_lea.vmem %s3596_s2, %s2248_s29 }
  0xc7   : > { %v1983_v17 = vunpack.c.l.b16 %v1958_v9 }
  0xc9   : > { %v1987_v28 = vpack.c.b16 %v1983_v17, %v1982_v15 }
  0xce   : > { %1537 = vmatmul.bf16.gmra.mxu1 %v1469_v27  ;;  %2053 = vmatmul.bf16.gmra.mxu0 %v1985_v38 }
  0xd0   : > { %1817 = vmatmul.bf16.gmra.mxu3 %v2736_v54 }
  0xd1   : > { %1682 = vmatmul.bf16.gmra.mxu2 %v2664_v42  ;;  %v1466_v42 = vunpack.c.l.b16 %v1428_v39 }
  0xd3   : > { %v1471_v44 = vpack.c.b16 %v1467_v43, %v1466_v42 }
  0xdb   : > { %v685_v26 = vpop.f32.mrf.mxu1  ;;  %v675_v27 = vpop.f32.mrf.mxu0 }
  0xde   : > { %1542 = vmatmul.bf16.gmra.mxu1 %v1470_v23  ;;  %2058 = vmatmul.bf16.gmra.mxu0 %v1986_v24 }
  0xe1   : > { %2063 = vmatmul.bf16.vlgmr.msra.gmra.mxu2 %v1987_v28 }
  0xe3   : > { %v687_v37 = vpop.f32.mrf.mxu1  ;;  %v677_v38 = vpop.f32.mrf.mxu0 }
  0xe4   : > { %v1017_v36 = vpop.f32.mrf.mxu2  ;;  %v1152_v41 = vpop.f32.mrf.mxu3 }
  0xeb   : > { %v690_v46 = vpop.f32.mrf.mxu1  ;;  %v680_v47 = vpop.f32.mrf.mxu0 }
  0xec   : > { %v1019_v45 = vpop.f32.mrf.mxu2  ;;  %v3527_v48 = vpop.f32.mrf.mxu3 }
  0xee   : > { %1547 = vmatmul.bf16.gmra.mxu1 %v1471_v44 }
  0xf3   : > { %v692_v50 = vpop.f32.mrf.mxu1  ;;  %v682_v51 = vpop.f32.mrf.mxu0 }
  0xf4   : > { %v1022_v49 = vpop.f32.mrf.mxu2  ;;  %v1157_v52 = vpop.f32.mrf.mxu3 }
  0xfb   : > { %v776_v54 = vpop.f32.mrf.mxu1  ;;  %v1287_v55 = vpop.f32.mrf.mxu0 }
  0xfc   : > { %v1024_v53 = vpop.f32.mrf.mxu2  ;;  %v777_v56 = vadd.f32 %v776_v54, %v675_v27  ;;  %v3529_v57 = vpop.f32.mrf.mxu3 }
  0xfe   : > { %v1037_v11 = vadd.f32 %v1017_v36, %v777_v56 }
 0x100   : > { %v1172_v58 = vadd.f32 %v1152_v41, %v1037_v11 }
 0x102   : > { %v1307_v59 = vadd.f32 %v1287_v55, %v1172_v58 }
 0x103   : > { %v778_v61 = vpop.f32.mrf.mxu1  ;;  %v1289_v62 = vpop.f32.mrf.mxu0 }
 0x104   : > { %v1027_v60 = vpop.f32.mrf.mxu2  ;;  %v779_v63 = vadd.f32 %v778_v61, %v677_v38  ;;  %v1162_v1 = vpop.f32.mrf.mxu3 }
 0x106   : > { %v1038_v0 = vadd.f32 %v1019_v45, %v779_v63 }
 0x10b   : > { %v781_v3 = vpop.f32.mrf.mxu1  ;;  %v1292_v4 = vpop.f32.mrf.mxu0 }
 0x10c   : > { %v1029_v2 = vpop.f32.mrf.mxu2  ;;  %v782_v5 = vadd.f32 %v781_v3, %v680_v47  ;;  %v3531_v10 = vpop.f32.mrf.mxu3  ;;  %v1173_v47 = vadd.f32 %v3527_v48, %v1038_v0 }
 0x10e   : > { %v1039_v6 = vadd.f32 %v1022_v49, %v782_v5 }
 0x110   : > { %v1174_v7 = vadd.f32 %v1157_v52, %v1039_v6 }
 0x112   : > { %v1309_v8 = vadd.f32 %v1292_v4, %v1174_v7 }
 0x113   : > { %v783_v12 = vpop.f32.mrf.mxu1  ;;  %v3533_v13 = vpop.f32.mrf.mxu0 }
 0x114   : > { %v1032_v9 = vpop.f32.mrf.mxu2  ;;  %v784_v14 = vadd.f32 %v783_v12, %v682_v51  ;;  %v3535_v20 = vpop.f32.mrf.mxu3 }
 0x116   : > { %v1040_v15 = vadd.f32 %v1024_v53, %v784_v14 }
 0x11b   : > { %v786_v17 = vpop.f32.mrf.mxu1  ;;  %v1297_v18 = vpop.f32.mrf.mxu0 }
 0x11c   : > { %v1034_v16 = vpop.f32.mrf.mxu2  ;;  %v787_v19 = vadd.f32 %v786_v17, %v685_v26  ;;  %v3543_v30 = vpop.f32.mrf.mxu3 }
 0x11e   : > { %v1041_v21 = vadd.f32 %v1027_v60, %v787_v19 }
 0x120   : > { %v1176_v22 = vadd.f32 %v1162_v1, %v1041_v21 }
 0x122   : > { %v3537_v23 = vadd.f32 %v1297_v18, %v1176_v22 }
 0x123   : > { %v788_v25 = vpop.f32.mrf.mxu1  ;;  %v3539_v27 = vpop.f32.mrf.mxu0 }
 0x124   : > { %v1668_v24 = vpop.f32.mrf.mxu2  ;;  %v789_v28 = vadd.f32 %v788_v25, %v687_v37  ;;  %v1803_v35 = vpop.f32.mrf.mxu3 }
 0x126   : > { %v3541_v29 = vadd.f32 %v1029_v2, %v789_v28  ;;  %v1175_v2 = vadd.f32 %v3529_v57, %v1040_v15 }
 0x12b   : > { %v791_v32 = vpop.f32.mrf.mxu1  ;;  %v3545_v33 = vpop.f32.mrf.mxu0 }
 0x12c   : > { %v1670_v31 = vpop.f32.mrf.mxu2  ;;  %v792_v26 = vadd.f32 %v791_v32, %v690_v46  ;;  %v1805_v37 = vpop.f32.mrf.mxu3  ;;  %v1308_v46 = vadd.f32 %v1289_v62, %v1173_v47 }
 0x12e   : > { %v3547_v34 = vadd.f32 %v1032_v9, %v792_v26  ;;  %v1310_v9 = vadd.f32 %v3533_v13, %v1175_v2 }
 0x133   : > { %v793_v38 = vpop.f32.mrf.mxu1  ;;  %v3549_v39 = vpop.f32.mrf.mxu0 }
 0x134   : > { %v1673_v36 = vpop.f32.mrf.mxu2  ;;  %v794_v40 = vadd.f32 %v793_v38, %v692_v50  ;;  %v1808_v55 = vpop.f32.mrf.mxu3 }
 0x136   : > { %v3551_v41 = vadd.f32 %v1034_v16, %v794_v40 }
 0x13b   : > { %v1533_v42 = vpop.f32.mrf.mxu1  ;;  %v2049_v43 = vpop.f32.mrf.mxu0 }
 0x13c   : > { %v1553_v44 = vadd.f32 %v1533_v42, %v1307_v59  ;;  %v1675_v45 = vpop.f32.mrf.mxu2  ;;  %v1810_v5 = vpop.f32.mrf.mxu3 }
 0x13e   : > { %v1688_v49 = vadd.f32 %v1668_v24, %v1553_v44 }
 0x140   : > { %v1823_v51 = vadd.f32 %v1803_v35, %v1688_v49  ;;  %v1177_v35 = vadd.f32 %v3531_v10, %v3541_v29 }
 0x142   : > { %v2069_v56 = vadd.f32 %v2049_v43, %v1823_v51 }
 0x143   : > { %v1535_v52 = vpop.f32.mrf.mxu1  ;;  %v2051_v53 = vpop.f32.mrf.mxu0 }
 0x144   : > { %v1554_v54 = vadd.f32 %v1535_v52, %v1308_v46  ;;  %v1678_v11 = vpop.f32.mrf.mxu2  ;;  %v2107_v59 = vmul.f32 %v2069_v56, %v2069_v56  ;;  %v1813_v24 = vpop.f32.mrf.mxu3 }
 0x146   : > { %v1689_v50 = vadd.f32 %v1670_v31, %v1554_v54 }
 0x148   : > { %v1824_v58 = vadd.f32 %v1805_v37, %v1689_v50  ;;  %v1312_v37 = vadd.f32 %v3539_v27, %v1177_v35 }
 0x14a   : > { %v2070_v60 = vadd.f32 %v2051_v53, %v1824_v58 }
 0x14b   : > { %v1538_v48 = vpop.f32.mrf.mxu1  ;;  %v2054_v61 = vpop.f32.mrf.mxu0 }
 0x14c   : > { %v2934_v62 = vpack.c.bf16 %v2070_v60, %v2069_v56  ;;  %v2093_v63 = vadd.f32 %v2070_v60, %v2069_v56  ;;  %v2108_v0 = vmul.f32 %v2070_v60, %v2070_v60  ;;  %v1555_v1 = vadd.f32 %v1538_v48, %v1309_v8  ;;  %v1680_v7 = vpop.f32.mrf.mxu2  ;;  %v1815_v43 = vpop.f32.mrf.mxu3 }
 0x14d   : > { %v1179_v60 = vadd.f32 %v3543_v30, %v3551_v41 }
 0x14e   : > { %2935 = vst [vmem:[%s3558_s6] sm:$0xff] %v2934_v62   ;;  %v2115_v3 = vadd.f32 %v2108_v0, %v2107_v59  ;;  %v1690_v4 = vadd.f32 %v1673_v36, %v1555_v1 }
 0x150   : > { %v1825_v6 = vadd.f32 %v1808_v55, %v1690_v4 }
 0x152   : > { %v2071_v12 = vadd.f32 %v2054_v61, %v1825_v6  ;;  %v1314_v61 = vadd.f32 %v3549_v39, %v1179_v60 }
 0x153   : > { %v1540_v14 = vpop.f32.mrf.mxu1  ;;  %v2056_v16 = vpop.f32.mrf.mxu0 }
 0x154   : > { %v2094_v17 = vadd.f32 %v2093_v63, %v2071_v12  ;;  %v2109_v18 = vmul.f32 %v2071_v12, %v2071_v12  ;;  %v1556_v19 = vadd.f32 %v1540_v14, %v1310_v9  ;;  %v1683_v15 = vpop.f32.mrf.mxu2  ;;  %v1818_v58 = vpop.f32.mrf.mxu3 }
 0x156   : > { %v2116_v21 = vadd.f32 %v2115_v3, %v2109_v18  ;;  %v1691_v22 = vadd.f32 %v1675_v45, %v1556_v19 }
 0x158   : > { %v1826_v8 = vadd.f32 %v1810_v5, %v1691_v22 }
 0x15a   : > { %v2072_v57 = vadd.f32 %v2056_v16, %v1826_v8 }
 0x15b   : > { %v1543_v25 = vpop.f32.mrf.mxu1  ;;  %v2059_v13 = vpop.f32.mrf.mxu0 }
 0x15c   : > { %v2939_v28 = vpack.c.bf16 %v2072_v57, %v2071_v12  ;;  %v2095_v31 = vadd.f32 %v2094_v17, %v2072_v57  ;;  %v2110_v32 = vmul.f32 %v2072_v57, %v2072_v57  ;;  %v1557_v26 = vadd.f32 %v1543_v25, %v3537_v23  ;;  %v1685_v46 = vpop.f32.mrf.mxu2  ;;  %v1820_v4 = vpop.f32.mrf.mxu3 }
 0x15d   : > { %v1178_v23 = vadd.f32 %v3535_v20, %v3547_v34 }
 0x15e   : > { %2951 = vst [vmem:[%s3558_s6 + $0x8] sm:$0xff] %v2939_v28   ;;  %v2117_v36 = vadd.f32 %v2116_v21, %v2110_v32  ;;  %v1692_v38 = vadd.f32 %v1678_v11, %v1557_v26 }
 0x15f   : > { %v1313_v53 = vadd.f32 %v3545_v33, %v1178_v23 }
 0x160   : > { %v1827_v40 = vadd.f32 %v1813_v24, %v1692_v38 }
 0x162   : > { %v2073_v42 = vadd.f32 %v2059_v13, %v1827_v40 }
 0x163   : > { %v1545_v44 = vpop.f32.mrf.mxu1  ;;  %v2061_v10 = vpop.f32.mrf.mxu0 }
 0x164   : > { %v2096_v45 = vadd.f32 %v2095_v31, %v2073_v42  ;;  %v2111_v47 = vmul.f32 %v2073_v42, %v2073_v42  ;;  %v1558_v49 = vadd.f32 %v1545_v44, %v1312_v37  ;;  %v2064_v20 = vpop.f32.mrf.mxu2 }
 0x166   : > { %v2118_v51 = vadd.f32 %v2117_v36, %v2111_v47  ;;  %v1693_v52 = vadd.f32 %v1680_v7, %v1558_v49 }
 0x168   : > { %v1828_v29 = vadd.f32 %v1815_v43, %v1693_v52 }
 0x16a   : > { %v2074_v54 = vadd.f32 %v2061_v10, %v1828_v29 }
 0x16b   : > { %v1548_v55 = vpop.f32.mrf.mxu1 }
 0x16c   : > { %v2944_v27 = vpack.c.bf16 %v2074_v54, %v2073_v42  ;;  %v2097_v50 = vadd.f32 %v2096_v45, %v2074_v54  ;;  %v2112_v56 = vmul.f32 %v2074_v54, %v2074_v54  ;;  %v1559_v11 = vadd.f32 %v1548_v55, %v1313_v53  ;;  %v2066_v30 = vpop.f32.mrf.mxu2 }
 0x16e   : > { %2952 = vst [vmem:[%s3558_s6 + $0x10] sm:$0xff] %v2944_v27   ;;  %v2119_v59 = vadd.f32 %v2118_v51, %v2112_v56  ;;  %v1694_v48 = vadd.f32 %v1683_v15, %v1559_v11 }
 0x170   : > { %v1829_v34 = vadd.f32 %v1818_v58, %v1694_v48 }
 0x172   : > { %v2075_v62 = vadd.f32 %v2064_v20, %v1829_v34 }
 0x173   : > { %v1550_v33 = vpop.f32.mrf.mxu1 }
 0x174   : > { %v2098_v63 = vadd.f32 %v2097_v50, %v2075_v62  ;;  %v2113_v0 = vmul.f32 %v2075_v62, %v2075_v62  ;;  %v1560_v1 = vadd.f32 %v1550_v33, %v1314_v61 }
 0x176   : > { %v2120_v2 = vadd.f32 %v2119_v59, %v2113_v0  ;;  %v1695_v3 = vadd.f32 %v1685_v46, %v1560_v1 }
 0x178   : > { %v1830_v5 = vadd.f32 %v1820_v4, %v1695_v3 }
 0x17a   : > { %v2076_v41 = vadd.f32 %v2066_v30, %v1830_v5 }
 0x17c   : > { %v2949_v6 = vpack.c.bf16 %v2076_v41, %v2075_v62  ;;  %v2099_v7 = vadd.f32 %v2098_v63, %v2076_v41  ;;  %v2114_v9 = vmul.f32 %v2076_v41, %v2076_v41 }
 0x17e   : > { %2953 = vst [vmem:[%s3558_s6 + $0x18] sm:$0xff] %v2949_v6   ;;  %v2100_v12 = vrot.slane %v2099_v7, 4  ;;  %v2121_v14 = vadd.f32 %v2120_v2, %v2114_v9 }
 0x180   : > { %v2101_v39 = vadd.f32 %v2100_v12, %v2099_v7  ;;  %v2122_v16 = vrot.slane %v2121_v14, 4 }
 0x182   : > { %v2102_v17 = vrot.slane %v2101_v39, 2  ;;  %v2123_v18 = vadd.f32 %v2122_v16, %v2121_v14 }
 0x184   : > { %v2103_v19 = vadd.f32 %v2102_v17, %v2101_v39  ;;  %v2124_v21 = vrot.slane %v2123_v18, 2 }
 0x186   : > { %v2104_v22 = vrot.slane %v2103_v19, 1  ;;  %v2125_v8 = vadd.f32 %v2124_v21, %v2123_v18 }
 0x188   : > { %v2105_v24 = vadd.f32 %v2104_v22, %v2103_v19  ;;  %v2126_v57 = vrot.slane %v2125_v8, 1 }
 0x18a   : > { %2106 = vst [vmem:[%s540_s9] sm:$0x1] %v2105_v24  ;;  %v2127_v15 = vadd.f32 %v2126_v57, %v2125_v8 }
 0x18c   : > { %2128 = vst [vmem:[%s543_s12] sm:$0x1] %v2127_v15 }
 0x18d PF: > { %p12_p10 = scmp.ge.s32.totalorder %s3065_s19, 4   ;;  %s3601_s15 = smov %s3015_s16 }
 0x18e   : > { %s3602_s16 = smov %s3074_s22  ;;  %s3603_s17 = smov %s3065_s19 }
 0x18f   :  { %14 = sbr.rel (!%p12_p10) target bundleno = 2 (0x2), region = 141 }

// kernel: residual_block_forward.5
= control target key start
LH: loop header
LB: loop body
LE: loop exit
PB: predicated region body
PF: predicated region fallthrough
CT: control target
= control target key end

     0   :  { %s2387_s21 = smov 0   ;;  %s3018_s0 = inlined_call_operand.vmem [shape: bf16[1,2,10,10,128], index: 0, kind: input, shape index: {}]   ;;  %s3019_s1 = inlined_call_operand.vmem [shape: bf16[9,128,128], index: 1, kind: input, shape index: {}]   ;;  %s3020_s2 = inlined_call_operand.vmem [shape: f32[1,128], index: 2, kind: input, shape index: {}]   ;;  %s3021_s3 = inlined_call_operand.vmem [shape: f32[1,128], index: 3, kind: input, shape index: {}]   ;;  %s3022_s4 = inlined_call_operand.vmem [shape: bf16[128,128], index: 4, kind: output, shape index: {0}]   ;;  %s3023_s5 = inlined_call_operand.vmem [shape: f32[2,1,128], index: 5, kind: output, shape index: {1}]   ;;  %s3024_s6 = inlined_call_operand.vmem [shape: f32[2,1,128], index: 6, kind: output, shape index: {2}]  }
   0x1 LB: > { %s2393_s22 = sadd.s32 4294967295, %s2348_s21   ;;  %p1786_p0 = scmp.ge.s32.totalorder %s2348_s21, 1  ;;  %s2348_s21 = sphi %s2387_s21, %s17_s21  }
   0x2   : > { %p217_p1 = scmp.lt.s32.totalorder %s2348_s21, 3 }
   0x4   : > { %p218_p2 = pnand %p1786_p0, %p217_p1 }
   0x5   : > { %p253_p3 = scmp.lt.s32.totalorder (!%p218_p2), %s2393_s22, 1  ;;  %s1788_s7 = sshll.u32 (!%p218_p2), %s2393_s22, 3 }
   0x6   : > { %221 = sbr.rel (%p218_p2) target bundleno = 352 (0x160), region = 36  ;;  %p259_p4 = scmp.lt.s32.totalorder (!%p218_p2), %s1788_s7, 15 }
   0xb   : > { %v2233_v0 = vld [vmem:[%s3019_s1 + $0x78] sm:$0xff]  ;;  %v378_v1 = vlaneseq  ;;  %v2232_v3 = vld [vmem:[%s3019_s1 + $0x70] sm:$0xff]  ;;  %s2408_s29 = scalar_select %p253_p3, %s2393_s22, 1  ;;  %v2350_v4 = vmov 0   ;;  %v2231_v10 = vld [vmem:[%s3019_s1 + $0x68] sm:$0xff]  ;;  %vm783_vm4 = vcmask 1042432  }
   0xc   : > { %v2241_v2 = vld [vmem:[%s3019_s1 + $0xb8] sm:$0xff]  ;;  %2313 = vmatpush.bf16.msra.mxu1 %v2233_v0  ;;  %645 = vmatpush.bf16.msra.mxu0 %v2233_v0  ;;  %v455_v5 = vrot.slane %v2350_v4, 4  ;;  %v2240_v6 = vld [vmem:[%s3019_s1 + $0xb0] sm:$0xff]  ;;  %v458_v9 = vrot.slane %v2350_v4, 5  ;;  %vm449_vm0 = vsmask.f32 3328 }
   0xd   : > { %899 = vmatpush.bf16.msra.mxu2 %v2241_v2  ;;  %v2249_v7 = vld [vmem:[%s3019_s1 + $0xf8] sm:$0xff]  ;;  %v2416_v8 = vshrl.u32 %v378_v1, 7  ;;  %s2329_s12 = smul.u32 80, %s2408_s29  ;;  %v2248_v11 = vld [vmem:[%s3019_s1 + $0xf0] sm:$0xff]  ;;  %vm450_vm1 = vsmask.f32 7440  ;;  %s269_s15 = scalar_lea.vmem %s3024_s6, %s2408_s29 }
   0xe   : > { %1011 = vmatpush.bf16.msra.mxu3 %v2249_v7  ;;  %v459_v13 = vor.u32 %v458_v9, %v455_v5  ;;  %v2239_v14 = vld [vmem:[%s3019_s1 + $0xa8] sm:$0xff]  ;;  %v2439_v15 = vld [vmem:[%s3020_s2] ss:$0 sm:$0xff]  ;;  %vm784_vm5 = vcmask 1046532   ;;  %v2351_v28 = vmov 0.0|0.0   ;;  %vm2466_vm6 = vmor %vm449_vm0, %vm450_vm1  ;;  %s3030_s7 = smov (!%p259_p4, %s1788_s7), 15 }
   0xf   : > { %v2426_v12 = vadd.s32 8, %v2416_v8  ;;  %s2434_s19 = scalar_lea.vmem %s3018_s0, %s2329_s12  ;;  %v2448_v23 = vld [vmem:[%s3021_s3] ss:$0 sm:$0xff]  ;;  %vm381_vm2 = vcmp.ge.s32.totalorder %v2416_v8, 1  ;;  %v2247_v25 = vld [vmem:[%s3019_s1 + $0xe8] sm:$0xff]  ;;  %v2459_v29 = vrot.slane %v2351_v28, 9  ;;  %vm2542_vm7 = vmor %vm783_vm4, %vm784_vm5  ;;  %s266_s12 = scalar_lea.vmem %s3023_s5, %s2408_s29 }
  0x10   : > { %2314 = vmatpush.bf16.msra.mxu1 %v2232_v3  ;;  %646 = vmatpush.bf16.msra.mxu0 %v2232_v3  ;;  %v278_v16 = vld [vmem:[%s2434_s19 + $0x20] sm:$0xf]  ;;  %v279_v17 = vld [vmem:[%s2434_s19 + $0x24] sm:$0x1]  ;;  %v280_v18 = vld [vmem:[%s2434_s19 + $0x28] sm:$0xf] }
  0x11   : > { %900 = vmatpush.bf16.msra.mxu2 %v2240_v6  ;;  %v281_v19 = vld [vmem:[%s2434_s19 + $0x2c] sm:$0x1]  ;;  %v298_v20 = vunpack.c.l.bf16 %v278_v16  ;;  %v299_v21 = vunpack.c.l.bf16 %v279_v17  ;;  %v300_v22 = vunpack.c.l.bf16 %v280_v18  ;;  %v2230_v24 = vld [vmem:[%s3019_s1 + $0x60] sm:$0xff]  ;;  %vm388_vm3 = vcmp.lt.s32.totalorder %v2426_v12, 9  ;;  %v272_v34 = vld [vmem:[%s2434_s19 + $0x8] sm:$0xf] }
  0x12   : > { %1012 = vmatpush.bf16.msra.mxu3 %v2248_v11  ;;  %v301_v26 = vunpack.c.l.bf16 %v281_v19  ;;  %v460_v27 = vrot.slane %v459_v13, 4  ;;  %v273_v35 = vld [vmem:[%s2434_s19 + $0xc] sm:$0x1]  ;;  %v2473_v36 = vrot.slane %v2351_v28, 5  ;;  %v2238_v37 = vld [vmem:[%s3019_s1 + $0xa0] sm:$0xff]  ;;  %v292_v39 = vunpack.c.l.bf16 %v272_v34  ;;  %v2229_v53 = vld [vmem:[%s3019_s1 + $0x58] sm:$0xff] }
  0x13   : > { %v322_v30 = vmul.f32 %v2439_v15, %v298_v20  ;;  %v323_v31 = vmul.f32 %v2439_v15, %v299_v21  ;;  %v324_v32 = vmul.f32 %v2439_v15, %v300_v22  ;;  %v293_v40 = vunpack.c.l.bf16 %v273_v35  ;;  %v286_v46 = vld [vmem:[%s2434_s19 + $0x40] sm:$0xf]  ;;  %v287_v47 = vld [vmem:[%s2434_s19 + $0x44] sm:$0x1]  ;;  %v2237_v58 = vld [vmem:[%s3019_s1 + $0x98] sm:$0xff]  ;;  %s1789_s8 = sshll.u32 %s3030_s7, 2 }
  0x14   : > { %2315 = vmatpush.bf16.msra.mxu1 %v2231_v10  ;;  %647 = vmatpush.bf16.msra.mxu0 %v2231_v10  ;;  %v325_v38 = vmul.f32 %v2439_v15, %v301_v26  ;;  %v465_v41 = vsel %vm2466_vm6, %v460_v27, %v458_v9  ;;  %v2246_v49 = vld [vmem:[%s3019_s1 + $0xe0] sm:$0xff]  ;;  %v316_v50 = vmul.f32 %v2439_v15, %v292_v39  ;;  %v306_v52 = vunpack.c.l.bf16 %v286_v46  ;;  %v2245_v7 = vld [vmem:[%s3019_s1 + $0xd8] sm:$0xff]  ;;  %v2228_v9 = vld [vmem:[%s3019_s1 + $0x50] sm:$0xff]  ;;  %s2991_s9 = scalar_lea.vmem %s3022_s4, %s1789_s8 }
  0x15   : > { %901 = vmatpush.bf16.msra.mxu2 %v2239_v14  ;;  %v346_v42 = vadd.f32 %v2448_v23, %v322_v30  ;;  %v347_v43 = vadd.f32 %v2448_v23, %v323_v31  ;;  %v348_v44 = vadd.f32 %v2448_v23, %v324_v32  ;;  %v2484_v45 = vunpack.c.l.b16 %v465_v41  ;;  %v2236_v16 = vld [vmem:[%s3019_s1 + $0x90] sm:$0xff]  ;;  %v2227_v35 = vld [vmem:[%s3019_s1 + $0x48] sm:$0xff]  ;;  %v2270_v12 = vld [vmem:[%s3019_s1 + $0x1a0] sm:$0xff] }
  0x16   : > { %1013 = vmatpush.bf16.msra.mxu3 %v2247_v25  ;;  %v349_v48 = vadd.f32 %v2448_v23, %v325_v38  ;;  %v317_v51 = vmul.f32 %v2439_v15, %v293_v40  ;;  %v307_v57 = vunpack.c.l.bf16 %v287_v47  ;;  %v340_v60 = vadd.f32 %v2448_v23, %v316_v50  ;;  %v2244_v34 = vld [vmem:[%s3019_s1 + $0xd0] sm:$0xff] }
  0x17   : > { %v366_v54 = vmax.f32 %v346_v42, 0.0  ;;  %v367_v55 = vmax.f32 %v347_v43, 0.0  ;;  %v368_v56 = vmax.f32 %v348_v44, 0.0  ;;  %v330_v62 = vmul.f32 %v2439_v15, %v306_v52  ;;  %v2235_v42 = vld [vmem:[%s3019_s1 + $0x88] sm:$0xff]  ;;  %v2280_v8 = vld [vmem:[%s3019_s1 + $0x1f0] sm:$0xff] }
  0x18   : > { %2316 = vmatpush.bf16.msra.mxu1 %v2230_v24  ;;  %648 = vmatpush.bf16.msra.mxu0 %v2230_v24  ;;  %v369_v59 = vmax.f32 %v349_v48, 0.0  ;;  %v341_v61 = vadd.f32 %v2448_v23, %v317_v51  ;;  %v331_v2 = vmul.f32 %v2439_v15, %v307_v57  ;;  %v360_v11 = vmax.f32 %v340_v60, 0.0  ;;  %v2284_v33 = vld [vmem:[%s3019_s1 + $0x210] sm:$0xff] }
  0x19   : > { %902 = vmatpush.bf16.msra.mxu2 %v2238_v37  ;;  %v401_v63 = vsel %vm381_vm2, %v366_v54, 0.0  ;;  %v402_v0 = vsel %vm388_vm3, %v367_v55, 0.0  ;;  %v403_v1 = vsel %vm381_vm2, %v368_v56, 0.0  ;;  %v354_v14 = vadd.f32 %v2448_v23, %v330_v62  ;;  %v2243_v55 = vld [vmem:[%s3019_s1 + $0xc8] sm:$0xff]  ;;  %v2225_v56 = vld [vmem:[%s3019_s1 + $0x38] sm:$0xff] }
  0x1a   : > { %v404_v3 = vsel %vm388_vm3, %v369_v59, 0.0  ;;  %v2512_v4 = vpack.c.bf16 %v401_v63, %v401_v63  ;;  %v2514_v5 = vpack.c.bf16 %v402_v0, %v402_v0  ;;  %v2516_v6 = vpack.c.bf16 %v403_v1, %v403_v1  ;;  %1014 = vmatpush.bf16.msra.mxu3 %v2246_v49  ;;  %v2257_v62 = vld [vmem:[%s3019_s1 + $0x138] sm:$0xff] }
  0x1b   : > { %v2524_v10 = vpack.c.bf16 %v404_v3, %v404_v3  ;;  %v361_v13 = vmax.f32 %v341_v61, 0.0  ;;  %v395_v24 = vsel %vm381_vm2, %v360_v11, 0.0  ;;  %v355_v43 = vadd.f32 %v2448_v23, %v331_v2  ;;  %v2234_v61 = vld [vmem:[%s3019_s1 + $0x80] sm:$0xff]  ;;  %v282_v2 = vld [vmem:[%s2434_s19 + $0x30] sm:$0xf] }
  0x1c   : > { %2317 = vmatpush.bf16.msra.mxu1 %v2229_v53  ;;  %649 = vmatpush.bf16.msra.mxu0 %v2229_v53  ;;  %v509_v17 = vshrl.u32 %v2512_v4, 16  ;;  %v512_v18 = vshll.u32 %v2512_v4, 16  ;;  %v518_v19 = vshll.u32 %v2514_v5, 16  ;;  %v523_v20 = vshrl.u32 %v2516_v6, 16 }
  0x1d   : > { %903 = vmatpush.bf16.msra.mxu2 %v2237_v58  ;;  %v526_v21 = vshll.u32 %v2516_v6, 16  ;;  %v532_v22 = vshll.u32 %v2524_v10, 16  ;;  %v396_v25 = vsel %vm388_vm3, %v361_v13, 0.0  ;;  %v2552_v39 = vpack.c.bf16 %v395_v24, %v395_v24  ;;  %v283_v13 = vld [vmem:[%s2434_s19 + $0x34] sm:$0x1] }
  0x1e   : > { %v511_v27 = vrot.slane %v509_v17, 4  ;;  %v514_v30 = vrot.slane %v512_v18, 5  ;;  %v520_v31 = vrot.slane %v518_v19, 5  ;;  %v525_v32 = vrot.slane %v523_v20, 4  ;;  %1015 = vmatpush.bf16.msra.mxu3 %v2245_v7 }
  0x1f   : > { %v528_v37 = vrot.slane %v526_v21, 5  ;;  %v534_v38 = vrot.slane %v532_v22, 5  ;;  %v416_v40 = vpack.c.bf16 %v396_v25, %v396_v25  ;;  %v374_v44 = vmax.f32 %v354_v14, 0.0  ;;  %v284_v14 = vld [vmem:[%s2434_s19 + $0x38] sm:$0xf] }
  0x20   : > { %2318 = vmatpush.bf16.msra.mxu1 %v2228_v9  ;;  %650 = vmatpush.bf16.msra.mxu0 %v2228_v9  ;;  %v515_v41 = vor.u32 %v514_v30, %v511_v27  ;;  %v789_v46 = vsel %vm2542_vm7, %v2459_v29, %v2473_v36  ;;  %v467_v48 = vshrl.u32 %v2552_v39, 16  ;;  %v470_v49 = vshll.u32 %v2552_v39, 16  ;;  %v2226_v29 = vld [vmem:[%s3019_s1 + $0x40] sm:$0xff]  ;;  %v2273_v21 = vld [vmem:[%s3019_s1 + $0x1b8] sm:$0xff] }
  0x21   : > { %904 = vmatpush.bf16.msra.mxu2 %v2236_v16  ;;  %v529_v47 = vor.u32 %v528_v37, %v525_v32  ;;  %v476_v50 = vshll.u32 %v416_v40, 16  ;;  %v375_v52 = vmax.f32 %v355_v43, 0.0  ;;  %v409_v53 = vsel %vm381_vm2, %v374_v44, 0.0  ;;  %v285_v16 = vld [vmem:[%s2434_s19 + $0x3c] sm:$0x1]  ;;  %v2242_v30 = vld [vmem:[%s3019_s1 + $0xc0] sm:$0xff] }
  0x22   : > { %v516_v51 = vrot.slane %v515_v41, 4  ;;  %v1871_v54 = vrot.slane %v2552_v39, 9  ;;  %1016 = vmatpush.bf16.msra.mxu3 %v2244_v34  ;;  %v469_v57 = vrot.slane %v467_v48, 4  ;;  %v472_v58 = vrot.slane %v470_v49, 5  ;;  %v2224_v32 = vld [vmem:[%s3019_s1 + $0x30] sm:$0xff] }
  0x23   : > { %v530_v36 = vrot.slane %v529_v47, 4  ;;  %v478_v59 = vrot.slane %v476_v50, 5  ;;  %v410_v63 = vsel %vm388_vm3, %v375_v52, 0.0  ;;  %v2586_v0 = vpack.c.bf16 %v409_v53, %v409_v53  ;;  %v2256_v44 = vld [vmem:[%s3019_s1 + $0x130] sm:$0xff]  ;;  %v276_v47 = vld [vmem:[%s2434_s19 + $0x18] sm:$0xf] }
  0x24   : > { %2319 = vmatpush.bf16.msra.mxu1 %v2227_v35  ;;  %651 = vmatpush.bf16.msra.mxu0 %v2227_v35  ;;  %v521_v60 = vsel %vm2466_vm6, %v516_v51, %v520_v31  ;;  %v792_v1 = vrot.slane %v416_v40, 5  ;;  %v473_v9 = vor.u32 %v472_v58, %v469_v57  ;;  %v2593_v11 = vpack.c.bf16 %v410_v63, %v410_v63  ;;  %v275_v40 = vld [vmem:[%s2434_s19 + $0x14] sm:$0x1]  ;;  %v277_v52 = vld [vmem:[%s2434_s19 + $0x1c] sm:$0x1]  ;;  %v2223_v58 = vld [vmem:[%s3019_s1 + $0x28] sm:$0xff] }
  0x25   : > { %905 = vmatpush.bf16.msra.mxu2 %v2235_v42  ;;  %v535_v3 = vsel %vm2466_vm6, %v530_v36, %v534_v38  ;;  %v2591_v7 = vunpack.c.l.b16 %v521_v60  ;;  %v835_v19 = vunpack.c.l.b16 %v789_v46  ;;  %v2022_v20 = vrot.slane %v2586_v0, 9  ;;  %v274_v38 = vld [vmem:[%s2434_s19 + $0x10] sm:$0xf] }
  0x26   : > { %v2598_v17 = vunpack.c.l.b16 %v535_v3  ;;  %v2602_v18 = vsel %vm2542_vm7, %v1871_v54, %v792_v1  ;;  %1017 = vmatpush.bf16.msra.mxu3 %v2243_v55  ;;  %v474_v22 = vrot.slane %v473_v9, 4  ;;  %v1176_v25 = vrot.slane %v2593_v11, 5  ;;  %v2272_v53 = vld [vmem:[%s3019_s1 + $0x1b0] sm:$0xff]  ;;  %v2281_v54 = vld [vmem:[%s3019_s1 + $0x1f8] sm:$0xff] }
  0x27   : > { %v836_v24 = vunpack.c.l.b16 %v2602_v18  ;;  %v302_v27 = vunpack.c.l.bf16 %v282_v2  ;;  %v303_v34 = vunpack.c.l.bf16 %v283_v13  ;;  %v304_v35 = vunpack.c.l.bf16 %v284_v14 }
  0x28   : > { %2320 = vmatpush.bf16.msra.mxu1 %v2226_v29  ;;  %652 = vmatpush.bf16.msra.mxu0 %v2226_v29  ;;  %v2615_v31 = vpack.c.b16 %v2598_v17, %v2591_v7  ;;  %v305_v37 = vunpack.c.l.bf16 %v285_v16  ;;  %v479_v41 = vsel %vm2466_vm6, %v474_v22, %v478_v59  ;;  %v2628_v43 = vsel %vm2542_vm7, %v2022_v20, %v1176_v25  ;;  %v2222_v25 = vld [vmem:[%s3019_s1 + $0x20] sm:$0xff] }
  0x29   : > { %906 = vmatpush.bf16.msra.mxu2 %v2234_v61  ;;  %v843_v42 = vpack.c.b16 %v836_v24, %v835_v19  ;;  %v326_v46 = vmul.f32 %v2439_v15, %v302_v27  ;;  %v2636_v48 = vunpack.c.l.b16 %v479_v41  ;;  %v1195_v49 = vunpack.c.l.b16 %v2628_v43 }
  0x2a   : > { %v327_v50 = vmul.f32 %v2439_v15, %v303_v34  ;;  %v328_v51 = vmul.f32 %v2439_v15, %v304_v35  ;;  %v329_v55 = vmul.f32 %v2439_v15, %v305_v37  ;;  %1018 = vmatpush.bf16.msra.mxu3 %v2242_v30  ;;  %v294_v36 = vunpack.c.l.bf16 %v274_v38  ;;  %v2271_v35 = vld [vmem:[%s3019_s1 + $0x1a8] sm:$0xff] }
  0x2b   : > { %663 = vmatmul.bf16.vlgmr.msra.gmra.mxu1 %v2615_v31  ;;  %v350_v29 = vadd.f32 %v2448_v23, %v326_v46  ;;  %v589_v57 = vpack.c.b16 %v2636_v48, %v2484_v45  ;;  %v2657_v59 = vpack.c.b16 %v835_v19, %v1195_v49  ;;  %v296_v2 = vunpack.c.l.bf16 %v276_v47 }
  0x2c   : > { %746 = vmatpush.bf16.msrb.mxu1 %v2225_v56  ;;  %1136 = vmatpush.bf16.msrb.mxu0 %v2257_v62  ;;  %v295_v56 = vunpack.c.l.bf16 %v275_v40  ;;  %v351_v60 = vadd.f32 %v2448_v23, %v327_v50  ;;  %v352_v61 = vadd.f32 %v2448_v23, %v328_v51  ;;  %v2255_v62 = vld [vmem:[%s3019_s1 + $0x128] sm:$0xff]  ;;  %v353_v63 = vadd.f32 %v2448_v23, %v329_v55  ;;  %v2254_v40 = vld [vmem:[%s3019_s1 + $0x120] sm:$0xff] }
  0x2d   : > { %1358 = vmatpush.bf16.msrb.mxu2 %v2273_v21  ;;  %v370_v1 = vmax.f32 %v350_v29, 0.0  ;;  %v297_v3 = vunpack.c.l.bf16 %v277_v52  ;;  %653 = vmatmul.bf16.vlgmr.msra.gmra.mxu0 %v589_v57  ;;  %v318_v14 = vmul.f32 %v2439_v15, %v294_v36  ;;  %v320_v21 = vmul.f32 %v2439_v15, %v296_v2  ;;  %v2221_v36 = vld [vmem:[%s3019_s1 + $0x18] sm:$0xff] }
  0x2e   : > { %907 = vmatmul.bf16.vlgmr.msra.gmra.mxu2 %v843_v42  ;;  %1477 = vmatpush.bf16.msrb.mxu3 %v2281_v54  ;;  %v371_v9 = vmax.f32 %v351_v60, 0.0  ;;  %v372_v13 = vmax.f32 %v352_v61, 0.0  ;;  %v319_v16 = vmul.f32 %v2439_v15, %v295_v56  ;;  %v373_v19 = vmax.f32 %v353_v63, 0.0 }
  0x2f   : > { %v405_v20 = vsel %vm381_vm2, %v370_v1, 0.0  ;;  %v321_v22 = vmul.f32 %v2439_v15, %v297_v3  ;;  %v342_v34 = vadd.f32 %v2448_v23, %v318_v14  ;;  %v344_v47 = vadd.f32 %v2448_v23, %v320_v21 }
  0x30   : > { %747 = vmatpush.bf16.msrb.mxu1 %v2224_v32  ;;  %1137 = vmatpush.bf16.msrb.mxu0 %v2256_v44  ;;  %v406_v27 = vsel %vm388_vm3, %v371_v9, 0.0  ;;  %v407_v30 = vsel %vm381_vm2, %v372_v13, 0.0  ;;  %v2678_v32 = vpack.c.bf16 %v405_v20, %v405_v20  ;;  %v408_v15 = vsel %vm388_vm3, %v373_v19, 0.0  ;;  %v2220_v19 = vld [vmem:[%s3019_s1 + $0x10] sm:$0xff] }
  0x31   : > { %1359 = vmatpush.bf16.msrb.mxu2 %v2272_v53  ;;  %v2686_v37 = vpack.c.bf16 %v406_v27, %v406_v27  ;;  %v2688_v38 = vpack.c.bf16 %v407_v30, %v407_v30  ;;  %v343_v41 = vadd.f32 %v2448_v23, %v319_v16  ;;  %v2694_v42 = vpack.c.bf16 %v408_v15, %v408_v15 }
  0x32   : > { %v537_v44 = vshrl.u32 %v2678_v32, 16  ;;  %v540_v46 = vshll.u32 %v2678_v32, 16  ;;  %v345_v53 = vadd.f32 %v2448_v23, %v321_v22  ;;  %v362_v56 = vmax.f32 %v342_v34, 0.0  ;;  %1478 = vmatpush.bf16.msrb.mxu3 %v2280_v8 }
  0x33   : > { %v546_v50 = vshll.u32 %v2686_v37, 16  ;;  %v551_v51 = vshrl.u32 %v2688_v38, 16  ;;  %v554_v52 = vshll.u32 %v2688_v38, 16  ;;  %v560_v29 = vshll.u32 %v2694_v42, 16 }
  0x34   : > { %748 = vmatpush.bf16.msrb.mxu1 %v2223_v58  ;;  %1138 = vmatpush.bf16.msrb.mxu0 %v2255_v62  ;;  %v539_v54 = vrot.slane %v537_v44, 4  ;;  %v542_v55 = vrot.slane %v540_v46, 5  ;;  %v363_v61 = vmax.f32 %v343_v41, 0.0  ;;  %v2253_v62 = vld [vmem:[%s3019_s1 + $0x118] sm:$0xff]  ;;  %v364_v1 = vmax.f32 %v344_v47, 0.0 }
  0x35   : > { %1360 = vmatpush.bf16.msrb.mxu2 %v2271_v35  ;;  %v548_v57 = vrot.slane %v546_v50, 5  ;;  %v553_v58 = vrot.slane %v551_v51, 4  ;;  %v556_v60 = vrot.slane %v554_v52, 5  ;;  %v562_v63 = vrot.slane %v560_v29, 5  ;;  %v2252_v35 = vld [vmem:[%s3019_s1 + $0x110] sm:$0xff]  ;;  %v2279_v29 = vld [vmem:[%s3019_s1 + $0x1e8] sm:$0xff] }
  0x36   : > { %v543_v23 = vor.u32 %v542_v55, %v539_v54  ;;  %v365_v2 = vmax.f32 %v345_v53, 0.0  ;;  %v397_v9 = vsel %vm381_vm2, %v362_v56, 0.0  ;;  %v398_v13 = vsel %vm388_vm3, %v363_v61, 0.0  ;;  %v2251_v61 = vld [vmem:[%s3019_s1 + $0x108] sm:$0xff]  ;;  %1479 = vmatpush.bf16.msrb.mxu3 %v2279_v29 }
  0x37   : > { %v557_v3 = vor.u32 %v556_v60, %v553_v58  ;;  %v683_v14 = vunpack.c.l.b16 %v2552_v39  ;;  %v399_v20 = vsel %vm381_vm2, %v364_v1, 0.0  ;;  %v2722_v22 = vpack.c.bf16 %v397_v9, %v397_v9  ;;  %v2219_v60 = vld [vmem:[%s3019_s1 + $0x8] sm:$0xff] }
  0x38   : > { %749 = vmatpush.bf16.msrb.mxu1 %v2222_v25  ;;  %1139 = vmatpush.bf16.msrb.mxu0 %v2254_v40  ;;  %v544_v16 = vrot.slane %v543_v23, 4  ;;  %v400_v21 = vsel %vm388_vm3, %v365_v2, 0.0  ;;  %v418_v27 = vpack.c.bf16 %v398_v13, %v398_v13  ;;  %v2724_v30 = vpack.c.bf16 %v399_v20, %v399_v20  ;;  %v2269_v20 = vld [vmem:[%s3019_s1 + $0x198] sm:$0xff]  ;;  %v2267_v39 = vld [vmem:[%s3019_s1 + $0x188] sm:$0xff] }
  0x39   : > { %v558_v25 = vrot.slane %v557_v3, 4  ;;  %v420_v34 = vpack.c.bf16 %v400_v21, %v400_v21  ;;  %v481_v40 = vshrl.u32 %v2722_v22, 16  ;;  %v484_v41 = vshll.u32 %v2722_v22, 16  ;;  %1361 = vmatpush.bf16.msrb.mxu2 %v2270_v12 }
  0x3a   : > { %v549_v15 = vsel %vm2466_vm6, %v544_v16, %v548_v57  ;;  %v684_v44 = vunpack.c.l.b16 %v2722_v22  ;;  %v490_v50 = vshll.u32 %v418_v27, 16  ;;  %v495_v51 = vshrl.u32 %v2724_v30, 16 }
  0x3b   : > { %v563_v46 = vsel %vm2466_vm6, %v558_v25, %v562_v63  ;;  %v2742_v47 = vunpack.c.l.b16 %v549_v15  ;;  %v483_v53 = vrot.slane %v481_v40, 4  ;;  %v486_v54 = vrot.slane %v484_v41, 5  ;;  %v2265_v40 = vld [vmem:[%s3019_s1 + $0x178] sm:$0xff] }
  0x3c   : > { %750 = vmatpush.bf16.msrb.mxu1 %v2221_v36  ;;  %1140 = vmatpush.bf16.msrb.mxu0 %v2253_v62  ;;  %v2745_v52 = vunpack.c.l.b16 %v563_v46  ;;  %v498_v55 = vshll.u32 %v2724_v30, 16  ;;  %v492_v36 = vrot.slane %v490_v50, 5  ;;  %v497_v56 = vrot.slane %v495_v51, 4  ;;  %v2289_v46 = vld [vmem:[%s3019_s1 + $0x238] sm:$0xff] }
  0x3d   : > { %v504_v57 = vshll.u32 %v420_v34, 16  ;;  %v955_v58 = vpack.c.b16 %v684_v44, %v683_v14  ;;  %v487_v23 = vor.u32 %v486_v54, %v483_v53  ;;  %v1872_v1 = vrot.slane %v2722_v22, 9  ;;  %1362 = vmatpush.bf16.msrb.mxu2 %v2269_v20  ;;  %v2266_v20 = vld [vmem:[%s3019_s1 + $0x180] sm:$0xff]  ;;  %v2259_v22 = vld [vmem:[%s3019_s1 + $0x148] sm:$0xff] }
  0x3e   : > { %v2763_v62 = vpack.c.b16 %v2745_v52, %v2742_v47  ;;  %v500_v63 = vrot.slane %v498_v55, 5  ;;  %v796_v2 = vrot.slane %v418_v27, 5  ;;  %v1873_v3 = vrot.slane %v2724_v30, 9  ;;  %v2218_v27 = vld [vmem:[%s3019_s1] sm:$0xff] }
  0x3f   : > { %1019 = vmatmul.bf16.vlgmr.msra.gmra.mxu3 %v955_v58  ;;  %v800_v9 = vrot.slane %v420_v34, 5  ;;  %v488_v13 = vrot.slane %v487_v23, 4  ;;  %v2250_v34 = vld [vmem:[%s3019_s1 + $0x100] sm:$0xff]  ;;  %v685_v55 = vunpack.c.l.b16 %v2724_v30  ;;  %v686_v29 = vunpack.c.l.b16 %v2512_v4 }
  0x40   : > { %751 = vmatpush.bf16.msrb.mxu1 %v2220_v19  ;;  %1141 = vmatpush.bf16.msrb.mxu0 %v2252_v35  ;;  %v501_v16 = vor.u32 %v500_v63, %v497_v56  ;;  %v506_v19 = vrot.slane %v504_v57, 5  ;;  %v797_v21 = vsel %vm2542_vm7, %v1872_v1, %v796_v2  ;;  %v2264_v56 = vld [vmem:[%s3019_s1 + $0x170] sm:$0xff]  ;;  %v1875_v57 = vrot.slane %v2516_v6, 9  ;;  %v2277_v2 = vld [vmem:[%s3019_s1 + $0x1d8] sm:$0xff] }
  0x41   : > { %668 = vmatmul.bf16.gmra.mxu1 %v2763_v62  ;;  %v2775_v25 = vsel %vm2542_vm7, %v1873_v3, %v800_v9  ;;  %v493_v35 = vsel %vm2466_vm6, %v488_v13, %v492_v36  ;;  %v837_v12 = vunpack.c.l.b16 %v797_v21  ;;  %v1874_v36 = vrot.slane %v2512_v4, 9  ;;  %v2262_v13 = vld [vmem:[%s3019_s1 + $0x160] sm:$0xff] }
  0x42   : > { %v502_v8 = vrot.slane %v501_v16, 4  ;;  %v838_v15 = vunpack.c.l.b16 %v2775_v25  ;;  %v583_v41 = vunpack.c.l.b16 %v493_v35  ;;  %v808_v58 = vrot.slane %v2524_v10, 5 }
  0x43   : > { %v2800_v53 = vpack.c.b16 %v837_v12, %v836_v24  ;;  %v804_v24 = vrot.slane %v2514_v5, 5  ;;  %v2818_v30 = vunpack.c.l.b16 %v2351_v28  ;;  %v2263_v5 = vld [vmem:[%s3019_s1 + $0x168] sm:$0xff]  ;;  %v2288_v28 = vld [vmem:[%s3019_s1 + $0x230] sm:$0xff]  ;;  %v956_v10 = vpack.c.b16 %v686_v29, %v685_v55 }
  0x44   : > { %752 = vmatpush.bf16.msrb.mxu1 %v2219_v60  ;;  %1142 = vmatpush.bf16.msrb.mxu0 %v2251_v61  ;;  %v507_v50 = vsel %vm2466_vm6, %v502_v8, %v506_v19  ;;  %v2796_v51 = vpack.c.b16 %v838_v15, %v837_v12  ;;  %v2278_v60 = vld [vmem:[%s3019_s1 + $0x1e0] sm:$0xff]  ;;  %v2268_v61 = vld [vmem:[%s3019_s1 + $0x190] sm:$0xff]  ;;  %v2841_v63 = vsel %vm2542_vm7, %v1875_v57, %v808_v58  ;;  %v2261_v19 = vld [vmem:[%s3019_s1 + $0x158] sm:$0xff]  ;;  %v1876_v35 = vrot.slane %v2678_v32, 9 }
  0x45   : > { %v2802_v54 = vunpack.c.l.b16 %v507_v50  ;;  %v2837_v23 = vsel %vm2542_vm7, %v1874_v36, %v804_v24  ;;  %1480 = vmatpush.bf16.msrb.mxu3 %v2278_v60  ;;  %1363 = vmatpush.bf16.msrb.mxu2 %v2268_v61  ;;  %v690_v1 = vpack.c.b16 %v683_v14, %v2818_v30  ;;  %v840_v9 = vunpack.c.l.b16 %v2841_v63  ;;  %v2287_v14 = vld [vmem:[%s3019_s1 + $0x228] sm:$0xff] }
  0x46   : > { %912 = vmatmul.bf16.gmra.mxu2 %v2796_v51  ;;  %v839_v3 = vunpack.c.l.b16 %v2837_v23  ;;  %v1080_v21 = vpack.c.b16 %v583_v41, %v2636_v48  ;;  %v812_v8 = vrot.slane %v2686_v37, 5  ;;  %v1877_v12 = vrot.slane %v2688_v38, 9  ;;  %v2276_v48 = vld [vmem:[%s3019_s1 + $0x1d0] sm:$0xff]  ;;  %v2275_v36 = vld [vmem:[%s3019_s1 + $0x1c8] sm:$0xff] }
  0x47   : > { %v2812_v18 = vpack.c.b16 %v2802_v54, %v583_v41  ;;  %v2286_v41 = vld [vmem:[%s3019_s1 + $0x220] sm:$0xff]  ;;  %v691_v50 = vpack.c.b16 %v685_v55, %v684_v44  ;;  %v1052_v24 = vshll.u32 %v2586_v0, 16  ;;  %v2285_v44 = vld [vmem:[%s3019_s1 + $0x218] sm:$0xff] }
  0x48   : > { %753 = vmatpush.bf16.msrb.mxu1 %v2218_v27  ;;  %1143 = vmatpush.bf16.msrb.mxu0 %v2250_v34  ;;  %v2864_v16 = vpack.c.b16 %v840_v9, %v839_v3  ;;  %v687_v27 = vunpack.c.l.b16 %v2516_v6  ;;  %v688_v34 = vunpack.c.l.b16 %v2678_v32  ;;  %v2260_v6 = vld [vmem:[%s3019_s1 + $0x150] sm:$0xff]  ;;  %v2274_v55 = vld [vmem:[%s3019_s1 + $0x1c0] sm:$0xff]  ;;  %v1197_v4 = vpack.c.b16 %v839_v3, %v838_v15 }
  0x49   : > { %658 = vmatmul.bf16.gmra.mxu0 %v2812_v18  ;;  %1481 = vmatpush.bf16.msrb.mxu3 %v2277_v2  ;;  %v1054_v60 = vrot.slane %v1052_v24, 5 }
  0x4a   : > { %1364 = vmatpush.bf16.msrb.mxu2 %v2267_v39  ;;  %v957_v37 = vpack.c.b16 %v688_v34, %v687_v27 }
  0x4c   : > { %1252 = vmatpush.bf16.msra.mxu1 %v2265_v40  ;;  %1587 = vmatpush.bf16.msra.mxu0 %v2289_v46  ;;  %v816_v40 = vrot.slane %v2694_v42, 5  ;;  %v2893_v42 = vsel %vm2542_vm7, %v1876_v35, %v812_v8 }
  0x4d   : > { %1482 = vmatpush.bf16.msrb.mxu3 %v2276_v48  ;;  %v841_v57 = vunpack.c.l.b16 %v2893_v42 }
  0x4e   : > { %1365 = vmatpush.bf16.msrb.mxu2 %v2266_v20  ;;  %v2258_v20 = vld [vmem:[%s3019_s1 + $0x140] sm:$0xff] }
  0x4f   : > { %1024 = vmatmul.bf16.gmra.mxu3 %v956_v10 }
  0x50   : > { %1253 = vmatpush.bf16.msra.mxu1 %v2264_v56  ;;  %1588 = vmatpush.bf16.msra.mxu0 %v2288_v28  ;;  %v1049_v56 = vshrl.u32 %v2586_v0, 16 }
  0x51   : > { %754 = vmatmul.bf16.vlgmr.msrb.gmra.mxu1 %v690_v1  ;;  %1483 = vmatpush.bf16.msrb.mxu3 %v2275_v36 }
  0x52   : > { %2321 = vmatpush.bf16.msra.mxu2 %v2289_v46  ;;  %v2897_v46 = vsel %vm2542_vm7, %v1877_v12, %v816_v40  ;;  %v1051_v58 = vrot.slane %v1049_v56, 4 }
  0x53   : > { %v842_v26 = vunpack.c.l.b16 %v2897_v46 }
  0x54   : > { %1254 = vmatpush.bf16.msra.mxu1 %v2263_v5  ;;  %1589 = vmatpush.bf16.msra.mxu0 %v2287_v14  ;;  %v1055_v61 = vor.u32 %v1054_v60, %v1051_v58  ;;  %v1058_v5 = vshll.u32 %v2593_v11, 16  ;;  %v689_v11 = vunpack.c.l.b16 %v2688_v38  ;;  %v2283_v38 = vld [vmem:[%s3019_s1 + $0x208] sm:$0xff] }
  0x55   : > { %1484 = vmatpush.bf16.msrb.mxu3 %v2274_v55 }
  0x56   : > { %917 = vmatmul.bf16.gmra.mxu2 %v2864_v16  ;;  %v1056_v10 = vrot.slane %v1055_v61, 4  ;;  %v1060_v1 = vrot.slane %v1058_v5, 5 }
  0x57   : > { %2322 = vmatpush.bf16.msra.mxu2 %v2288_v28  ;;  %v846_v28 = vpack.c.b16 %v842_v26, %v841_v57 }
  0x58   : > { %1255 = vmatpush.bf16.msra.mxu1 %v2262_v13  ;;  %1590 = vmatpush.bf16.msra.mxu0 %v2286_v41  ;;  %v1061_v2 = vsel %vm2466_vm6, %v1056_v10, %v1060_v1  ;;  %v1081_v13 = vpack.c.b16 %v2591_v7, %v2802_v54  ;;  %v1082_v54 = vpack.c.b16 %v2742_v47, %v2598_v17 }
  0x59   : > { %1144 = vmatmul.bf16.vlgmr.msrb.gmra.mxu0 %v1080_v21  ;;  %v1079_v39 = vunpack.c.l.b16 %v1061_v2  ;;  %v1198_v21 = vpack.c.b16 %v841_v57, %v840_v9 }
  0x5b   : > { %2323 = vmatpush.bf16.msra.mxu2 %v2287_v14  ;;  %v954_v14 = vunpack.c.l.b16 %v2586_v0  ;;  %v692_v0 = vpack.c.b16 %v687_v27, %v686_v29  ;;  %v693_v29 = vpack.c.b16 %v689_v11, %v688_v34  ;;  %v1427_v47 = vpack.c.b16 %v2484_v45, %v1079_v39 }
  0x5c   : > { %1256 = vmatpush.bf16.msra.mxu1 %v2261_v19  ;;  %1591 = vmatpush.bf16.msra.mxu0 %v2285_v44  ;;  %v1083_v19 = vpack.c.b16 %v1079_v39, %v2745_v52  ;;  %v2282_v52 = vld [vmem:[%s3019_s1 + $0x200] sm:$0xff] }
  0x5d   : > { %v958_v7 = vpack.c.b16 %v954_v14, %v689_v11  ;;  %v1308_v17 = vpack.c.b16 %v2818_v30, %v954_v14 }
  0x5f   : > { %1029 = vmatmul.bf16.gmra.mxu3 %v957_v37  ;;  %2324 = vmatpush.bf16.msra.mxu2 %v2286_v41 }
  0x60   : > { %1257 = vmatpush.bf16.msra.mxu1 %v2260_v6  ;;  %1592 = vmatpush.bf16.msra.mxu0 %v2284_v33 }
  0x61   : > { %759 = vmatmul.bf16.gmra.mxu1 %v691_v50 }
  0x63   : > { %2325 = vmatpush.bf16.msra.mxu2 %v2285_v44 }
  0x64   : > { %1258 = vmatpush.bf16.msra.mxu1 %v2259_v22  ;;  %1593 = vmatpush.bf16.msra.mxu0 %v2283_v38 }
  0x66   : > { %922 = vmatmul.bf16.gmra.mxu2 %v846_v28 }
  0x67   : > { %2326 = vmatpush.bf16.msra.mxu2 %v2284_v33 }
  0x68   : > { %1259 = vmatpush.bf16.msra.mxu1 %v2258_v20  ;;  %1594 = vmatpush.bf16.msra.mxu0 %v2282_v52 }
  0x69   : > { %1149 = vmatmul.bf16.gmra.mxu0 %v1081_v13 }
  0x6b   : > { %2327 = vmatpush.bf16.msra.mxu2 %v2283_v38 }
  0x6f   : > { %1034 = vmatmul.bf16.gmra.mxu3 %v958_v7  ;;  %2328 = vmatpush.bf16.msra.mxu2 %v2282_v52 }
  0x71   : > { %764 = vmatmul.bf16.gmra.mxu1 %v692_v0 }
  0x76   : > { %1366 = vmatmul.bf16.vlgmr.msrb.gmra.mxu2 %v691_v50 }
  0x79   : > { %1154 = vmatmul.bf16.gmra.mxu0 %v1082_v54 }
  0x7f   : > { %1485 = vmatmul.bf16.vlgmr.msrb.gmra.mxu3 %v2812_v18 }
  0x81   : > { %769 = vmatmul.bf16.gmra.mxu1 %v693_v29 }
  0x86   : > { %1371 = vmatmul.bf16.gmra.mxu2 %v692_v0 }
  0x89   : > { %1159 = vmatmul.bf16.gmra.mxu0 %v1083_v19 }
  0x8f   : > { %1490 = vmatmul.bf16.gmra.mxu3 %v2615_v31 }
  0x91   : > { %1260 = vmatmul.bf16.vlgmr.msra.gmra.mxu1 %v2800_v53 }
  0x96   : > { %1376 = vmatmul.bf16.gmra.mxu2 %v693_v29 }
  0x99   : > { %1595 = vmatmul.bf16.vlgmr.msra.gmra.mxu0 %v2796_v51 }
  0x9f   : > { %1495 = vmatmul.bf16.gmra.mxu3 %v2763_v62  ;;  %v1199_v62 = vpack.c.b16 %v1195_v49, %v842_v26 }
  0xa1   : > { %1265 = vmatmul.bf16.gmra.mxu1 %v1197_v4 }
  0xa6   : > { %1381 = vmatmul.bf16.gmra.mxu2 %v1308_v17 }
  0xa8   : > { %v664_v32 = vpop.f32.mrf.mxu1 }
  0xa9   : > { %1600 = vmatmul.bf16.gmra.mxu0 %v2864_v16 }
  0xaa   : > { %v654_v25 = vpop.f32.mrf.mxu0 }
  0xaf   : > { %1500 = vmatmul.bf16.gmra.mxu3 %v1427_v47 }
  0xb0   : > { %v666_v31 = vpop.f32.mrf.mxu1 }
  0xb1   : > { %1270 = vmatmul.bf16.gmra.mxu1 %v1198_v21  ;;  %v908_v15 = vpop.f32.mrf.mxu2 }
  0xb2   : > { %v656_v51 = vpop.f32.mrf.mxu0 }
  0xb6   : > { %1610 = vmatmul.bf16.vlgmr.msra.gmra.mxu2 %v2657_v59 }
  0xb9   : > { %1605 = vmatmul.bf16.gmra.mxu0 %v846_v28  ;;  %v910_v18 = vpop.f32.mrf.mxu2 }
  0xbe   : > { %v669_v53 = vpop.f32.mrf.mxu1 }
  0xc1   : > { %1275 = vmatmul.bf16.gmra.mxu1 %v1199_v62 }
  0xc2   : > { %v1020_v30 = vpop.f32.mrf.mxu3 }
  0xc6   : > { %v671_v23 = vpop.f32.mrf.mxu1  ;;  %v659_v45 = vpop.f32.mrf.mxu0 }
  0xc9   : > { %v913_v63 = vpop.f32.mrf.mxu2 }
  0xca   : > { %v1022_v3 = vpop.f32.mrf.mxu3 }
  0xce   : > { %v755_v9 = vpop.f32.mrf.mxu1  ;;  %v661_v16 = vpop.f32.mrf.mxu0 }
  0xcf   : > { %v756_v27 = vadd.f32 %v755_v9, %v654_v25 }
  0xd1   : > { %v928_v34 = vadd.f32 %v908_v15, %v756_v27  ;;  %v915_v59 = vpop.f32.mrf.mxu2 }
  0xd2   : > { %v1025_v8 = vpop.f32.mrf.mxu3 }
  0xd3   : > { %v1040_v35 = vadd.f32 %v1020_v30, %v928_v34 }
  0xd6   : > { %v757_v12 = vpop.f32.mrf.mxu1  ;;  %v1145_v40 = vpop.f32.mrf.mxu0 }
  0xd7   : > { %v758_v48 = vadd.f32 %v757_v12, %v656_v51  ;;  %v1165_v43 = vadd.f32 %v1145_v40, %v1040_v35 }
  0xd9   : > { %v929_v49 = vadd.f32 %v910_v18, %v758_v48  ;;  %v918_v6 = vpop.f32.mrf.mxu2 }
  0xda   : > { %v2964_v41 = vpop.f32.mrf.mxu3 }
  0xdb   : > { %v1041_v62 = vadd.f32 %v1022_v3, %v929_v49 }
  0xde   : > { %v760_v37 = vpop.f32.mrf.mxu1  ;;  %v1147_v42 = vpop.f32.mrf.mxu0 }
  0xdf   : > { %v761_v46 = vadd.f32 %v760_v37, %v659_v45 }
  0xe1   : > { %v930_v50 = vadd.f32 %v913_v63, %v761_v46  ;;  %v920_v36 = vpop.f32.mrf.mxu2 }
  0xe2   : > { %v1030_v24 = vpop.f32.mrf.mxu3 }
  0xe3   : > { %v1042_v56 = vadd.f32 %v1025_v8, %v930_v50 }
  0xe6   : > { %v762_v57 = vpop.f32.mrf.mxu1  ;;  %v1150_v26 = vpop.f32.mrf.mxu0 }
  0xe7   : > { %v763_v58 = vadd.f32 %v762_v57, %v661_v16  ;;  %v1167_v60 = vadd.f32 %v1150_v26, %v1042_v56 }
  0xe9   : > { %v931_v22 = vadd.f32 %v915_v59, %v763_v58  ;;  %v923_v44 = vpop.f32.mrf.mxu2 }
  0xea   : > { %v2966_v55 = vpop.f32.mrf.mxu3 }
  0xee   : > { %v765_v61 = vpop.f32.mrf.mxu1  ;;  %v1152_v5 = vpop.f32.mrf.mxu0 }
  0xef   : > { %v766_v28 = vadd.f32 %v765_v61, %v664_v32 }
  0xf1   : > { %v932_v10 = vadd.f32 %v918_v6, %v766_v28  ;;  %v925_v1 = vpop.f32.mrf.mxu2 }
  0xf2   : > { %v2968_v13 = vpop.f32.mrf.mxu3 }
  0xf3   : > { %v1044_v2 = vadd.f32 %v1030_v24, %v932_v10 }
  0xf6   : > { %v767_v39 = vpop.f32.mrf.mxu1  ;;  %v1155_v11 = vpop.f32.mrf.mxu0 }
  0xf7   : > { %v768_v14 = vadd.f32 %v767_v39, %v666_v31  ;;  %v2970_v19 = vadd.f32 %v1155_v11, %v1044_v2 }
  0xf9   : > { %v2972_v20 = vadd.f32 %v920_v36, %v768_v14  ;;  %v1367_v33 = vpop.f32.mrf.mxu2 }
  0xfa   : > { %v2974_v7 = vpop.f32.mrf.mxu3 }
  0xfe   : > { %v770_v38 = vpop.f32.mrf.mxu1  ;;  %v2976_v0 = vpop.f32.mrf.mxu0 }
  0xff   : > { %v771_v52 = vadd.f32 %v770_v38, %v669_v53  ;;  %v1166_v53 = vadd.f32 %v1147_v42, %v1041_v62 }
 0x101   : > { %v2978_v54 = vadd.f32 %v923_v44, %v771_v52  ;;  %v1369_v4 = vpop.f32.mrf.mxu2 }
 0x102   : > { %v1486_v29 = vpop.f32.mrf.mxu3 }
 0x106   : > { %v772_v21 = vpop.f32.mrf.mxu1  ;;  %v2980_v17 = vpop.f32.mrf.mxu0 }
 0x107   : > { %v773_v32 = vadd.f32 %v772_v21, %v671_v23 }
 0x109   : > { %v2982_v47 = vadd.f32 %v925_v1, %v773_v32  ;;  %v1372_v25 = vpop.f32.mrf.mxu2 }
 0x10a   : > { %v1488_v15 = vpop.f32.mrf.mxu3 }
 0x10e   : > { %v1261_v31 = vpop.f32.mrf.mxu1  ;;  %v2984_v51 = vpop.f32.mrf.mxu0 }
 0x10f   : > { %v1281_v18 = vadd.f32 %v1261_v31, %v1165_v43  ;;  %v1043_v43 = vadd.f32 %v2964_v41, %v931_v22 }
 0x111   : > { %v1374_v30 = vpop.f32.mrf.mxu2  ;;  %v1387_v45 = vadd.f32 %v1367_v33, %v1281_v18  ;;  %v1168_v57 = vadd.f32 %v1152_v5, %v1043_v43  ;;  %v1045_v5 = vadd.f32 %v2966_v55, %v2972_v20 }
 0x112   : > { %v1491_v27 = vpop.f32.mrf.mxu3 }
 0x113   : > { %v1506_v23 = vadd.f32 %v1486_v29, %v1387_v45 }
 0x116   : > { %v1263_v63 = vpop.f32.mrf.mxu1  ;;  %v1596_v9 = vpop.f32.mrf.mxu0 }
 0x117   : > { %v1282_v16 = vadd.f32 %v1263_v63, %v1166_v53  ;;  %v1616_v8 = vadd.f32 %v1596_v9, %v1506_v23 }
 0x119   : > { %v1388_v34 = vadd.f32 %v1369_v4, %v1282_v16  ;;  %v1377_v59 = vpop.f32.mrf.mxu2  ;;  %v1654_v6 = vmul.f32 %v1616_v8, %v1616_v8 }
 0x11a   : > { %v1493_v50 = vpop.f32.mrf.mxu3 }
 0x11b   : > { %v1507_v35 = vadd.f32 %v1488_v15, %v1388_v34 }
 0x11e   : > { %v1266_v12 = vpop.f32.mrf.mxu1  ;;  %v1598_v40 = vpop.f32.mrf.mxu0 }
 0x11f   : > { %v1283_v3 = vadd.f32 %v1266_v12, %v1167_v60  ;;  %v1617_v48 = vadd.f32 %v1598_v40, %v1507_v35  ;;  %v1047_v35 = vadd.f32 %v2974_v7, %v2982_v47 }
 0x121   : > { %v1389_v49 = vadd.f32 %v1372_v25, %v1283_v3  ;;  %v2293_v37 = vpack.c.bf16 %v1617_v48, %v1616_v8  ;;  %v1640_v42 = vadd.f32 %v1617_v48, %v1616_v8  ;;  %v1655_v46 = vmul.f32 %v1617_v48, %v1617_v48  ;;  %v1379_v56 = vpop.f32.mrf.mxu2 }
 0x122   : > { %v1496_v10 = vpop.f32.mrf.mxu3  ;;  %v1170_v25 = vadd.f32 %v2976_v0, %v1045_v5  ;;  %v1172_v43 = vadd.f32 %v2984_v51, %v1047_v35 }
 0x123   : > { %2294 = vst [vmem:[%s2991_s9] sm:$0xff] %v2293_v37   ;;  %v1662_v36 = vadd.f32 %v1655_v46, %v1654_v6  ;;  %v1508_v24 = vadd.f32 %v1491_v27, %v1389_v49 }
 0x126   : > { %v1268_v26 = vpop.f32.mrf.mxu1  ;;  %v1601_v58 = vpop.f32.mrf.mxu0 }
 0x127   : > { %v1284_v41 = vadd.f32 %v1268_v26, %v1168_v57  ;;  %v1618_v60 = vadd.f32 %v1601_v58, %v1508_v24 }
 0x129   : > { %v1390_v22 = vadd.f32 %v1374_v30, %v1284_v41  ;;  %v1641_v44 = vadd.f32 %v1640_v42, %v1618_v60  ;;  %v1656_v61 = vmul.f32 %v1618_v60, %v1618_v60  ;;  %v1382_v2 = vpop.f32.mrf.mxu2 }
 0x12a   : > { %v1498_v31 = vpop.f32.mrf.mxu3 }
 0x12b   : > { %v1663_v28 = vadd.f32 %v1662_v36, %v1656_v61  ;;  %v1509_v1 = vadd.f32 %v1493_v50, %v1390_v22 }
 0x12e   : > { %v1271_v39 = vpop.f32.mrf.mxu1  ;;  %v1603_v11 = vpop.f32.mrf.mxu0 }
 0x12f   : > { %v1285_v14 = vadd.f32 %v1271_v39, %v2970_v19  ;;  %v1619_v33 = vadd.f32 %v1603_v11, %v1509_v1  ;;  %v1046_v19 = vadd.f32 %v2968_v13, %v2978_v54 }
 0x131   : > { %v1391_v38 = vadd.f32 %v1377_v59, %v1285_v14  ;;  %v2298_v52 = vpack.c.bf16 %v1619_v33, %v1618_v60  ;;  %v1642_v4 = vadd.f32 %v1641_v44, %v1619_v33  ;;  %v1657_v29 = vmul.f32 %v1619_v33, %v1619_v33  ;;  %v1384_v30 = vpop.f32.mrf.mxu2 }
 0x132   : > { %v1171_v16 = vadd.f32 %v2980_v17, %v1046_v19  ;;  %v1501_v23 = vpop.f32.mrf.mxu3 }
 0x133   : > { %2310 = vst [vmem:[%s2991_s9 + $0x8] sm:$0xff] %v2298_v52   ;;  %v1664_v21 = vadd.f32 %v1663_v28, %v1657_v29  ;;  %v1510_v32 = vadd.f32 %v1496_v10, %v1391_v38 }
 0x136   : > { %v1273_v15 = vpop.f32.mrf.mxu1  ;;  %v1606_v62 = vpop.f32.mrf.mxu0 }
 0x137   : > { %v1286_v18 = vadd.f32 %v1273_v15, %v1170_v25  ;;  %v1620_v53 = vadd.f32 %v1606_v62, %v1510_v32 }
 0x139   : > { %v1392_v45 = vadd.f32 %v1379_v56, %v1286_v18  ;;  %v1643_v55 = vadd.f32 %v1642_v4, %v1620_v53  ;;  %v1658_v20 = vmul.f32 %v1620_v53, %v1620_v53  ;;  %v1611_v54 = vpop.f32.mrf.mxu2 }
 0x13a   : > { %v1503_v36 = vpop.f32.mrf.mxu3 }
 0x13b   : > { %v1665_v63 = vadd.f32 %v1664_v21, %v1658_v20  ;;  %v1511_v9 = vadd.f32 %v1498_v31, %v1392_v45 }
 0x13e   : > { %v1276_v27 = vpop.f32.mrf.mxu1  ;;  %v1608_v34 = vpop.f32.mrf.mxu0 }
 0x13f   : > { %v1287_v0 = vadd.f32 %v1276_v27, %v1171_v16  ;;  %v1621_v59 = vadd.f32 %v1608_v34, %v1511_v9 }
 0x141   : > { %v1393_v8 = vadd.f32 %v1382_v2, %v1287_v0  ;;  %v2303_v12 = vpack.c.bf16 %v1621_v59, %v1620_v53  ;;  %v1644_v40 = vadd.f32 %v1643_v55, %v1621_v59  ;;  %v1659_v13 = vmul.f32 %v1621_v59, %v1621_v59  ;;  %v1613_v47 = vpop.f32.mrf.mxu2 }
 0x143   : > { %v1512_v3 = vadd.f32 %v1501_v23, %v1393_v8  ;;  %2311 = vst [vmem:[%s2991_s9 + $0x10] sm:$0xff] %v2303_v12   ;;  %v1666_v48 = vadd.f32 %v1665_v63, %v1659_v13 }
 0x145   : > { %v1622_v17 = vadd.f32 %v1611_v54, %v1512_v3 }
 0x146   : > { %v1278_v49 = vpop.f32.mrf.mxu1 }
 0x147   : > { %v1645_v6 = vadd.f32 %v1644_v40, %v1622_v17  ;;  %v1660_v37 = vmul.f32 %v1622_v17, %v1622_v17  ;;  %v1288_v42 = vadd.f32 %v1278_v49, %v1172_v43 }
 0x149   : > { %v1667_v46 = vadd.f32 %v1666_v48, %v1660_v37  ;;  %v1394_v50 = vadd.f32 %v1384_v30, %v1288_v42 }
 0x14b   : > { %v1513_v7 = vadd.f32 %v1503_v36, %v1394_v50 }
 0x14d   : > { %v1623_v56 = vadd.f32 %v1613_v47, %v1513_v7 }
 0x14f   : > { %v2308_v24 = vpack.c.bf16 %v1623_v56, %v1622_v17  ;;  %v1646_v57 = vadd.f32 %v1645_v6, %v1623_v56  ;;  %v1661_v26 = vmul.f32 %v1623_v56, %v1623_v56 }
 0x151   : > { %2312 = vst [vmem:[%s2991_s9 + $0x18] sm:$0xff] %v2308_v24   ;;  %v1647_v58 = vrot.slane %v1646_v57, 4  ;;  %v1668_v41 = vadd.f32 %v1667_v46, %v1661_v26 }
 0x153   : > { %v1648_v51 = vadd.f32 %v1647_v58, %v1646_v57  ;;  %v1669_v60 = vrot.slane %v1668_v41, 4 }
 0x155   : > { %v1649_v22 = vrot.slane %v1648_v51, 2  ;;  %v1670_v44 = vadd.f32 %v1669_v60, %v1668_v41 }
 0x157   : > { %v1650_v61 = vadd.f32 %v1649_v22, %v1648_v51  ;;  %v1671_v28 = vrot.slane %v1670_v44, 2 }
 0x159   : > { %v1651_v10 = vrot.slane %v1650_v61, 1  ;;  %v1672_v1 = vadd.f32 %v1671_v28, %v1670_v44 }
 0x15b   : > { %v1652_v2 = vadd.f32 %v1651_v10, %v1650_v61  ;;  %v1673_v39 = vrot.slane %v1672_v1, 1 }
 0x15d   : > { %1653 = vst [vmem:[%s266_s12] sm:$0x1] %v1652_v2  ;;  %v1674_v11 = vadd.f32 %v1673_v39, %v1672_v1 }
 0x15f   : > { %1675 = vst [vmem:[%s269_s15] sm:$0x1] %v1674_v11 }
 0x160 PF: > { %s17_s21 = sadd.s32 1, %s2348_s21  }
 0x161   : > { %p14_p5 = scmp.ge.s32.totalorder %s17_s21, 4  }
 0x163   :  { %16 = sbr.rel (!%p14_p5) target bundleno = 1 (0x1), region = 98 }

</bundles_post_ra>
